<compile_context>
chip_gen: v5e
topology: v5e:2x2
jax: 0.10.0
libtpu: 0.0.40
codegen_flags: <defaults>
</compile_context>

<pallas_src>
import functools
import math

import jax
import jax.numpy as jnp
import numpy as np
from jax.experimental import pallas as pl
from jax.experimental.pallas import tpu as pltpu


def _round_up(n, m):
    return ((n + m - 1) // m) * m


# ---------------------------------------------------------------------------
# Fused Pallas kernel: the whole VAE forward pass, VMEM-resident.
# ---------------------------------------------------------------------------
def _vae_fused_kernel(*refs, num_enc, num_dec, latent_size, bias_slices):
    it = iter(refs)
    x_ref, eps_ref = next(it), next(it)                 # (B, C0*H*W), (B, L)
    enc_T = [next(it) for _ in range(num_enc)]          # bf16 dense conv ops
    w_fc_enc = next(it)                                 # (flat, 2L)  bf16
    w_fc_dec = next(it)                                 # (L, flat)   bf16
    dec_T = [next(it) for _ in range(num_dec)]          # bf16 dense convT ops
    bias_ref = next(it)                                 # (1, total)  f32
    lat_ref, out_ref = next(it), next(it)               # (B, 2L), (B, C0*H*W)

    bslice = iter(bias_slices)

    def next_bias():
        off, n = next(bslice)                           # static python ints
        return bias_ref[:, off:off + n]

    def mm(a, w_ref):
        # bf16 x bf16 matmul with f32 accumulation on the MXU.
        return jnp.dot(a.astype(jnp.bfloat16), w_ref[...],
                       preferred_element_type=jnp.float32)

    def leaky_relu(x):
        return jnp.maximum(x, 0.01 * x)                 # nn.LeakyReLU default

    # ---- encoder: chain of dense-conv GEMMs + LeakyReLU, all in VMEM ----
    h = x_ref[...]
    for t_ref in enc_T:
        h = leaky_relu(mm(h, t_ref) + next_bias())

    # ---- fused latent head: one GEMM produces [mu | log_var] ----
    lat = mm(h, w_fc_enc) + next_bias()                 # (B, 2L) f32
    lat_ref[...] = lat

    L = latent_size
    mu, lv = lat[:, :L], lat[:, L:2 * L]

    # ---- reparameterization trick: z = mu + exp(0.5 * log_var) * eps ----
    z = mu + jnp.exp(0.5 * lv) * eps_ref[...]

    # ---- decoder: fc_dec, then dense transposed-conv GEMMs ----
    d = mm(z, w_fc_dec) + next_bias()
    for i, t_ref in enumerate(dec_T):
        d = mm(d, t_ref) + next_bias()
        if i == num_dec - 1:
            # numerically-stable sigmoid; divide goes to the EUP slot
            e = jnp.exp(-jnp.abs(d))
            inv = pl.reciprocal(1.0 + e, approx=True)
            d = jnp.where(d >= 0, inv, e * inv)
        else:
            d = leaky_relu(d)
    out_ref[...] = d


# ---------------------------------------------------------------------------
# One-time weight preprocessing: lower each conv layer to a dense GEMM
# operator T such that  flatten(conv(x)) == flatten(x) @ T  (NCHW flatten).
# ---------------------------------------------------------------------------
def _conv2d_dense(w, H, W, stride, padding):
    """PyTorch Conv2d, weight (Cout, Cin, k, k) -> dense operator (numpy)."""
    Cout, Cin, k, _ = w.shape
    OH = (H + 2 * padding - k) // stride + 1
    OW = (W + 2 * padding - k) // stride + 1
    co, ci, kh, kw, oh, ow = np.meshgrid(
        np.arange(Cout), np.arange(Cin), np.arange(k), np.arange(k),
        np.arange(OH), np.arange(OW), indexing="ij")
    ih = oh * stride - padding + kh
    iw = ow * stride - padding + kw
    valid = (ih >= 0) & (ih < H) & (iw >= 0) & (iw < W)
    rows = (ci * H * W + ih * W + iw)[valid]
    cols = (co * OH * OW + oh * OW + ow)[valid]
    vals = np.asarray(w, np.float32)[co[valid], ci[valid], kh[valid], kw[valid]]
    T = np.zeros((Cin * H * W, Cout * OH * OW), np.float32)
    np.add.at(T, (rows, cols), vals)          # scatter-ADD: safe for any taps
    return T, OH, OW


def _conv_transpose2d_dense(w, H, W, stride, padding, output_padding):
    """PyTorch ConvTranspose2d, weight (Cin, Cout, k, k) -> dense operator.
    Zero-dilation / cropping is folded into the operator matrix."""
    Cin, Cout, k, _ = w.shape
    OH = (H - 1) * stride - 2 * padding + k + output_padding
    OW = (W - 1) * stride - 2 * padding + k + output_padding
    ci, co, kh, kw, ih, iw = np.meshgrid(
        np.arange(Cin), np.arange(Cout), np.arange(k), np.arange(k),
        np.arange(H), np.arange(W), indexing="ij")
    oh = ih * stride - padding + kh
    ow = iw * stride - padding + kw
    valid = (oh >= 0) & (oh < OH) & (ow >= 0) & (ow < OW)
    rows = (ci * H * W + ih * W + iw)[valid]
    cols = (co * OH * OW + oh * OW + ow)[valid]
    vals = np.asarray(w, np.float32)[ci[valid], co[valid], kh[valid], kw[valid]]
    T = np.zeros((Cin * H * W, Cout * OH * OW), np.float32)
    np.add.at(T, (rows, cols), vals)
    return T, OH, OW


def prepare_fused_params(params, cnn_act_maps, latent_size, input_size,
                         k=3, stride=2, padding=1,
                         dense_budget_bytes=24 * 1024 * 1024):
    """Hoist all weight layout work out of the forward pass (done once)."""
    H = W = input_size
    enc_T, dec_T = [], []
    bias_list = []                       # in kernel consumption order
    flops_per_ex = 0

    for (w, b) in params["enc_convs"]:
        T, OH, OW = _conv2d_dense(np.asarray(w), H, W, stride, padding)
        enc_T.append(jnp.asarray(T, jnp.bfloat16))
        bias_list.append(np.repeat(np.asarray(b, np.float32), OH * OW))
        Cout, Cin = int(w.shape[0]), int(w.shape[1])
        flops_per_ex += 2 * Cout * OH * OW * Cin * k * k     # true conv MACs
        H, W = OH, OW

    L = latent_size
    flat = int(params["fc_enc_w"].shape[1])
    w_fc_enc = jnp.asarray(np.asarray(params["fc_enc_w"]).T, jnp.bfloat16)  # (flat, 2L)
    bias_list.append(np.asarray(params["fc_enc_b"], np.float32))            # (2L,)
    flops_per_ex += 2 * flat * 2 * L

    w_fc_dec = jnp.asarray(np.asarray(params["fc_dec_w"]).T, jnp.bfloat16)  # (L, flat)
    bias_list.append(np.asarray(params["fc_dec_b"], np.float32))            # (flat,)
    flops_per_ex += 2 * L * flat

    for (w, b) in params["dec_convs"]:
        # The module uses output_padding == padding.
        Cin, Cout = int(w.shape[0]), int(w.shape[1])
        flops_per_ex += 2 * Cin * H * W * Cout * k * k       # true convT MACs
        T, OH, OW = _conv_transpose2d_dense(np.asarray(w), H, W,
                                            stride, padding, padding)
        dec_T.append(jnp.asarray(T, jnp.bfloat16))
        bias_list.append(np.repeat(np.asarray(b, np.float32), OH * OW))
        H, W = OH, OW

    # --- gate the dense-operator path on a VMEM byte budget (v7x: 64 MiB) ---
    weight_bytes = sum(int(t.size) * 2 for t in enc_T + dec_T) \
        + int(w_fc_enc.size) * 2 + int(w_fc_dec.size) * 2
    if weight_bytes > dense_budget_bytes:
        # TODO(synk): switch to an in-kernel im2col + compact (Cin*k*k, Cout)
        # GEMM per layer; the dense T set grows as (C*H*W)^2.
        raise ValueError("dense conv-operator path exceeds the VMEM budget; "
                         "use the (not yet implemented) im2col path")

    # --- pack all biases into one (1, total) f32 row, 128-lane aligned ---
    slices, cursor = [], 0
    for b in bias_list:
        n = int(b.shape[0])
        slices.append((cursor, n))
        cursor += _round_up(n, 128)
    bias_all = np.zeros((1, cursor), np.float32)
    for (off, n), b in zip(slices, bias_list):
        bias_all[0, off:off + n] = b

    return dict(
        enc_T=enc_T, dec_T=dec_T,
        w_fc_enc=w_fc_enc, w_fc_dec=w_fc_dec,
        bias_all=jnp.asarray(bias_all),
        bias_slices=tuple(slices),
        latent_size=int(L),
        out_dim=int(dec_T[-1].shape[1]),
        flops_per_example=int(flops_per_ex),
    )


# ---------------------------------------------------------------------------
# Forward pass builder (single pallas_call), jitted.
# ---------------------------------------------------------------------------
def build_forward(fused):
    num_enc = len(fused["enc_T"])
    num_dec = len(fused["dec_T"])
    L = fused["latent_size"]
    out_dim = fused["out_dim"]
    bias_slices = fused["bias_slices"]
    flops_per_ex = fused["flops_per_example"]

    weights = (tuple(fused["enc_T"])
               + (fused["w_fc_enc"], fused["w_fc_dec"])
               + tuple(fused["dec_T"])
               + (fused["bias_all"],))

    kernel = functools.partial(_vae_fused_kernel, num_enc=num_enc,
                               num_dec=num_dec, latent_size=L,
                               bias_slices=bias_slices)

    @jax.jit
    def _forward(weights, x, eps):
        B = x.shape[0]
        Bp = _round_up(max(B, 1), 8)                       # f32 sublane tile
        x_flat = x.reshape(B, -1).astype(jnp.float32)      # NCHW flatten
        x_flat = jnp.pad(x_flat, ((0, Bp - B), (0, 0)))
        eps_p = jnp.pad(eps.astype(jnp.float32), ((0, Bp - B), (0, 0)))

        args = (x_flat, eps_p) + weights

        io_bytes = sum(int(a.size) * a.dtype.itemsize for a in args) \
            + 4 * Bp * (2 * L + out_dim)
        vmem_limit = min(100 * 1024 * 1024,
                         max(8 * 1024 * 1024, 2 * io_bytes + (4 << 20)))

        lat, recon_flat = pl.pallas_call(
            kernel,
            out_shape=(jax.ShapeDtypeStruct((Bp, 2 * L), jnp.float32),
                       jax.ShapeDtypeStruct((Bp, out_dim), jnp.float32)),
            in_specs=[pl.BlockSpec(memory_space=pltpu.MemorySpace.VMEM)] * len(args),
            out_specs=(pl.BlockSpec(memory_space=pltpu.MemorySpace.VMEM),) * 2,
            compiler_params=pltpu.CompilerParams(vmem_limit_bytes=vmem_limit),
            cost_estimate=pl.CostEstimate(
                flops=Bp * flops_per_ex,
                transcendentals=Bp * (L + 2 * out_dim),
                bytes_accessed=io_bytes),
        )(*args)

        mu = lat[:B, :L]
        log_var = lat[:B, L:]
        recon = recon_flat[:B].reshape(x.shape)
        return mu, log_var, recon

    def forward(x, eps):
        """CNNVAEnet.forward: returns (mu, log_var, reconstruction[NCHW])."""
        return _forward(weights, x, eps)

    return forward


# ---------------------------------------------------------------------------
# Deterministic parameter init (shapes match CNNVAEnet.__init__).
# ---------------------------------------------------------------------------
def init_params(key, cnn_act_maps, latent_size, input_size, k=3, stride=2, padding=1):
    def get_out_size(size):
        return math.floor((size + 2 * padding - (k - 1) - 1) / stride + 1)

    out_size = input_size
    for _ in range(len(cnn_act_maps) - 1):
        out_size = get_out_size(out_size)

    def uniform(key, shape, fan_in):
        bound = 1.0 / math.sqrt(fan_in)
        return jax.random.uniform(key, shape, jnp.float32, -bound, bound)

    params = {"enc_convs": [], "dec_convs": []}
    keys = iter(jax.random.split(key, 64))

    for cin, cout in zip(cnn_act_maps[:-1], cnn_act_maps[1:]):        # Conv2d
        fan_in = cin * k * k
        params["enc_convs"].append((uniform(next(keys), (cout, cin, k, k), fan_in),
                                    uniform(next(keys), (cout,), fan_in)))
    for cin, cout in zip(cnn_act_maps[:0:-1], cnn_act_maps[-2::-1]):  # ConvT2d
        fan_in = cout * k * k
        params["dec_convs"].append((uniform(next(keys), (cin, cout, k, k), fan_in),
                                    uniform(next(keys), (cout,), fan_in)))

    flat = cnn_act_maps[-1] * out_size ** 2
    params["fc_enc_w"] = uniform(next(keys), (latent_size * 2, flat), flat)
    params["fc_enc_b"] = uniform(next(keys), (latent_size * 2,), flat)
    params["fc_dec_w"] = uniform(next(keys), (flat, latent_size), latent_size)
    params["fc_dec_b"] = uniform(next(keys), (flat,), latent_size)
    return params, out_size


# ---------------------------------------------------------------------------
# Plain-JAX reference (XLA convs) used only for a numerical self-check.
# ---------------------------------------------------------------------------
def _ref_forward(params, x, eps, latent_size, cnn_act_maps, out_size,
                 k=3, stride=2, padding=1):
    dn = ("NCHW", "OIHW", "NCHW")
    h = x
    for (w, b) in params["enc_convs"]:
        h = jax.lax.conv_general_dilated(h, w, (stride, stride),
                                         [(padding, padding)] * 2,
                                         dimension_numbers=dn)
        h = h + b[None, :, None, None]
        h = jnp.where(h > 0, h, 0.01 * h)
    B = x.shape[0]
    enc = h.reshape(B, -1) @ params["fc_enc_w"].T + params["fc_enc_b"]
    mu, log_var = enc[:, :latent_size], enc[:, latent_size:]
    z = jnp.exp(0.5 * log_var) * eps + mu
    d = z @ params["fc_dec_w"].T + params["fc_dec_b"]
    d = d.reshape(B, cnn_act_maps[-1], out_size, out_size)
    n_dec = len(params["dec_convs"])
    for i, (w, b) in enumerate(params["dec_convs"]):
        w_eq = jnp.flip(w, axis=(2, 3)).transpose(1, 0, 2, 3)   # (Cout,Cin,k,k)
        lo = k - 1 - padding
        hi = k - 1 - padding + padding          # output_padding == padding
        d = jax.lax.conv_general_dilated(d, w_eq, (1, 1), [(lo, hi)] * 2,
                                         lhs_dilation=(stride, stride),
                                         dimension_numbers=dn)
        d = d + b[None, :, None, None]
        d = jax.nn.sigmoid(d) if i == n_dec - 1 else jnp.where(d > 0, d, 0.01 * d)
    return mu, log_var, d


# ---------------------------------------------------------------------------
if __name__ == "__main__":
    cnn_act_maps = [4, 8, 16]     # encoder 4->8->16, symmetric decoder
    latent_size = 8
    input_size = 16
    B = 2

    root = jax.random.PRNGKey(0)
    k_param, k_x, k_eps = jax.random.split(root, 3)

    params, out_size = init_params(k_param, cnn_act_maps, latent_size, input_size)
    fused = prepare_fused_params(params, cnn_act_maps, latent_size, input_size)
    vae_forward = build_forward(fused)

    x = jax.random.normal(k_x, (B, cnn_act_maps[0], input_size, input_size), jnp.float32)
    eps = jax.random.normal(k_eps, (B, latent_size), jnp.float32)  # randn_like(mu)

    mu, log_var, recon = vae_forward(x, eps)
    jax.block_until_ready((mu, log_var, recon))

    # shape / range sanity
    assert mu.shape == (B, latent_size)
    assert log_var.shape == (B, latent_size)
    assert recon.shape == x.shape
    assert bool(jnp.all(jnp.isfinite(recon)))
    # approx-reciprocal sigmoid: allow a tiny slack around [0, 1]
    assert bool(jnp.all((recon >= -1e-3) & (recon <= 1.0 + 1e-3)))

    # numerical check against a plain-JAX (XLA conv) f32 implementation
    mu_r, lv_r, rec_r = _ref_forward(params, x, eps, latent_size,
                                     cnn_act_maps, out_size)
    assert bool(jnp.allclose(mu, mu_r, atol=5e-2, rtol=5e-2))
    assert bool(jnp.allclose(log_var, lv_r, atol=5e-2, rtol=5e-2))
    assert bool(jnp.allclose(recon, rec_r, atol=5e-2, rtol=5e-2))

    print("KERNEL_OK")
</pallas_src>

<mosaic_0001>
module attributes {stable_mosaic.version = 11 : i64} {
  func.func @_vae_fused_kernel(%arg0: memref<8x1024xf32, #tpu.memory_space<vmem>>, %arg1: memref<8x8xf32, #tpu.memory_space<vmem>>, %arg2: memref<1024x512xbf16, #tpu.memory_space<vmem>>, %arg3: memref<512x256xbf16, #tpu.memory_space<vmem>>, %arg4: memref<256x16xbf16, #tpu.memory_space<vmem>>, %arg5: memref<8x256xbf16, #tpu.memory_space<vmem>>, %arg6: memref<256x512xbf16, #tpu.memory_space<vmem>>, %arg7: memref<512x1024xbf16, #tpu.memory_space<vmem>>, %arg8: memref<1x2688xf32, #tpu.memory_space<vmem>>, %arg9: memref<8x16xf32, #tpu.memory_space<vmem>>, %arg10: memref<8x1024xf32, #tpu.memory_space<vmem>>) attributes {dimension_semantics = [], scalar_prefetch = 0 : i64, scratch_operands = 0 : i64, tpu.core_type = #tpu.core_type<tc>} {
    %c0 = arith.constant 0 : index
    %c0_0 = arith.constant 0 : index
    %0 = vector.load %arg0[%c0, %c0_0] : memref<8x1024xf32, #tpu.memory_space<vmem>>, vector<8x1024xf32>
    %1 = arith.truncf %0 : vector<8x1024xf32> to vector<8x1024xbf16>
    %c0_1 = arith.constant 0 : index
    %c0_2 = arith.constant 0 : index
    %2 = vector.load %arg2[%c0_1, %c0_2] : memref<1024x512xbf16, #tpu.memory_space<vmem>>, vector<1024x512xbf16>
    %cst = arith.constant dense<0.000000e+00> : vector<8x512xf32>
    %3 = tpu.matmul %1, %2, %cst {dimension_numbers = #tpu.dot_dimension_numbers<[1], [0], [0], [1], [0, 0, 1, 1], [], []>} : vector<8x1024xbf16>, vector<1024x512xbf16>, vector<8x512xf32> -> vector<8x512xf32>
    %c0_3 = arith.constant 0 : index
    %c0_4 = arith.constant 0 : index
    %4 = vector.load %arg8[%c0_3, %c0_4] : memref<1x2688xf32, #tpu.memory_space<vmem>>, vector<1x512xf32>
    %5 = vector.broadcast %4 : vector<1x512xf32> to vector<8x512xf32>
    %6 = arith.addf %3, %5 : vector<8x512xf32>
    %cst_5 = arith.constant 0.00999999977 : f32
    %7 = vector.broadcast %cst_5 : f32 to vector<8x512xf32>
    %8 = arith.mulf %7, %6 : vector<8x512xf32>
    %9 = arith.maximumf %6, %8 : vector<8x512xf32>
    %10 = arith.truncf %9 : vector<8x512xf32> to vector<8x512xbf16>
    %c0_6 = arith.constant 0 : index
    %c0_7 = arith.constant 0 : index
    %11 = vector.load %arg3[%c0_6, %c0_7] : memref<512x256xbf16, #tpu.memory_space<vmem>>, vector<512x256xbf16>
    %cst_8 = arith.constant dense<0.000000e+00> : vector<8x256xf32>
    %12 = tpu.matmul %10, %11, %cst_8 {dimension_numbers = #tpu.dot_dimension_numbers<[1], [0], [0], [1], [0, 0, 1, 1], [], []>} : vector<8x512xbf16>, vector<512x256xbf16>, vector<8x256xf32> -> vector<8x256xf32>
    %c0_9 = arith.constant 0 : index
    %c512 = arith.constant 512 : index
    %13 = vector.load %arg8[%c0_9, %c512] : memref<1x2688xf32, #tpu.memory_space<vmem>>, vector<1x256xf32>
    %14 = vector.broadcast %13 : vector<1x256xf32> to vector<8x256xf32>
    %15 = arith.addf %12, %14 : vector<8x256xf32>
    %cst_10 = arith.constant 0.00999999977 : f32
    %16 = vector.broadcast %cst_10 : f32 to vector<8x256xf32>
    %17 = arith.mulf %16, %15 : vector<8x256xf32>
    %18 = arith.maximumf %15, %17 : vector<8x256xf32>
    %19 = arith.truncf %18 : vector<8x256xf32> to vector<8x256xbf16>
    %c0_11 = arith.constant 0 : index
    %c0_12 = arith.constant 0 : index
    %20 = vector.load %arg4[%c0_11, %c0_12] : memref<256x16xbf16, #tpu.memory_space<vmem>>, vector<256x16xbf16>
    %cst_13 = arith.constant dense<0.000000e+00> : vector<8x16xf32>
    %21 = tpu.matmul %19, %20, %cst_13 {dimension_numbers = #tpu.dot_dimension_numbers<[1], [0], [0], [1], [0, 0, 1, 1], [], []>} : vector<8x256xbf16>, vector<256x16xbf16>, vector<8x16xf32> -> vector<8x16xf32>
    %c0_14 = arith.constant 0 : index
    %c768 = arith.constant 768 : index
    %22 = vector.load %arg8[%c0_14, %c768] : memref<1x2688xf32, #tpu.memory_space<vmem>>, vector<1x16xf32>
    %23 = vector.broadcast %22 : vector<1x16xf32> to vector<8x16xf32>
    %24 = arith.addf %21, %23 : vector<8x16xf32>
    %c0_15 = arith.constant 0 : index
    %c0_16 = arith.constant 0 : index
    %25 = vector.load %arg9[%c0_15, %c0_16] : memref<8x16xf32, #tpu.memory_space<vmem>>, vector<8x16xf32>
    tpu.vector_store %arg9[%c0_15, %c0_16], %24 {strides = array<i32>} : memref<8x16xf32, #tpu.memory_space<vmem>>, vector<8x16xf32>,
    %26 = vector.extract_strided_slice %24 {offsets = [0, 0], sizes = [8, 8], strides = [1, 1]} : vector<8x16xf32> to vector<8x8xf32>
    %27 = vector.extract_strided_slice %24 {offsets = [0, 8], sizes = [8, 8], strides = [1, 1]} : vector<8x16xf32> to vector<8x8xf32>
    %cst_17 = arith.constant 5.000000e-01 : f32
    %28 = vector.broadcast %cst_17 : f32 to vector<8x8xf32>
    %29 = arith.mulf %28, %27 : vector<8x8xf32>
    %30 = math.exp %29 : vector<8x8xf32>
    %c0_18 = arith.constant 0 : index
    %c0_19 = arith.constant 0 : index
    %31 = vector.load %arg1[%c0_18, %c0_19] : memref<8x8xf32, #tpu.memory_space<vmem>>, vector<8x8xf32>
    %32 = arith.mulf %30, %31 : vector<8x8xf32>
    %33 = arith.addf %26, %32 : vector<8x8xf32>
    %34 = arith.truncf %33 : vector<8x8xf32> to vector<8x8xbf16>
    %c0_20 = arith.constant 0 : index
    %c0_21 = arith.constant 0 : index
    %35 = vector.load %arg5[%c0_20, %c0_21] : memref<8x256xbf16, #tpu.memory_space<vmem>>, vector<8x256xbf16>
    %cst_22 = arith.constant dense<0.000000e+00> : vector<8x256xf32>
    %36 = tpu.matmul %34, %35, %cst_22 {dimension_numbers = #tpu.dot_dimension_numbers<[1], [0], [0], [1], [0, 0, 1, 1], [], []>} : vector<8x8xbf16>, vector<8x256xbf16>, vector<8x256xf32> -> vector<8x256xf32>
    %c0_23 = arith.constant 0 : index
    %c896 = arith.constant 896 : index
    %37 = vector.load %arg8[%c0_23, %c896] : memref<1x2688xf32, #tpu.memory_space<vmem>>, vector<1x256xf32>
    %38 = vector.broadcast %37 : vector<1x256xf32> to vector<8x256xf32>
    %39 = arith.addf %36, %38 : vector<8x256xf32>
    %40 = arith.truncf %39 : vector<8x256xf32> to vector<8x256xbf16>
    %c0_24 = arith.constant 0 : index
    %c0_25 = arith.constant 0 : index
    %41 = vector.load %arg6[%c0_24, %c0_25] : memref<256x512xbf16, #tpu.memory_space<vmem>>, vector<256x512xbf16>
    %cst_26 = arith.constant dense<0.000000e+00> : vector<8x512xf32>
    %42 = tpu.matmul %40, %41, %cst_26 {dimension_numbers = #tpu.dot_dimension_numbers<[1], [0], [0], [1], [0, 0, 1, 1], [], []>} : vector<8x256xbf16>, vector<256x512xbf16>, vector<8x512xf32> -> vector<8x512xf32>
    %c0_27 = arith.constant 0 : index
    %c1152 = arith.constant 1152 : index
    %43 = vector.load %arg8[%c0_27, %c1152] : memref<1x2688xf32, #tpu.memory_space<vmem>>, vector<1x512xf32>
    %44 = vector.broadcast %43 : vector<1x512xf32> to vector<8x512xf32>
    %45 = arith.addf %42, %44 : vector<8x512xf32>
    %cst_28 = arith.constant 0.00999999977 : f32
    %46 = vector.broadcast %cst_28 : f32 to vector<8x512xf32>
    %47 = arith.mulf %46, %45 : vector<8x512xf32>
    %48 = arith.maximumf %45, %47 : vector<8x512xf32>
    %49 = arith.truncf %48 : vector<8x512xf32> to vector<8x512xbf16>
    %c0_29 = arith.constant 0 : index
    %c0_30 = arith.constant 0 : index
    %50 = vector.load %arg7[%c0_29, %c0_30] : memref<512x1024xbf16, #tpu.memory_space<vmem>>, vector<512x1024xbf16>
    %cst_31 = arith.constant dense<0.000000e+00> : vector<8x1024xf32>
    %51 = tpu.matmul %49, %50, %cst_31 {dimension_numbers = #tpu.dot_dimension_numbers<[1], [0], [0], [1], [0, 0, 1, 1], [], []>} : vector<8x512xbf16>, vector<512x1024xbf16>, vector<8x1024xf32> -> vector<8x1024xf32>
    %c0_32 = arith.constant 0 : index
    %c1664 = arith.constant 1664 : index
    %52 = vector.load %arg8[%c0_32, %c1664] : memref<1x2688xf32, #tpu.memory_space<vmem>>, vector<1x1024xf32>
    %53 = vector.broadcast %52 : vector<1x1024xf32> to vector<8x1024xf32>
    %54 = arith.addf %51, %53 : vector<8x1024xf32>
    %55 = math.absf %54 : vector<8x1024xf32>
    %cst_33 = arith.constant 0.000000e+00 : f32
    %56 = vector.broadcast %cst_33 : f32 to vector<8x1024xf32>
    %57 = arith.subf %56, %55 : vector<8x1024xf32>
    %58 = math.exp %57 : vector<8x1024xf32>
    %cst_34 = arith.constant 1.000000e+00 : f32
    %59 = vector.broadcast %cst_34 : f32 to vector<8x1024xf32>
    %60 = arith.addf %59, %58 : vector<8x1024xf32>
    %61 = tpu.reciprocal %60 {approx = true} : vector<8x1024xf32> -> vector<8x1024xf32>
    %cst_35 = arith.constant 0.000000e+00 : f32
    %62 = vector.broadcast %cst_35 : f32 to vector<8x1024xf32>
    %63 = arith.cmpf oge, %54, %62 : vector<8x1024xf32>
    %64 = arith.mulf %58, %61 : vector<8x1024xf32>
    %65 = arith.select %63, %61, %64 : vector<8x1024xi1>, vector<8x1024xf32>
    %c0_36 = arith.constant 0 : index
    %c0_37 = arith.constant 0 : index
    %66 = vector.load %arg10[%c0_36, %c0_37] : memref<8x1024xf32, #tpu.memory_space<vmem>>, vector<8x1024xf32>
    tpu.vector_store %arg10[%c0_36, %c0_37], %65 {strides = array<i32>} : memref<8x1024xf32, #tpu.memory_space<vmem>>, vector<8x1024xf32>,
    return
  }
}

</mosaic_0001>

<bundles_post_ra>
// kernel: _forward.1
= control target key start
LH: loop header
LB: loop body
LE: loop exit
PB: predicated region body
PF: predicated region fallthrough
CT: control target
= control target key end

     0   :  { %16 = vsyncpa [#allocation3], 0  ;;  %s9197_s0 = inlined_call_operand.vmem [shape: f32[8,1024], index: 0, kind: input, shape index: {}]   ;;  %s9198_s1 = inlined_call_operand.vmem [shape: f32[8,8], index: 1, kind: input, shape index: {}]   ;;  %s9199_s2 = inlined_call_operand.hbm [shape: bf16[1024,512], index: 2, kind: input, shape index: {}]   ;;  %s9200_s3 = inlined_call_operand.hbm [shape: bf16[512,256], index: 3, kind: input, shape index: {}]   ;;  %s9201_s4 = inlined_call_operand.vmem [shape: bf16[256,16], index: 4, kind: input, shape index: {}]   ;;  %s9202_s5 = inlined_call_operand.vmem [shape: bf16[8,256], index: 5, kind: input, shape index: {}]   ;;  %s9203_s6 = inlined_call_operand.hbm [shape: bf16[256,512], index: 6, kind: input, shape index: {}]   ;;  %s9204_s7 = inlined_call_operand.hbm [shape: bf16[512,1024], index: 7, kind: input, shape index: {}]   ;;  %s9205_s8 = inlined_call_operand.vmem [shape: f32[1,2688], index: 8, kind: input, shape index: {}]   ;;  %s9206_s9 = inlined_call_operand.vmem [shape: f32[8,16], index: 9, kind: output, shape index: {0}]   ;;  %s9207_s10 = inlined_call_operand.vmem [shape: f32[8,1024], index: 10, kind: output, shape index: {1}]  }
   0x1   :  { %17 = vsyncpa [#allocation5], 0  ;;  %s40_s15 = sshll.u32 %s9200_s3, 4  ;;  %s41_s15 = int_to_ptr.hbm [resolvable:$true] %s40_s15 }
   0x2   :  { %18 = vsyncpa [#allocation8], 0  ;;  %s8816_s16 = smov [#allocation4]   ;;  %s27_s20 = sshll.u32 %s9199_s2, 4  ;;  %s28_s20 = int_to_ptr.hbm [resolvable:$true] %s27_s20 }
   0x3   :  { %s42_s17 = sshll.u32 %s8816_s16, 4  ;;  %s8817_s21 = smov 128   ;;  %s43_s17 = int_to_ptr.vmem [resolvable:$true] %s42_s17 }
   0x4   :  { %s8818_s22 = smov 8   ;;  %s8819_s23 = smov [#allocation2]  }
   0x5   :  { %48 = dma.hbm_to_vmem [thread:$0]  %s41_s15, 8192, %s43_s17, [#allocation5], %s8817_s21, %s8817_s21, %s8818_s22  }
   0x6   :  { %s29_s24 = sshll.u32 %s8819_s23, 4  ;;  %s8820_s25 = smov 256   ;;  %s30_s24 = int_to_ptr.vmem [resolvable:$true] %s29_s24 }
   0x7   :  { %s8821_s26 = smov 16   ;;  %s57_s28 = sshll.u32 %s9203_s6, 4  ;;  %s58_s28 = int_to_ptr.hbm [resolvable:$true] %s57_s28 }
   0x8   :  { %35 = dma.hbm_to_vmem [thread:$0]  %s28_s20, 32768, %s30_s24, [#allocation3], %s8820_s25, %s8820_s25, %s8821_s26  }
   0x9   :  { %s8822_s29 = smov [#allocation6]   ;;  %s70_s12 = sshll.u32 %s9204_s7, 4  ;;  %s71_s12 = int_to_ptr.hbm [resolvable:$true] %s70_s12 }
   0xa   :  { %s59_s30 = sshll.u32 %s8822_s29, 4  ;;  %s8823_s13 = smov [#allocation7]   ;;  %s60_s30 = int_to_ptr.vmem [resolvable:$true] %s59_s30 }
   0xb   :  { %65 = dma.hbm_to_vmem [thread:$0]  %s58_s28, 8192, %s60_s30, [#allocation5], %s8820_s25, %s8820_s25, %s8821_s26  }
   0xc   :  { %s72_s14 = sshll.u32 %s8823_s13, 4  ;;  %s8824_s15 = smov 512   ;;  %s73_s14 = int_to_ptr.vmem [resolvable:$true] %s72_s14 }
   0xd   :  { %s8825_s16 = smov 32  }
   0xe   :  { %78 = dma.hbm_to_vmem [thread:$0]  %s71_s12, 32768, %s73_s14, [#allocation8], %s8824_s15, %s8824_s15, %s8825_s16  }
   0xf   :  { %8810 = dma.done.wait [#allocation3], 32768  }
  0x10   :  { %8811 = vsyncadd [#allocation3], 4294934528 }
  0x11   :  { %8812 = dma.done.wait [#allocation5], 16384  }
  0x12   :  { %8813 = vsyncadd [#allocation5], 4294950912 }
  0x13   :  { %8814 = dma.done.wait [#allocation8], 32768  }
  0x14   :  { %8815 = vsyncadd [#allocation8], 4294934528  ;;  %v5499_v0 = vld [vmem:[#allocation2 + $0xe0] sm:$0xf]  ;;  %v8041_v1 = vld [vmem:[#allocation2 + $0xec] sm:$0xf0] }
  0x15   :  { %v5627_v2 = vld [vmem:[#allocation2 + $0x1e0] sm:$0xf]  ;;  %v5500_v3 = vor.u32 %v8041_v1, %v5499_v0  ;;  %v8073_v4 = vld [vmem:[#allocation2 + $0x1ec] sm:$0xf0]  ;;  %vm2746_vm0 = vcmask 130048   ;;  %s8826_s25 = smov 120  }
  0x16   :  { %v5755_v5 = vld [vmem:[#allocation2 + $0x2e0] sm:$0xf]  ;;  %v8105_v6 = vld [vmem:[#allocation2 + $0x2ec] sm:$0xf0]  ;;  %v5628_v7 = vor.u32 %v8073_v4, %v5627_v2  ;;  %vm2779_vm1 = vcmask 1043456   ;;  %vm2775_vm2 = vcmask 64512  }
  0x17   :  { %v5756_v8 = vor.u32 %v8105_v6, %v5755_v5  ;;  %v5883_v9 = vld [vmem:[#allocation2 + $0x3e0] sm:$0xf]  ;;  %v8137_v10 = vld [vmem:[#allocation2 + $0x3ec] sm:$0xf0]  ;;  %1660 = vmatpush.bf16.msra.mxu0 %v5500_v3 }
  0x18   :  { %v5483_v11 = vld [vmem:[#allocation2 + $0xc0] sm:$0xf]  ;;  %v5884_v12 = vor.u32 %v8137_v10, %v5883_v9  ;;  %v8037_v13 = vld [vmem:[#allocation2 + $0xcc] sm:$0xf0]  ;;  %1673 = vmatpush.bf16.msra.mxu1 %v5628_v7 }
  0x19   :  { %v5611_v14 = vld [vmem:[#allocation2 + $0x1c0] sm:$0xf]  ;;  %v8069_v15 = vld [vmem:[#allocation2 + $0x1cc] sm:$0xf0]  ;;  %1686 = vmatpush.bf16.msra.mxu2 %v5756_v8  ;;  %v5484_v16 = vor.u32 %v8037_v13, %v5483_v11 }
  0x1a   :  { %v5612_v17 = vor.u32 %v8069_v15, %v5611_v14  ;;  %v5739_v18 = vld [vmem:[#allocation2 + $0x2c0] sm:$0xf]  ;;  %v8101_v19 = vld [vmem:[#allocation2 + $0x2cc] sm:$0xf0]  ;;  %1699 = vmatpush.bf16.msra.mxu3 %v5884_v12 }
  0x1b   :  { %v5867_v20 = vld [vmem:[#allocation2 + $0x3c0] sm:$0xf]  ;;  %v5740_v21 = vor.u32 %v8101_v19, %v5739_v18  ;;  %v8133_v22 = vld [vmem:[#allocation2 + $0x3cc] sm:$0xf0]  ;;  %1661 = vmatpush.bf16.msra.mxu0 %v5484_v16 }
  0x1c   :  { %v5467_v23 = vld [vmem:[#allocation2 + $0xa0] sm:$0xf]  ;;  %v8033_v24 = vld [vmem:[#allocation2 + $0xac] sm:$0xf0]  ;;  %v5868_v25 = vor.u32 %v8133_v22, %v5867_v20  ;;  %1674 = vmatpush.bf16.msra.mxu1 %v5612_v17 }
  0x1d   :  { %v5595_v26 = vld [vmem:[#allocation2 + $0x1a0] sm:$0xf]  ;;  %v8065_v27 = vld [vmem:[#allocation2 + $0x1ac] sm:$0xf0]  ;;  %v5468_v29 = vor.u32 %v8033_v24, %v5467_v23  ;;  %1687 = vmatpush.bf16.msra.mxu2 %v5740_v21 }
  0x1e   :  { %v5723_v28 = vld [vmem:[#allocation2 + $0x2a0] sm:$0xf]  ;;  %v8097_v30 = vld [vmem:[#allocation2 + $0x2ac] sm:$0xf0]  ;;  %v5596_v33 = vor.u32 %v8065_v27, %v5595_v26  ;;  %1700 = vmatpush.bf16.msra.mxu3 %v5868_v25 }
  0x1f   :  { %v5851_v31 = vld [vmem:[#allocation2 + $0x3a0] sm:$0xf]  ;;  %v8129_v32 = vld [vmem:[#allocation2 + $0x3ac] sm:$0xf0]  ;;  %v5724_v34 = vor.u32 %v8097_v30, %v5723_v28  ;;  %1662 = vmatpush.bf16.msra.mxu0 %v5468_v29 }
  0x20   :  { %v5451_v35 = vld [vmem:[#allocation2 + $0x80] sm:$0xf]  ;;  %v8029_v36 = vld [vmem:[#allocation2 + $0x8c] sm:$0xf0]  ;;  %v5852_v38 = vor.u32 %v8129_v32, %v5851_v31  ;;  %1675 = vmatpush.bf16.msra.mxu1 %v5596_v33 }
  0x21   :  { %v5579_v37 = vld [vmem:[#allocation2 + $0x180] sm:$0xf]  ;;  %v8061_v39 = vld [vmem:[#allocation2 + $0x18c] sm:$0xf0]  ;;  %v5452_v44 = vor.u32 %v8029_v36, %v5451_v35  ;;  %1688 = vmatpush.bf16.msra.mxu2 %v5724_v34 }
  0x22   :  { %v5707_v40 = vld [vmem:[#allocation2 + $0x280] sm:$0xf]  ;;  %v8093_v41 = vld [vmem:[#allocation2 + $0x28c] sm:$0xf0]  ;;  %v5580_v45 = vor.u32 %v8061_v39, %v5579_v37  ;;  %1701 = vmatpush.bf16.msra.mxu3 %v5852_v38 }
  0x23   :  { %v5835_v42 = vld [vmem:[#allocation2 + $0x380] sm:$0xf]  ;;  %v8125_v43 = vld [vmem:[#allocation2 + $0x38c] sm:$0xf0]  ;;  %v5708_v46 = vor.u32 %v8093_v41, %v5707_v40  ;;  %1663 = vmatpush.bf16.msra.mxu0 %v5452_v44 }
  0x24   :  { %v5435_v47 = vld [vmem:[#allocation2 + $0x60] sm:$0xf]  ;;  %v8025_v48 = vld [vmem:[#allocation2 + $0x6c] sm:$0xf0]  ;;  %v5836_v50 = vor.u32 %v8125_v43, %v5835_v42  ;;  %1676 = vmatpush.bf16.msra.mxu1 %v5580_v45 }
  0x25   :  { %v5563_v49 = vld [vmem:[#allocation2 + $0x160] sm:$0xf]  ;;  %v8057_v51 = vld [vmem:[#allocation2 + $0x16c] sm:$0xf0]  ;;  %v5436_v56 = vor.u32 %v8025_v48, %v5435_v47  ;;  %1689 = vmatpush.bf16.msra.mxu2 %v5708_v46 }
  0x26   :  { %v5691_v52 = vld [vmem:[#allocation2 + $0x260] sm:$0xf]  ;;  %v8089_v53 = vld [vmem:[#allocation2 + $0x26c] sm:$0xf0]  ;;  %v5564_v57 = vor.u32 %v8057_v51, %v5563_v49  ;;  %1702 = vmatpush.bf16.msra.mxu3 %v5836_v50 }
  0x27   :  { %v5819_v54 = vld [vmem:[#allocation2 + $0x360] sm:$0xf]  ;;  %v8121_v55 = vld [vmem:[#allocation2 + $0x36c] sm:$0xf0]  ;;  %v5692_v58 = vor.u32 %v8089_v53, %v5691_v52  ;;  %1664 = vmatpush.bf16.msra.mxu0 %v5436_v56 }
  0x28   :  { %v5419_v59 = vld [vmem:[#allocation2 + $0x40] sm:$0xf]  ;;  %v8021_v60 = vld [vmem:[#allocation2 + $0x4c] sm:$0xf0]  ;;  %v5820_v62 = vor.u32 %v8121_v55, %v5819_v54  ;;  %1677 = vmatpush.bf16.msra.mxu1 %v5564_v57 }
  0x29   :  { %v5547_v61 = vld [vmem:[#allocation2 + $0x140] sm:$0xf]  ;;  %v8053_v63 = vld [vmem:[#allocation2 + $0x14c] sm:$0xf0]  ;;  %v5420_v4 = vor.u32 %v8021_v60, %v5419_v59  ;;  %1690 = vmatpush.bf16.msra.mxu2 %v5692_v58 }
  0x2a   :  { %v5675_v0 = vld [vmem:[#allocation2 + $0x240] sm:$0xf]  ;;  %v8085_v1 = vld [vmem:[#allocation2 + $0x24c] sm:$0xf0]  ;;  %v5548_v5 = vor.u32 %v8053_v63, %v5547_v61  ;;  %1703 = vmatpush.bf16.msra.mxu3 %v5820_v62 }
  0x2b   :  { %v5803_v2 = vld [vmem:[#allocation2 + $0x340] sm:$0xf]  ;;  %v8117_v3 = vld [vmem:[#allocation2 + $0x34c] sm:$0xf0]  ;;  %v5676_v6 = vor.u32 %v8085_v1, %v5675_v0  ;;  %1665 = vmatpush.bf16.msra.mxu0 %v5420_v4 }
  0x2c   :  { %v5403_v7 = vld [vmem:[#allocation2 + $0x20] sm:$0xf]  ;;  %v8017_v8 = vld [vmem:[#allocation2 + $0x2c] sm:$0xf0]  ;;  %v5804_v10 = vor.u32 %v8117_v3, %v5803_v2  ;;  %1678 = vmatpush.bf16.msra.mxu1 %v5548_v5 }
  0x2d   :  { %v5531_v9 = vld [vmem:[#allocation2 + $0x120] sm:$0xf]  ;;  %v8049_v11 = vld [vmem:[#allocation2 + $0x12c] sm:$0xf0]  ;;  %v5404_v16 = vor.u32 %v8017_v8, %v5403_v7  ;;  %1691 = vmatpush.bf16.msra.mxu2 %v5676_v6 }
  0x2e   :  { %v5659_v12 = vld [vmem:[#allocation2 + $0x220] sm:$0xf]  ;;  %v8081_v13 = vld [vmem:[#allocation2 + $0x22c] sm:$0xf0]  ;;  %v5532_v19 = vor.u32 %v8049_v11, %v5531_v9  ;;  %1704 = vmatpush.bf16.msra.mxu3 %v5804_v10  ;;  %v101_v10 = vld [vmem:[%s9197_s0 + $0x18] sm:$0xff] }
  0x2f   :  { %v5787_v14 = vld [vmem:[#allocation2 + $0x320] sm:$0xf]  ;;  %v8113_v15 = vld [vmem:[#allocation2 + $0x32c] sm:$0xf0]  ;;  %v5660_v20 = vor.u32 %v8081_v13, %v5659_v12  ;;  %1666 = vmatpush.bf16.msra.mxu0 %v5404_v16  ;;  %v99_v11 = vld [vmem:[%s9197_s0 + $0x8] sm:$0xff]  ;;  %v8912_v16 = vpack.c.bf16 %v101_v10, %v101_v10 }
  0x30   :  { %v5387_v17 = vld [vmem:[#allocation2] sm:$0xf]  ;;  %v8013_v18 = vld [vmem:[#allocation2 + $0xc] sm:$0xf0]  ;;  %v5788_v24 = vor.u32 %v8113_v15, %v5787_v14  ;;  %1679 = vmatpush.bf16.msra.mxu1 %v5532_v19  ;;  %v5629_v10 = vld [vmem:[#allocation2 + $0x1f0] sm:$0xf0] }
  0x31   :  { %v5515_v21 = vld [vmem:[#allocation2 + $0x100] sm:$0xf]  ;;  %v8045_v22 = vld [vmem:[#allocation2 + $0x10c] sm:$0xf0]  ;;  %v5388_v31 = vor.u32 %v8013_v18, %v5387_v17  ;;  %1692 = vmatpush.bf16.msra.mxu2 %v5660_v20  ;;  %v8914_v17 = vpack.c.bf16 %v99_v11, %v99_v11  ;;  %v8103_v11 = vld [vmem:[#allocation2 + $0x2e4] sm:$0xf] }
  0x32   :  { %v5643_v23 = vld [vmem:[#allocation2 + $0x200] sm:$0xf]  ;;  %v8077_v25 = vld [vmem:[#allocation2 + $0x20c] sm:$0xf0]  ;;  %v5516_v35 = vor.u32 %v8045_v22, %v5515_v21  ;;  %1705 = vmatpush.bf16.msra.mxu3 %v5788_v24 }
  0x33   :  { %v5771_v26 = vld [vmem:[#allocation2 + $0x300] sm:$0xf]  ;;  %v8109_v27 = vld [vmem:[#allocation2 + $0x30c] sm:$0xf0]  ;;  %v5644_v36 = vor.u32 %v8077_v25, %v5643_v23  ;;  %1667 = vmatpush.bf16.msra.mxu0 %v5388_v31 }
  0x34   :  { %v6011_v28 = vld [vmem:[#allocation2 + $0x4e0] sm:$0xf]  ;;  %v8169_v29 = vld [vmem:[#allocation2 + $0x4ec] sm:$0xf0]  ;;  %v5772_v39 = vor.u32 %v8109_v27, %v5771_v26  ;;  %1680 = vmatpush.bf16.msra.mxu1 %v5516_v35 }
  0x35   :  { %v6139_v30 = vld [vmem:[#allocation2 + $0x5e0] sm:$0xf]  ;;  %v8201_v32 = vld [vmem:[#allocation2 + $0x5ec] sm:$0xf0]  ;;  %v6012_v40 = vor.u32 %v8169_v29, %v6011_v28  ;;  %1693 = vmatpush.bf16.msra.mxu2 %v5644_v36 }
  0x36   :  { %v6267_v33 = vld [vmem:[#allocation2 + $0x6e0] sm:$0xf]  ;;  %v8233_v34 = vld [vmem:[#allocation2 + $0x6ec] sm:$0xf0]  ;;  %v6140_v41 = vor.u32 %v8201_v32, %v6139_v30  ;;  %1706 = vmatpush.bf16.msra.mxu3 %v5772_v39 }
  0x37   :  { %v6395_v37 = vld [vmem:[#allocation2 + $0x7e0] sm:$0xf]  ;;  %v8265_v38 = vld [vmem:[#allocation2 + $0x7ec] sm:$0xf0]  ;;  %v6268_v42 = vor.u32 %v8233_v34, %v6267_v33  ;;  %1712 = vmatpush.bf16.msrb.mxu0 %v6012_v40  ;;  %1681 = vmatmul.bf16.vlgmr.msra.gmra.mxu1 %v8914_v17 }
  0x38   :  { %v5995_v43 = vld [vmem:[#allocation2 + $0x4c0] sm:$0xf]  ;;  %v8165_v44 = vld [vmem:[#allocation2 + $0x4cc] sm:$0xf0]  ;;  %v6396_v46 = vor.u32 %v8265_v38, %v6395_v37  ;;  %1725 = vmatpush.bf16.msrb.mxu1 %v6140_v41 }
  0x39   :  { %v6123_v45 = vld [vmem:[#allocation2 + $0x5c0] sm:$0xf]  ;;  %v8197_v47 = vld [vmem:[#allocation2 + $0x5cc] sm:$0xf0]  ;;  %v5996_v52 = vor.u32 %v8165_v44, %v5995_v43  ;;  %1738 = vmatpush.bf16.msrb.mxu2 %v6268_v42  ;;  %1707 = vmatmul.bf16.vlgmr.msra.gmra.mxu3 %v8912_v16 }
  0x3a   :  { %v6251_v48 = vld [vmem:[#allocation2 + $0x6c0] sm:$0xf]  ;;  %v8229_v49 = vld [vmem:[#allocation2 + $0x6cc] sm:$0xf0]  ;;  %v6124_v54 = vor.u32 %v8197_v47, %v6123_v45  ;;  %1751 = vmatpush.bf16.msrb.mxu3 %v6396_v46 }
  0x3b   :  { %v6379_v50 = vld [vmem:[#allocation2 + $0x7c0] sm:$0xf]  ;;  %v8261_v51 = vld [vmem:[#allocation2 + $0x7cc] sm:$0xf0]  ;;  %v6252_v55 = vor.u32 %v8229_v49, %v6251_v48  ;;  %1713 = vmatpush.bf16.msrb.mxu0 %v5996_v52 }
  0x3c   :  { %v5979_v53 = vld [vmem:[#allocation2 + $0x4a0] sm:$0xf]  ;;  %v8161_v56 = vld [vmem:[#allocation2 + $0x4ac] sm:$0xf0]  ;;  %v6380_v59 = vor.u32 %v8261_v51, %v6379_v50  ;;  %1726 = vmatpush.bf16.msrb.mxu1 %v6124_v54 }
  0x3d   :  { %v6107_v57 = vld [vmem:[#allocation2 + $0x5a0] sm:$0xf]  ;;  %v100_v58 = vld [vmem:[%s9197_s0 + $0x10] sm:$0xff]  ;;  %v5980_v2 = vor.u32 %v8161_v56, %v5979_v53  ;;  %1739 = vmatpush.bf16.msrb.mxu2 %v6252_v55 }
  0x3e   :  { %v8193_v60 = vld [vmem:[#allocation2 + $0x5ac] sm:$0xf0]  ;;  %v6235_v61 = vld [vmem:[#allocation2 + $0x6a0] sm:$0xf]  ;;  %v8898_v63 = vpack.c.bf16 %v100_v58, %v100_v58  ;;  %1752 = vmatpush.bf16.msrb.mxu3 %v6380_v59 }
  0x3f   :  { %v8225_v62 = vld [vmem:[#allocation2 + $0x6ac] sm:$0xf0]  ;;  %v6363_v0 = vld [vmem:[#allocation2 + $0x7a0] sm:$0xf]  ;;  %v6108_v6 = vor.u32 %v8193_v60, %v6107_v57  ;;  %1714 = vmatpush.bf16.msrb.mxu0 %v5980_v2 }
  0x40   :  { %v8257_v1 = vld [vmem:[#allocation2 + $0x7ac] sm:$0xf0]  ;;  %v5963_v3 = vld [vmem:[#allocation2 + $0x480] sm:$0xf]  ;;  %1694 = vmatmul.bf16.vlgmr.msra.gmra.mxu2 %v8898_v63  ;;  %v6236_v7 = vor.u32 %v8225_v62, %v6235_v61 }
  0x41   :  { %v8157_v4 = vld [vmem:[#allocation2 + $0x48c] sm:$0xf0]  ;;  %v98_v5 = vld [vmem:[%s9197_s0] sm:$0xff]  ;;  %v6364_v12 = vor.u32 %v8257_v1, %v6363_v0  ;;  %1727 = vmatpush.bf16.msrb.mxu1 %v6108_v6  ;;  %v5501_v6 = vld [vmem:[#allocation2 + $0xf0] sm:$0xf0] }
  0x42   :  { %v6091_v8 = vld [vmem:[#allocation2 + $0x580] sm:$0xf]  ;;  %v8904_v9 = vpack.c.bf16 %v98_v5, %v98_v5  ;;  %v8189_v13 = vld [vmem:[#allocation2 + $0x58c] sm:$0xf0]  ;;  %v5964_v20 = vor.u32 %v8157_v4, %v5963_v3  ;;  %1740 = vmatpush.bf16.msrb.mxu2 %v6236_v7  ;;  %v8039_v5 = vld [vmem:[#allocation2 + $0xe4] sm:$0xf] }
  0x43   :  { %v6219_v14 = vld [vmem:[#allocation2 + $0x680] sm:$0xf]  ;;  %v8221_v15 = vld [vmem:[#allocation2 + $0x68c] sm:$0xf0]  ;;  %v6092_v21 = vor.u32 %v8189_v13, %v6091_v8  ;;  %1753 = vmatpush.bf16.msrb.mxu3 %v6364_v12  ;;  %v8071_v7 = vld [vmem:[#allocation2 + $0x1e4] sm:$0xf] }
  0x44   :  { %v6347_v18 = vld [vmem:[#allocation2 + $0x780] sm:$0xf]  ;;  %v8253_v19 = vld [vmem:[#allocation2 + $0x78c] sm:$0xf0]  ;;  %1668 = vmatmul.bf16.vlgmr.msra.gmra.mxu0 %v8904_v9  ;;  %v6220_v22 = vor.u32 %v8221_v15, %v6219_v14  ;;  %v5757_v12 = vld [vmem:[#allocation2 + $0x2f0] sm:$0xf0] }
  0x45   :  { %v5947_v23 = vld [vmem:[#allocation2 + $0x460] sm:$0xf]  ;;  %v8153_v24 = vld [vmem:[#allocation2 + $0x46c] sm:$0xf0]  ;;  %v6348_v26 = vor.u32 %v8253_v19, %v6347_v18  ;;  %1715 = vmatpush.bf16.msrb.mxu0 %v5964_v20  ;;  %1728 = vmatpush.bf16.msrb.mxu1 %v6092_v21  ;;  %v8135_v15 = vld [vmem:[#allocation2 + $0x3e4] sm:$0xf]  ;;  %v5504_v21 = vor.u32 %v8039_v5, %v5501_v6 }
  0x46   :  { %v6075_v25 = vld [vmem:[#allocation2 + $0x560] sm:$0xf]  ;;  %v8185_v27 = vld [vmem:[#allocation2 + $0x56c] sm:$0xf0]  ;;  %v5948_v32 = vor.u32 %v8153_v24, %v5947_v23  ;;  %1741 = vmatpush.bf16.msrb.mxu2 %v6220_v22  ;;  %v5885_v18 = vld [vmem:[#allocation2 + $0x3f0] sm:$0xf0] }
  0x47   :  { %v6203_v28 = vld [vmem:[#allocation2 + $0x660] sm:$0xf]  ;;  %v8217_v29 = vld [vmem:[#allocation2 + $0x66c] sm:$0xf0]  ;;  %v6076_v33 = vor.u32 %v8185_v27, %v6075_v25  ;;  %1754 = vmatpush.bf16.msrb.mxu3 %v6348_v26  ;;  %v8035_v22 = vld [vmem:[#allocation2 + $0xc4] sm:$0xf]  ;;  %v5632_v25 = vor.u32 %v8071_v7, %v5629_v10  ;;  %v5760_v26 = vor.u32 %v8103_v11, %v5757_v12 }
  0x48   :  { %v6331_v30 = vld [vmem:[#allocation2 + $0x760] sm:$0xf]  ;;  %v8249_v31 = vld [vmem:[#allocation2 + $0x76c] sm:$0xf0]  ;;  %v6204_v34 = vor.u32 %v8217_v29, %v6203_v28  ;;  %v105_v24 = vld [vmem:[%s9197_s0 + $0x38] sm:$0xff] }
  0x49   :  { %v5931_v35 = vld [vmem:[#allocation2 + $0x440] sm:$0xf]  ;;  %v8149_v36 = vld [vmem:[#allocation2 + $0x44c] sm:$0xf0]  ;;  %v6332_v38 = vor.u32 %v8249_v31, %v6331_v30  ;;  %1716 = vmatpush.bf16.msrb.mxu0 %v5948_v32  ;;  %1729 = vmatpush.bf16.msrb.mxu1 %v6076_v33  ;;  %v5485_v27 = vld [vmem:[#allocation2 + $0xd0] sm:$0xf0]  ;;  %v5888_v30 = vor.u32 %v8135_v15, %v5885_v18 }
  0x4a   :  { %v6059_v37 = vld [vmem:[#allocation2 + $0x540] sm:$0xf]  ;;  %v8181_v39 = vld [vmem:[#allocation2 + $0x54c] sm:$0xf0]  ;;  %v5932_v44 = vor.u32 %v8149_v36, %v5931_v35  ;;  %1742 = vmatpush.bf16.msrb.mxu2 %v6204_v34  ;;  %v8067_v28 = vld [vmem:[#allocation2 + $0x1c4] sm:$0xf] }
  0x4b   :  { %v6187_v40 = vld [vmem:[#allocation2 + $0x640] sm:$0xf]  ;;  %v8213_v41 = vld [vmem:[#allocation2 + $0x64c] sm:$0xf0]  ;;  %v6060_v45 = vor.u32 %v8181_v39, %v6059_v37  ;;  %1755 = vmatpush.bf16.msrb.mxu3 %v6332_v38  ;;  %v103_v29 = vld [vmem:[%s9197_s0 + $0x28] sm:$0xff]  ;;  %v8935_v38 = vpack.c.bf16 %v105_v24, %v105_v24  ;;  %v5488_v39 = vor.u32 %v8035_v22, %v5485_v27 }
  0x4c   :  { %v6315_v42 = vld [vmem:[#allocation2 + $0x740] sm:$0xf]  ;;  %v8245_v43 = vld [vmem:[#allocation2 + $0x74c] sm:$0xf0]  ;;  %v6188_v46 = vor.u32 %v8213_v41, %v6187_v40  ;;  %v5613_v31 = vld [vmem:[#allocation2 + $0x1d0] sm:$0xf0]  ;;  %v8937_v40 = vpack.c.bf16 %v103_v29, %v103_v29 }
  0x4d   :  { %v5915_v47 = vld [vmem:[#allocation2 + $0x420] sm:$0xf]  ;;  %v8145_v48 = vld [vmem:[#allocation2 + $0x42c] sm:$0xf0]  ;;  %v6316_v50 = vor.u32 %v8245_v43, %v6315_v42  ;;  %1717 = vmatpush.bf16.msrb.mxu0 %v5932_v44  ;;  %1730 = vmatpush.bf16.msrb.mxu1 %v6060_v45  ;;  %v8099_v32 = vld [vmem:[#allocation2 + $0x2c4] sm:$0xf]  ;;  %v5616_v41 = vor.u32 %v8067_v28, %v5613_v31 }
  0x4e   :  { %v6043_v49 = vld [vmem:[#allocation2 + $0x520] sm:$0xf]  ;;  %v8177_v51 = vld [vmem:[#allocation2 + $0x52c] sm:$0xf0]  ;;  %v5916_v56 = vor.u32 %v8145_v48, %v5915_v47  ;;  %1743 = vmatpush.bf16.msrb.mxu2 %v6188_v46  ;;  %v5741_v33 = vld [vmem:[#allocation2 + $0x2d0] sm:$0xf0] }
  0x4f   :  { %v6171_v52 = vld [vmem:[#allocation2 + $0x620] sm:$0xf]  ;;  %v8209_v53 = vld [vmem:[#allocation2 + $0x62c] sm:$0xf0]  ;;  %v6044_v59 = vor.u32 %v8177_v51, %v6043_v49  ;;  %1756 = vmatpush.bf16.msrb.mxu3 %v6316_v50  ;;  %v8131_v35 = vld [vmem:[#allocation2 + $0x3c4] sm:$0xf]  ;;  %v5744_v42 = vor.u32 %v8099_v32, %v5741_v33 }
  0x50   :  { %v6299_v54 = vld [vmem:[#allocation2 + $0x720] sm:$0xf]  ;;  %v8241_v55 = vld [vmem:[#allocation2 + $0x72c] sm:$0xf0]  ;;  %v6172_v60 = vor.u32 %v8209_v53, %v6171_v52  ;;  %v5869_v36 = vld [vmem:[#allocation2 + $0x3d0] sm:$0xf0] }
  0x51   :  { %v5899_v57 = vld [vmem:[#allocation2 + $0x400] sm:$0xf]  ;;  %v8141_v58 = vld [vmem:[#allocation2 + $0x40c] sm:$0xf0]  ;;  %v6300_v1 = vor.u32 %v8241_v55, %v6299_v54  ;;  %1718 = vmatpush.bf16.msrb.mxu0 %v5916_v56  ;;  %1731 = vmatpush.bf16.msrb.mxu1 %v6044_v59  ;;  %v8031_v43 = vld [vmem:[#allocation2 + $0xa4] sm:$0xf]  ;;  %v5872_v46 = vor.u32 %v8131_v35, %v5869_v36 }
  0x52   :  { %v6027_v61 = vld [vmem:[#allocation2 + $0x500] sm:$0xf]  ;;  %v8173_v62 = vld [vmem:[#allocation2 + $0x50c] sm:$0xf0]  ;;  %v5900_v8 = vor.u32 %v8141_v58, %v5899_v57  ;;  %1744 = vmatpush.bf16.msrb.mxu2 %v6172_v60  ;;  %v5469_v44 = vld [vmem:[#allocation2 + $0xb0] sm:$0xf0] }
  0x53   :  { %v6155_v0 = vld [vmem:[#allocation2 + $0x600] sm:$0xf]  ;;  %v8205_v2 = vld [vmem:[#allocation2 + $0x60c] sm:$0xf0]  ;;  %v6028_v13 = vor.u32 %v8173_v62, %v6027_v61  ;;  %1757 = vmatpush.bf16.msrb.mxu3 %v6300_v1  ;;  %v8063_v45 = vld [vmem:[#allocation2 + $0x1a4] sm:$0xf]  ;;  %v5472_v52 = vor.u32 %v8031_v43, %v5469_v44 }
  0x54   :  { %v6283_v3 = vld [vmem:[#allocation2 + $0x700] sm:$0xf]  ;;  %v8237_v4 = vld [vmem:[#allocation2 + $0x70c] sm:$0xf0]  ;;  %v6156_v14 = vor.u32 %v8205_v2, %v6155_v0  ;;  %v5597_v47 = vld [vmem:[#allocation2 + $0x1b0] sm:$0xf0] }
  0x55   :  { %v104_v19 = vld [vmem:[%s9197_s0 + $0x30] sm:$0xff]  ;;  %v6284_v20 = vor.u32 %v8237_v4, %v6283_v3  ;;  %v102_v23 = vld [vmem:[%s9197_s0 + $0x20] sm:$0xff]  ;;  %1719 = vmatpush.bf16.msrb.mxu0 %v5900_v8  ;;  %1732 = vmatpush.bf16.msrb.mxu1 %v6028_v13  ;;  %v5600_v53 = vor.u32 %v8063_v45, %v5597_v47 }
  0x56   :  { %v8931_v34 = vpack.c.bf16 %v104_v19, %v104_v19  ;;  %1745 = vmatpush.bf16.msrb.mxu2 %v6156_v14  ;;  %v8933_v37 = vpack.c.bf16 %v102_v23, %v102_v23  ;;  %v8095_v48 = vld [vmem:[#allocation2 + $0x2a4] sm:$0xf]  ;;  %v5725_v49 = vld [vmem:[#allocation2 + $0x2b0] sm:$0xf0] }
  0x57   :  { %1758 = vmatpush.bf16.msrb.mxu3 %v6284_v20  ;;  %v8127_v50 = vld [vmem:[#allocation2 + $0x3a4] sm:$0xf]  ;;  %v5853_v51 = vld [vmem:[#allocation2 + $0x3b0] sm:$0xf0]  ;;  %v5728_v54 = vor.u32 %v8095_v48, %v5725_v49 }
  0x58   :  { %1720 = vmatmul.bf16.vlgmr.msrb.gmra.mxu0 %v8933_v37  ;;  %1733 = vmatmul.bf16.vlgmr.msrb.gmra.mxu1 %v8937_v40  ;;  %v8027_v55 = vld [vmem:[#allocation2 + $0x84] sm:$0xf]  ;;  %v5453_v56 = vld [vmem:[#allocation2 + $0x90] sm:$0xf0]  ;;  %v5856_v58 = vor.u32 %v8127_v50, %v5853_v51 }
  0x59   :  { %1764 = vmatpush.bf16.msra.mxu0 %v5504_v21  ;;  %1777 = vmatpush.bf16.msra.mxu1 %v5632_v25  ;;  %v8059_v57 = vld [vmem:[#allocation2 + $0x184] sm:$0xf]  ;;  %v5581_v59 = vld [vmem:[#allocation2 + $0x190] sm:$0xf0]  ;;  %v5456_v1 = vor.u32 %v8027_v55, %v5453_v56 }
  0x5a   :  { %1790 = vmatpush.bf16.msra.mxu2 %v5760_v26  ;;  %1759 = vmatmul.bf16.vlgmr.msrb.gmra.mxu3 %v8935_v38  ;;  %v8091_v60 = vld [vmem:[#allocation2 + $0x284] sm:$0xf]  ;;  %v5709_v61 = vld [vmem:[#allocation2 + $0x290] sm:$0xf0]  ;;  %v5584_v2 = vor.u32 %v8059_v57, %v5581_v59 }
  0x5b   :  { %1803 = vmatpush.bf16.msra.mxu3 %v5888_v30  ;;  %1746 = vmatmul.bf16.vlgmr.msrb.gmra.mxu2 %v8931_v34  ;;  %v8123_v62 = vld [vmem:[#allocation2 + $0x384] sm:$0xf]  ;;  %v5837_v0 = vld [vmem:[#allocation2 + $0x390] sm:$0xf0]  ;;  %v5712_v3 = vor.u32 %v8091_v60, %v5709_v61 }
  0x5c   :  { %v8023_v4 = vld [vmem:[#allocation2 + $0x64] sm:$0xf]  ;;  %v5437_v5 = vld [vmem:[#allocation2 + $0x70] sm:$0xf0]  ;;  %v5840_v7 = vor.u32 %v8123_v62, %v5837_v0 }
  0x5d   :  { %1765 = vmatpush.bf16.msra.mxu0 %v5488_v39  ;;  %1778 = vmatpush.bf16.msra.mxu1 %v5616_v41  ;;  %v8055_v6 = vld [vmem:[#allocation2 + $0x164] sm:$0xf]  ;;  %v5565_v8 = vld [vmem:[#allocation2 + $0x170] sm:$0xf0]  ;;  %v5440_v14 = vor.u32 %v8023_v4, %v5437_v5 }
  0x5e   :  { %1791 = vmatpush.bf16.msra.mxu2 %v5744_v42  ;;  %v8087_v10 = vld [vmem:[#allocation2 + $0x264] sm:$0xf]  ;;  %v5693_v11 = vld [vmem:[#allocation2 + $0x270] sm:$0xf0]  ;;  %v5568_v15 = vor.u32 %v8055_v6, %v5565_v8 }
  0x5f   :  { %1804 = vmatpush.bf16.msra.mxu3 %v5872_v46  ;;  %v8119_v12 = vld [vmem:[#allocation2 + $0x364] sm:$0xf]  ;;  %v5821_v13 = vld [vmem:[#allocation2 + $0x370] sm:$0xf0]  ;;  %v5696_v18 = vor.u32 %v8087_v10, %v5693_v11 }
  0x60   :  { %v8019_v19 = vld [vmem:[#allocation2 + $0x44] sm:$0xf]  ;;  %v5421_v20 = vld [vmem:[#allocation2 + $0x50] sm:$0xf0]  ;;  %v5824_v22 = vor.u32 %v8119_v12, %v5821_v13 }
  0x61   :  { %1766 = vmatpush.bf16.msra.mxu0 %v5472_v52  ;;  %1779 = vmatpush.bf16.msra.mxu1 %v5600_v53  ;;  %v8051_v21 = vld [vmem:[#allocation2 + $0x144] sm:$0xf]  ;;  %v5549_v23 = vld [vmem:[#allocation2 + $0x150] sm:$0xf0]  ;;  %v5424_v28 = vor.u32 %v8019_v19, %v5421_v20 }
  0x62   :  { %1792 = vmatpush.bf16.msra.mxu2 %v5728_v54  ;;  %v8083_v24 = vld [vmem:[#allocation2 + $0x244] sm:$0xf]  ;;  %v5677_v25 = vld [vmem:[#allocation2 + $0x250] sm:$0xf0]  ;;  %v5552_v29 = vor.u32 %v8051_v21, %v5549_v23 }
  0x63   :  { %1805 = vmatpush.bf16.msra.mxu3 %v5856_v58  ;;  %v8115_v26 = vld [vmem:[#allocation2 + $0x344] sm:$0xf]  ;;  %v5805_v27 = vld [vmem:[#allocation2 + $0x350] sm:$0xf0]  ;;  %v5680_v30 = vor.u32 %v8083_v24, %v5677_v25 }
  0x64   :  { %v8015_v31 = vld [vmem:[#allocation2 + $0x24] sm:$0xf]  ;;  %v5405_v32 = vld [vmem:[#allocation2 + $0x30] sm:$0xf0]  ;;  %v5808_v35 = vor.u32 %v8115_v26, %v5805_v27 }
  0x65   :  { %1767 = vmatpush.bf16.msra.mxu0 %v5456_v1  ;;  %1780 = vmatpush.bf16.msra.mxu1 %v5584_v2  ;;  %v8047_v33 = vld [vmem:[#allocation2 + $0x124] sm:$0xf]  ;;  %v5533_v36 = vld [vmem:[#allocation2 + $0x130] sm:$0xf0]  ;;  %v5408_v44 = vor.u32 %v8015_v31, %v5405_v32 }
  0x66   :  { %1793 = vmatpush.bf16.msra.mxu2 %v5712_v3  ;;  %v8079_v39 = vld [vmem:[#allocation2 + $0x224] sm:$0xf]  ;;  %v5661_v41 = vld [vmem:[#allocation2 + $0x230] sm:$0xf0]  ;;  %v5536_v47 = vor.u32 %v8047_v33, %v5533_v36 }
  0x67   :  { %1806 = vmatpush.bf16.msra.mxu3 %v5840_v7  ;;  %v8111_v42 = vld [vmem:[#allocation2 + $0x324] sm:$0xf]  ;;  %v5789_v43 = vld [vmem:[#allocation2 + $0x330] sm:$0xf0]  ;;  %v5664_v48 = vor.u32 %v8079_v39, %v5661_v41 }
  0x68   :  { %v8011_v45 = vld [vmem:[#allocation2 + $0x4] sm:$0xf]  ;;  %v5389_v46 = vld [vmem:[#allocation2 + $0x10] sm:$0xf0]  ;;  %v5792_v52 = vor.u32 %v8111_v42, %v5789_v43 }
  0x69   :  { %1768 = vmatpush.bf16.msra.mxu0 %v5440_v14  ;;  %1781 = vmatpush.bf16.msra.mxu1 %v5568_v15  ;;  %v8043_v49 = vld [vmem:[#allocation2 + $0x104] sm:$0xf]  ;;  %v5517_v50 = vld [vmem:[#allocation2 + $0x110] sm:$0xf0]  ;;  %v5392_v59 = vor.u32 %v8011_v45, %v5389_v46 }
  0x6a   :  { %1794 = vmatpush.bf16.msra.mxu2 %v5696_v18  ;;  %v8075_v51 = vld [vmem:[#allocation2 + $0x204] sm:$0xf]  ;;  %v5645_v53 = vld [vmem:[#allocation2 + $0x210] sm:$0xf0]  ;;  %v5520_v0 = vor.u32 %v8043_v49, %v5517_v50 }
  0x6b   :  { %1807 = vmatpush.bf16.msra.mxu3 %v5824_v22  ;;  %v8107_v54 = vld [vmem:[#allocation2 + $0x304] sm:$0xf]  ;;  %v5773_v55 = vld [vmem:[#allocation2 + $0x310] sm:$0xf0]  ;;  %v5648_v1 = vor.u32 %v8075_v51, %v5645_v53 }
  0x6c   :  { %v8167_v56 = vld [vmem:[#allocation2 + $0x4e4] sm:$0xf]  ;;  %v6013_v57 = vld [vmem:[#allocation2 + $0x4f0] sm:$0xf0]  ;;  %v5776_v4 = vor.u32 %v8107_v54, %v5773_v55 }
  0x6d   :  { %1769 = vmatpush.bf16.msra.mxu0 %v5424_v28  ;;  %1782 = vmatpush.bf16.msra.mxu1 %v5552_v29  ;;  %v8199_v58 = vld [vmem:[#allocation2 + $0x5e4] sm:$0xf]  ;;  %v6141_v60 = vld [vmem:[#allocation2 + $0x5f0] sm:$0xf0]  ;;  %v6016_v5 = vor.u32 %v8167_v56, %v6013_v57 }
  0x6e   :  { %1795 = vmatpush.bf16.msra.mxu2 %v5680_v30  ;;  %v8231_v61 = vld [vmem:[#allocation2 + $0x6e4] sm:$0xf]  ;;  %v6269_v62 = vld [vmem:[#allocation2 + $0x6f0] sm:$0xf0]  ;;  %v6144_v6 = vor.u32 %v8199_v58, %v6141_v60 }
  0x6f   :  { %1808 = vmatpush.bf16.msra.mxu3 %v5808_v35  ;;  %v8263_v2 = vld [vmem:[#allocation2 + $0x7e4] sm:$0xf]  ;;  %v6397_v3 = vld [vmem:[#allocation2 + $0x7f0] sm:$0xf0]  ;;  %v6272_v7 = vor.u32 %v8231_v61, %v6269_v62 }
  0x70   :  { %v8163_v8 = vld [vmem:[#allocation2 + $0x4c4] sm:$0xf]  ;;  %v5997_v10 = vld [vmem:[#allocation2 + $0x4d0] sm:$0xf0]  ;;  %v6400_v12 = vor.u32 %v8263_v2, %v6397_v3 }
  0x71   :  { %1770 = vmatpush.bf16.msra.mxu0 %v5408_v44  ;;  %1783 = vmatpush.bf16.msra.mxu1 %v5536_v47  ;;  %v8195_v11 = vld [vmem:[#allocation2 + $0x5c4] sm:$0xf]  ;;  %v6125_v13 = vld [vmem:[#allocation2 + $0x5d0] sm:$0xf0]  ;;  %v6000_v20 = vor.u32 %v8163_v8, %v5997_v10 }
  0x72   :  { %1796 = vmatpush.bf16.msra.mxu2 %v5664_v48  ;;  %v8227_v14 = vld [vmem:[#allocation2 + $0x6c4] sm:$0xf]  ;;  %v6253_v15 = vld [vmem:[#allocation2 + $0x6d0] sm:$0xf0]  ;;  %v6128_v21 = vor.u32 %v8195_v11, %v6125_v13 }
  0x73   :  { %1809 = vmatpush.bf16.msra.mxu3 %v5792_v52  ;;  %v8259_v18 = vld [vmem:[#allocation2 + $0x7c4] sm:$0xf]  ;;  %v6381_v19 = vld [vmem:[#allocation2 + $0x7d0] sm:$0xf0]  ;;  %v6256_v22 = vor.u32 %v8227_v14, %v6253_v15 }
  0x74   :  { %v8159_v23 = vld [vmem:[#allocation2 + $0x4a4] sm:$0xf]  ;;  %v5981_v24 = vld [vmem:[#allocation2 + $0x4b0] sm:$0xf0]  ;;  %v6384_v26 = vor.u32 %v8259_v18, %v6381_v19 }
  0x75   :  { %1771 = vmatpush.bf16.msra.mxu0 %v5392_v59  ;;  %1784 = vmatpush.bf16.msra.mxu1 %v5520_v0  ;;  %v8191_v25 = vld [vmem:[#allocation2 + $0x5a4] sm:$0xf]  ;;  %v6109_v27 = vld [vmem:[#allocation2 + $0x5b0] sm:$0xf0]  ;;  %v5984_v32 = vor.u32 %v8159_v23, %v5981_v24 }
  0x76   :  { %1797 = vmatpush.bf16.msra.mxu2 %v5648_v1  ;;  %v8223_v28 = vld [vmem:[#allocation2 + $0x6a4] sm:$0xf]  ;;  %v6237_v29 = vld [vmem:[#allocation2 + $0x6b0] sm:$0xf0]  ;;  %v6112_v33 = vor.u32 %v8191_v25, %v6109_v27 }
  0x77   :  { %1810 = vmatpush.bf16.msra.mxu3 %v5776_v4  ;;  %v8255_v30 = vld [vmem:[#allocation2 + $0x7a4] sm:$0xf]  ;;  %v6365_v31 = vld [vmem:[#allocation2 + $0x7b0] sm:$0xf0]  ;;  %v6240_v35 = vor.u32 %v8223_v28, %v6237_v29 }
  0x78   :  { %1772 = vmatmul.bf16.vlgmr.msra.gmra.mxu0 %v8904_v9  ;;  %1785 = vmatmul.bf16.vlgmr.msra.gmra.mxu1 %v8914_v17  ;;  %v8155_v36 = vld [vmem:[#allocation2 + $0x484] sm:$0xf]  ;;  %v5965_v39 = vld [vmem:[#allocation2 + $0x490] sm:$0xf0]  ;;  %v6368_v42 = vor.u32 %v8255_v30, %v6365_v31 }
  0x79   :  { %1816 = vmatpush.bf16.msrb.mxu0 %v6016_v5  ;;  %1829 = vmatpush.bf16.msrb.mxu1 %v6144_v6  ;;  %v8187_v41 = vld [vmem:[#allocation2 + $0x584] sm:$0xf]  ;;  %v6093_v43 = vld [vmem:[#allocation2 + $0x590] sm:$0xf0]  ;;  %v5968_v48 = vor.u32 %v8155_v36, %v5965_v39  ;;  %v5507_v39 = vld [vmem:[#allocation2 + $0xe8] sm:$0xf] }
  0x7a   :  { %1842 = vmatpush.bf16.msrb.mxu2 %v6272_v7  ;;  %1811 = vmatmul.bf16.vlgmr.msra.gmra.mxu3 %v8912_v16  ;;  %v8219_v44 = vld [vmem:[#allocation2 + $0x684] sm:$0xf]  ;;  %v6221_v45 = vld [vmem:[#allocation2 + $0x690] sm:$0xf0]  ;;  %v6096_v49 = vor.u32 %v8187_v41, %v6093_v43  ;;  %v8042_v41 = vld [vmem:[#allocation2 + $0xf4] sm:$0xf0] }
  0x7b   :  { %1855 = vmatpush.bf16.msrb.mxu3 %v6400_v12  ;;  %1798 = vmatmul.bf16.vlgmr.msra.gmra.mxu2 %v8898_v63  ;;  %v8251_v46 = vld [vmem:[#allocation2 + $0x784] sm:$0xf]  ;;  %v6349_v47 = vld [vmem:[#allocation2 + $0x790] sm:$0xf0]  ;;  %v6224_v50 = vor.u32 %v8219_v44, %v6221_v45  ;;  %v8074_v44 = vld [vmem:[#allocation2 + $0x1f4] sm:$0xf0] }
  0x7c   :  { %v8151_v51 = vld [vmem:[#allocation2 + $0x464] sm:$0xf]  ;;  %v5949_v52 = vld [vmem:[#allocation2 + $0x470] sm:$0xf0]  ;;  %v6352_v54 = vor.u32 %v8251_v46, %v6349_v47  ;;  %v5763_v45 = vld [vmem:[#allocation2 + $0x2e8] sm:$0xf] }
  0x7d   :  { %1817 = vmatpush.bf16.msrb.mxu0 %v6000_v20  ;;  %1830 = vmatpush.bf16.msrb.mxu1 %v6128_v21  ;;  %v8183_v53 = vld [vmem:[#allocation2 + $0x564] sm:$0xf]  ;;  %v6077_v55 = vld [vmem:[#allocation2 + $0x570] sm:$0xf0]  ;;  %v5952_v60 = vor.u32 %v8151_v51, %v5949_v52  ;;  %v8106_v46 = vld [vmem:[#allocation2 + $0x2f4] sm:$0xf0]  ;;  %v5508_v52 = vor.u32 %v8042_v41, %v5507_v39 }
  0x7e   :  { %1843 = vmatpush.bf16.msrb.mxu2 %v6256_v22  ;;  %v8215_v56 = vld [vmem:[#allocation2 + $0x664] sm:$0xf]  ;;  %v6205_v57 = vld [vmem:[#allocation2 + $0x670] sm:$0xf0]  ;;  %v6080_v61 = vor.u32 %v8183_v53, %v6077_v55  ;;  %v5491_v55 = vld [vmem:[#allocation2 + $0xc8] sm:$0xf] }
  0x7f   :  { %1856 = vmatpush.bf16.msrb.mxu3 %v6384_v26  ;;  %v8247_v58 = vld [vmem:[#allocation2 + $0x764] sm:$0xf]  ;;  %v6333_v59 = vld [vmem:[#allocation2 + $0x770] sm:$0xf0]  ;;  %v6208_v62 = vor.u32 %v8215_v56, %v6205_v57  ;;  %v8038_v56 = vld [vmem:[#allocation2 + $0xd4] sm:$0xf0] }
  0x80   :  { %v8147_v0 = vld [vmem:[#allocation2 + $0x444] sm:$0xf]  ;;  %v5933_v1 = vld [vmem:[#allocation2 + $0x450] sm:$0xf0]  ;;  %v6336_v3 = vor.u32 %v8247_v58, %v6333_v59  ;;  %v5619_v57 = vld [vmem:[#allocation2 + $0x1c8] sm:$0xf] }
  0x81   :  { %1818 = vmatpush.bf16.msrb.mxu0 %v5984_v32  ;;  %1831 = vmatpush.bf16.msrb.mxu1 %v6112_v33  ;;  %v8179_v2 = vld [vmem:[#allocation2 + $0x544] sm:$0xf]  ;;  %v6061_v4 = vld [vmem:[#allocation2 + $0x550] sm:$0xf0]  ;;  %v5936_v10 = vor.u32 %v8147_v0, %v5933_v1  ;;  %v8070_v59 = vld [vmem:[#allocation2 + $0x1d4] sm:$0xf0]  ;;  %v5492_v1 = vor.u32 %v8038_v56, %v5491_v55 }
  0x82   :  { %1844 = vmatpush.bf16.msrb.mxu2 %v6240_v35  ;;  %v8211_v5 = vld [vmem:[#allocation2 + $0x644] sm:$0xf]  ;;  %v6189_v6 = vld [vmem:[#allocation2 + $0x650] sm:$0xf0]  ;;  %v6064_v11 = vor.u32 %v8179_v2, %v6061_v4  ;;  %v8134_v0 = vld [vmem:[#allocation2 + $0x3d4] sm:$0xf0]  ;;  %v5620_v2 = vor.u32 %v8070_v59, %v5619_v57 }
  0x83   :  { %1857 = vmatpush.bf16.msrb.mxu3 %v6368_v42  ;;  %v8243_v7 = vld [vmem:[#allocation2 + $0x744] sm:$0xf]  ;;  %v6317_v8 = vld [vmem:[#allocation2 + $0x750] sm:$0xf0]  ;;  %v6192_v12 = vor.u32 %v8211_v5, %v6189_v6  ;;  %v5635_v42 = vld [vmem:[#allocation2 + $0x1e8] sm:$0xf] }
  0x84   :  { %v8143_v13 = vld [vmem:[#allocation2 + $0x424] sm:$0xf]  ;;  %v5917_v14 = vld [vmem:[#allocation2 + $0x430] sm:$0xf0]  ;;  %v6320_v18 = vor.u32 %v8243_v7, %v6317_v8  ;;  %v5636_v53 = vor.u32 %v8074_v44, %v5635_v42  ;;  %v5475_v4 = vld [vmem:[#allocation2 + $0xa8] sm:$0xf] }
  0x85   :  { %1819 = vmatpush.bf16.msrb.mxu0 %v5968_v48  ;;  %1832 = vmatpush.bf16.msrb.mxu1 %v6096_v49  ;;  %v8175_v15 = vld [vmem:[#allocation2 + $0x524] sm:$0xf]  ;;  %v6045_v19 = vld [vmem:[#allocation2 + $0x530] sm:$0xf0]  ;;  %v5920_v24 = vor.u32 %v8143_v13, %v5917_v14  ;;  %v5891_v49 = vld [vmem:[#allocation2 + $0x3e8] sm:$0xf] }
  0x86   :  { %1845 = vmatpush.bf16.msrb.mxu2 %v6224_v50  ;;  %v8207_v20 = vld [vmem:[#allocation2 + $0x624] sm:$0xf]  ;;  %v6173_v21 = vld [vmem:[#allocation2 + $0x630] sm:$0xf0]  ;;  %v6048_v27 = vor.u32 %v8175_v15, %v6045_v19  ;;  %v8138_v50 = vld [vmem:[#allocation2 + $0x3f4] sm:$0xf0] }
  0x87   :  { %1858 = vmatpush.bf16.msrb.mxu3 %v6352_v54  ;;  %v8239_v22 = vld [vmem:[#allocation2 + $0x724] sm:$0xf]  ;;  %v6301_v23 = vld [vmem:[#allocation2 + $0x730] sm:$0xf0]  ;;  %v6176_v28 = vor.u32 %v8207_v20, %v6173_v21  ;;  %v5764_v54 = vor.u32 %v8106_v46, %v5763_v45  ;;  %v5892_v58 = vor.u32 %v8138_v50, %v5891_v49  ;;  %v8034_v5 = vld [vmem:[#allocation2 + $0xb4] sm:$0xf0] }
  0x88   :  { %v8139_v25 = vld [vmem:[#allocation2 + $0x404] sm:$0xf]  ;;  %v5901_v26 = vld [vmem:[#allocation2 + $0x410] sm:$0xf0]  ;;  %v6304_v32 = vor.u32 %v8239_v22, %v6301_v23  ;;  %v5603_v6 = vld [vmem:[#allocation2 + $0x1a8] sm:$0xf]  ;;  %v5476_v14 = vor.u32 %v8034_v5, %v5475_v4 }
  0x89   :  { %1820 = vmatpush.bf16.msrb.mxu0 %v5952_v60  ;;  %1833 = vmatpush.bf16.msrb.mxu1 %v6080_v61  ;;  %v8171_v29 = vld [vmem:[#allocation2 + $0x504] sm:$0xf]  ;;  %v6029_v30 = vld [vmem:[#allocation2 + $0x510] sm:$0xf0]  ;;  %v5904_v43 = vor.u32 %v8139_v25, %v5901_v26  ;;  %v5747_v60 = vld [vmem:[#allocation2 + $0x2c8] sm:$0xf] }
  0x8a   :  { %1846 = vmatpush.bf16.msrb.mxu2 %v6208_v62  ;;  %v8203_v31 = vld [vmem:[#allocation2 + $0x604] sm:$0xf]  ;;  %v6157_v33 = vld [vmem:[#allocation2 + $0x610] sm:$0xf0]  ;;  %v6032_v47 = vor.u32 %v8171_v29, %v6029_v30  ;;  %v8102_v61 = vld [vmem:[#allocation2 + $0x2d4] sm:$0xf0] }
  0x8b   :  { %1859 = vmatpush.bf16.msrb.mxu3 %v6336_v3  ;;  %v8235_v35 = vld [vmem:[#allocation2 + $0x704] sm:$0xf]  ;;  %v6285_v36 = vld [vmem:[#allocation2 + $0x710] sm:$0xf0]  ;;  %v6160_v48 = vor.u32 %v8203_v31, %v6157_v33  ;;  %v5875_v62 = vld [vmem:[#allocation2 + $0x3c8] sm:$0xf]  ;;  %v5748_v3 = vor.u32 %v8102_v61, %v5747_v60 }
  0x8c   :  { %v6288_v51 = vor.u32 %v8235_v35, %v6285_v36  ;;  %v5876_v7 = vor.u32 %v8134_v0, %v5875_v62  ;;  %v8066_v8 = vld [vmem:[#allocation2 + $0x1b4] sm:$0xf0]  ;;  %v5459_v19 = vld [vmem:[#allocation2 + $0x88] sm:$0xf] }
  0x8d   :  { %1821 = vmatpush.bf16.msrb.mxu0 %v5936_v10  ;;  %1834 = vmatpush.bf16.msrb.mxu1 %v6064_v11  ;;  %v5731_v10 = vld [vmem:[#allocation2 + $0x2a8] sm:$0xf]  ;;  %v8098_v11 = vld [vmem:[#allocation2 + $0x2b4] sm:$0xf0]  ;;  %v5604_v15 = vor.u32 %v8066_v8, %v5603_v6 }
  0x8e   :  { %1847 = vmatpush.bf16.msrb.mxu2 %v6192_v12  ;;  %v5859_v12 = vld [vmem:[#allocation2 + $0x3a8] sm:$0xf]  ;;  %v8130_v13 = vld [vmem:[#allocation2 + $0x3b4] sm:$0xf0] }
  0x8f   :  { %1860 = vmatpush.bf16.msrb.mxu3 %v6320_v18  ;;  %v5732_v18 = vor.u32 %v8098_v11, %v5731_v10  ;;  %v8030_v20 = vld [vmem:[#allocation2 + $0x94] sm:$0xf0]  ;;  %v5587_v21 = vld [vmem:[#allocation2 + $0x188] sm:$0xf]  ;;  %v5860_v22 = vor.u32 %v8130_v13, %v5859_v12 }
  0x90   :  { %v8062_v23 = vld [vmem:[#allocation2 + $0x194] sm:$0xf0]  ;;  %v5843_v26 = vld [vmem:[#allocation2 + $0x388] sm:$0xf] }
  0x91   :  { %1822 = vmatpush.bf16.msrb.mxu0 %v5920_v24  ;;  %1835 = vmatpush.bf16.msrb.mxu1 %v6048_v27  ;;  %v5715_v24 = vld [vmem:[#allocation2 + $0x288] sm:$0xf]  ;;  %v8094_v25 = vld [vmem:[#allocation2 + $0x294] sm:$0xf0]  ;;  %v5588_v29 = vor.u32 %v8062_v23, %v5587_v21 }
  0x92   :  { %1848 = vmatpush.bf16.msrb.mxu2 %v6176_v28  ;;  %v8126_v27 = vld [vmem:[#allocation2 + $0x394] sm:$0xf0]  ;;  %v5460_v28 = vor.u32 %v8030_v20, %v5459_v19  ;;  %v5716_v30 = vor.u32 %v8094_v25, %v5715_v24  ;;  %v5443_v31 = vld [vmem:[#allocation2 + $0x68] sm:$0xf] }
  0x93   :  { %1861 = vmatpush.bf16.msrb.mxu3 %v6304_v32  ;;  %v8026_v32 = vld [vmem:[#allocation2 + $0x74] sm:$0xf0]  ;;  %v5571_v33 = vld [vmem:[#allocation2 + $0x168] sm:$0xf]  ;;  %v5844_v35 = vor.u32 %v8126_v27, %v5843_v26 }
  0x94   :  { %v8058_v36 = vld [vmem:[#allocation2 + $0x174] sm:$0xf0]  ;;  %v5699_v39 = vld [vmem:[#allocation2 + $0x268] sm:$0xf]  ;;  %v5444_v44 = vor.u32 %v8026_v32, %v5443_v31 }
  0x95   :  { %1823 = vmatpush.bf16.msrb.mxu0 %v5904_v43  ;;  %1836 = vmatpush.bf16.msrb.mxu1 %v6032_v47  ;;  %v8090_v41 = vld [vmem:[#allocation2 + $0x274] sm:$0xf0]  ;;  %v5827_v42 = vld [vmem:[#allocation2 + $0x368] sm:$0xf]  ;;  %v5572_v45 = vor.u32 %v8058_v36, %v5571_v33 }
  0x96   :  { %1849 = vmatpush.bf16.msrb.mxu2 %v6160_v48  ;;  %v8122_v43 = vld [vmem:[#allocation2 + $0x374] sm:$0xf0]  ;;  %v5700_v46 = vor.u32 %v8090_v41, %v5699_v39  ;;  %v5427_v47 = vld [vmem:[#allocation2 + $0x48] sm:$0xf] }
  0x97   :  { %1862 = vmatpush.bf16.msrb.mxu3 %v6288_v51  ;;  %v8022_v48 = vld [vmem:[#allocation2 + $0x54] sm:$0xf0]  ;;  %v5555_v49 = vld [vmem:[#allocation2 + $0x148] sm:$0xf]  ;;  %v5828_v50 = vor.u32 %v8122_v43, %v5827_v42 }
  0x98   :  { %1824 = vmatmul.bf16.vlgmr.msrb.gmra.mxu0 %v8933_v37  ;;  %1837 = vmatmul.bf16.vlgmr.msrb.gmra.mxu1 %v8937_v40  ;;  %v8054_v51 = vld [vmem:[#allocation2 + $0x154] sm:$0xf0]  ;;  %v5428_v56 = vor.u32 %v8022_v48, %v5427_v47  ;;  %v5411_v59 = vld [vmem:[#allocation2 + $0x28] sm:$0xf] }
  0x99   :  { %1868 = vmatpush.bf16.msra.mxu0 %v5508_v52  ;;  %1881 = vmatpush.bf16.msra.mxu1 %v5636_v53  ;;  %v5683_v52 = vld [vmem:[#allocation2 + $0x248] sm:$0xf]  ;;  %v8086_v53 = vld [vmem:[#allocation2 + $0x254] sm:$0xf0]  ;;  %v5556_v57 = vor.u32 %v8054_v51, %v5555_v49 }
  0x9a   :  { %1894 = vmatpush.bf16.msra.mxu2 %v5764_v54  ;;  %1863 = vmatmul.bf16.vlgmr.msrb.gmra.mxu3 %v8935_v38  ;;  %v5811_v54 = vld [vmem:[#allocation2 + $0x348] sm:$0xf]  ;;  %v8118_v55 = vld [vmem:[#allocation2 + $0x354] sm:$0xf0] }
  0x9b   :  { %1907 = vmatpush.bf16.msra.mxu3 %v5892_v58  ;;  %1850 = vmatmul.bf16.vlgmr.msrb.gmra.mxu2 %v8931_v34  ;;  %v5684_v58 = vor.u32 %v8086_v53, %v5683_v52  ;;  %v8018_v60 = vld [vmem:[#allocation2 + $0x34] sm:$0xf0]  ;;  %v5539_v61 = vld [vmem:[#allocation2 + $0x128] sm:$0xf]  ;;  %v5812_v62 = vor.u32 %v8118_v55, %v5811_v54 }
  0x9c   :  { %v8050_v0 = vld [vmem:[#allocation2 + $0x134] sm:$0xf0]  ;;  %v5412_v5 = vor.u32 %v8018_v60, %v5411_v59  ;;  %v5395_v6 = vld [vmem:[#allocation2 + $0x8] sm:$0xf] }
  0x9d   :  { %1869 = vmatpush.bf16.msra.mxu0 %v5492_v1  ;;  %1882 = vmatpush.bf16.msra.mxu1 %v5620_v2  ;;  %v5667_v1 = vld [vmem:[#allocation2 + $0x228] sm:$0xf]  ;;  %v8082_v2 = vld [vmem:[#allocation2 + $0x234] sm:$0xf0]  ;;  %v5540_v8 = vor.u32 %v8050_v0, %v5539_v61 }
  0x9e   :  { %1895 = vmatpush.bf16.msra.mxu2 %v5748_v3  ;;  %v5795_v3 = vld [vmem:[#allocation2 + $0x328] sm:$0xf]  ;;  %v8114_v4 = vld [vmem:[#allocation2 + $0x334] sm:$0xf0]  ;;  %v5668_v10 = vor.u32 %v8082_v2, %v5667_v1 }
  0x9f   :  { %1908 = vmatpush.bf16.msra.mxu3 %v5876_v7  ;;  %v8014_v7 = vld [vmem:[#allocation2 + $0x14] sm:$0xf0]  ;;  %v5523_v11 = vld [vmem:[#allocation2 + $0x108] sm:$0xf] }
  0xa0   :  { %v8046_v12 = vld [vmem:[#allocation2 + $0x114] sm:$0xf0]  ;;  %v5651_v13 = vld [vmem:[#allocation2 + $0x208] sm:$0xf]  ;;  %v5396_v23 = vor.u32 %v8014_v7, %v5395_v6  ;;  %v8958_v7 = vld [vmem:[%s9205_s8] sm:$0xf] }
  0xa1   :  { %1870 = vmatpush.bf16.msra.mxu0 %v5476_v14  ;;  %1883 = vmatpush.bf16.msra.mxu1 %v5604_v15  ;;  %v5796_v14 = vor.u32 %v8114_v4, %v5795_v3  ;;  %v8078_v15 = vld [vmem:[#allocation2 + $0x214] sm:$0xf0]  ;;  %v6019_v20 = vld [vmem:[#allocation2 + $0x4e8] sm:$0xf]  ;;  %v5524_v27 = vor.u32 %v8046_v12, %v5523_v11 }
  0xa2   :  { %1896 = vmatpush.bf16.msra.mxu2 %v5732_v18  ;;  %v5779_v18 = vld [vmem:[#allocation2 + $0x308] sm:$0xf]  ;;  %v8110_v19 = vld [vmem:[#allocation2 + $0x314] sm:$0xf0] }
  0xa3   :  { %1909 = vmatpush.bf16.msra.mxu3 %v5860_v22  ;;  %v8170_v21 = vld [vmem:[#allocation2 + $0x4f4] sm:$0xf0]  ;;  %v6147_v22 = vld [vmem:[#allocation2 + $0x5e8] sm:$0xf]  ;;  %v5780_v31 = vor.u32 %v8110_v19, %v5779_v18  ;;  %v372_v19 = vperm.slane %v8958_v7, 0 }
  0xa4   :  { %v8202_v24 = vld [vmem:[#allocation2 + $0x5f4] sm:$0xf0]  ;;  %v6275_v25 = vld [vmem:[#allocation2 + $0x6e8] sm:$0xf]  ;;  %v6020_v32 = vor.u32 %v8170_v21, %v6019_v20 }
  0xa5   :  { %1871 = vmatpush.bf16.msra.mxu0 %v5460_v28  ;;  %1884 = vmatpush.bf16.msra.mxu1 %v5588_v29  ;;  %v8234_v26 = vld [vmem:[#allocation2 + $0x6f4] sm:$0xf0]  ;;  %v5652_v28 = vor.u32 %v8078_v15, %v5651_v13  ;;  %v6403_v29 = vld [vmem:[#allocation2 + $0x7e8] sm:$0xf]  ;;  %v6148_v33 = vor.u32 %v8202_v24, %v6147_v22 }
  0xa6   :  { %1897 = vmatpush.bf16.msra.mxu2 %v5716_v30  ;;  %v8266_v30 = vld [vmem:[#allocation2 + $0x7f4] sm:$0xf0]  ;;  %v6003_v36 = vld [vmem:[#allocation2 + $0x4c8] sm:$0xf] }
  0xa7   :  { %1910 = vmatpush.bf16.msra.mxu3 %v5844_v35  ;;  %v6276_v35 = vor.u32 %v8234_v26, %v6275_v25  ;;  %v8166_v39 = vld [vmem:[#allocation2 + $0x4d4] sm:$0xf0]  ;;  %v6131_v41 = vld [vmem:[#allocation2 + $0x5c8] sm:$0xf]  ;;  %v6404_v42 = vor.u32 %v8266_v30, %v6403_v29 }
  0xa8   :  { %v8198_v43 = vld [vmem:[#allocation2 + $0x5d4] sm:$0xf0]  ;;  %v6004_v48 = vor.u32 %v8166_v39, %v6003_v36  ;;  %v5987_v51 = vld [vmem:[#allocation2 + $0x4a8] sm:$0xf] }
  0xa9   :  { %1872 = vmatpush.bf16.msra.mxu0 %v5444_v44  ;;  %1885 = vmatpush.bf16.msra.mxu1 %v5572_v45  ;;  %v6259_v44 = vld [vmem:[#allocation2 + $0x6c8] sm:$0xf]  ;;  %v8230_v45 = vld [vmem:[#allocation2 + $0x6d4] sm:$0xf0]  ;;  %v6132_v49 = vor.u32 %v8198_v43, %v6131_v41 }
  0xaa   :  { %1898 = vmatpush.bf16.msra.mxu2 %v5700_v46  ;;  %v6387_v46 = vld [vmem:[#allocation2 + $0x7c8] sm:$0xf]  ;;  %v8262_v47 = vld [vmem:[#allocation2 + $0x7d4] sm:$0xf0] }
  0xab   :  { %1911 = vmatpush.bf16.msra.mxu3 %v5828_v50  ;;  %v6260_v50 = vor.u32 %v8230_v45, %v6259_v44  ;;  %v8162_v52 = vld [vmem:[#allocation2 + $0x4b4] sm:$0xf0]  ;;  %v6115_v53 = vld [vmem:[#allocation2 + $0x5a8] sm:$0xf]  ;;  %v6388_v54 = vor.u32 %v8262_v47, %v6387_v46 }
  0xac   :  { %v8194_v55 = vld [vmem:[#allocation2 + $0x5b4] sm:$0xf0]  ;;  %v5988_v60 = vor.u32 %v8162_v52, %v5987_v51  ;;  %v5971_v61 = vld [vmem:[#allocation2 + $0x488] sm:$0xf] }
  0xad   :  { %1873 = vmatpush.bf16.msra.mxu0 %v5428_v56  ;;  %1886 = vmatpush.bf16.msra.mxu1 %v5556_v57  ;;  %v6243_v56 = vld [vmem:[#allocation2 + $0x6a8] sm:$0xf]  ;;  %v8226_v57 = vld [vmem:[#allocation2 + $0x6b4] sm:$0xf0] }
  0xae   :  { %1899 = vmatpush.bf16.msra.mxu2 %v5684_v58  ;;  %v6371_v58 = vld [vmem:[#allocation2 + $0x7a8] sm:$0xf]  ;;  %v8258_v59 = vld [vmem:[#allocation2 + $0x7b4] sm:$0xf0]  ;;  %v6244_v0 = vor.u32 %v8226_v57, %v6243_v56 }
  0xaf   :  { %1912 = vmatpush.bf16.msra.mxu3 %v5812_v62  ;;  %v6116_v62 = vor.u32 %v8194_v55, %v6115_v53  ;;  %v8158_v1 = vld [vmem:[#allocation2 + $0x494] sm:$0xf0]  ;;  %v6099_v2 = vld [vmem:[#allocation2 + $0x588] sm:$0xf]  ;;  %v6372_v4 = vor.u32 %v8258_v59, %v6371_v58 }
  0xb0   :  { %v8190_v3 = vld [vmem:[#allocation2 + $0x594] sm:$0xf0]  ;;  %v5972_v11 = vor.u32 %v8158_v1, %v5971_v61  ;;  %v5955_v12 = vld [vmem:[#allocation2 + $0x468] sm:$0xf] }
  0xb1   :  { %1874 = vmatpush.bf16.msra.mxu0 %v5412_v5  ;;  %1887 = vmatpush.bf16.msra.mxu1 %v5540_v8  ;;  %v6227_v5 = vld [vmem:[#allocation2 + $0x688] sm:$0xf]  ;;  %v8222_v6 = vld [vmem:[#allocation2 + $0x694] sm:$0xf0]  ;;  %v6100_v13 = vor.u32 %v8190_v3, %v6099_v2 }
  0xb2   :  { %1900 = vmatpush.bf16.msra.mxu2 %v5668_v10  ;;  %v6355_v8 = vld [vmem:[#allocation2 + $0x788] sm:$0xf]  ;;  %v8254_v10 = vld [vmem:[#allocation2 + $0x794] sm:$0xf0] }
  0xb3   :  { %1913 = vmatpush.bf16.msra.mxu3 %v5796_v14  ;;  %v6228_v14 = vor.u32 %v8222_v6, %v6227_v5  ;;  %v8154_v15 = vld [vmem:[#allocation2 + $0x474] sm:$0xf0]  ;;  %v6083_v18 = vld [vmem:[#allocation2 + $0x568] sm:$0xf]  ;;  %v6356_v20 = vor.u32 %v8254_v10, %v6355_v8 }
  0xb4   :  { %v8186_v21 = vld [vmem:[#allocation2 + $0x574] sm:$0xf0]  ;;  %v6211_v22 = vld [vmem:[#allocation2 + $0x668] sm:$0xf]  ;;  %v5956_v26 = vor.u32 %v8154_v15, %v5955_v12  ;;  %v1682_v44 = vpop.f32.mrf.mxu1  ;;  %v5509_v15 = vld [vmem:[#allocation2 + $0xf8] sm:$0xf0] }
  0xb5   :  { %1875 = vmatpush.bf16.msra.mxu0 %v5396_v23  ;;  %1888 = vmatpush.bf16.msra.mxu1 %v5524_v27  ;;  %v8218_v23 = vld [vmem:[#allocation2 + $0x674] sm:$0xf0]  ;;  %v6339_v24 = vld [vmem:[#allocation2 + $0x768] sm:$0xf] }
  0xb6   :  { %1901 = vmatpush.bf16.msra.mxu2 %v5652_v28  ;;  %v8250_v25 = vld [vmem:[#allocation2 + $0x774] sm:$0xf0]  ;;  %v6084_v28 = vor.u32 %v8186_v21, %v6083_v18  ;;  %v6212_v29 = vor.u32 %v8218_v23, %v6211_v22  ;;  %v5939_v30 = vld [vmem:[#allocation2 + $0x448] sm:$0xf]  ;;  %v8072_v18 = vld [vmem:[#allocation2 + $0x1ec] sm:$0xf] }
  0xb7   :  { %1914 = vmatpush.bf16.msra.mxu3 %v5780_v31  ;;  %v8150_v31 = vld [vmem:[#allocation2 + $0x454] sm:$0xf0]  ;;  %v6195_v39 = vld [vmem:[#allocation2 + $0x648] sm:$0xf]  ;;  %v5637_v22 = vld [vmem:[#allocation2 + $0x1f8] sm:$0xf0] }
  0xb8   :  { %1876 = vmatmul.bf16.vlgmr.msra.gmra.mxu0 %v8904_v9  ;;  %1889 = vmatmul.bf16.vlgmr.msra.gmra.mxu1 %v8914_v17  ;;  %v8182_v36 = vld [vmem:[#allocation2 + $0x554] sm:$0xf0]  ;;  %v5940_v46 = vor.u32 %v8150_v31, %v5939_v30  ;;  %v6051_v52 = vld [vmem:[#allocation2 + $0x528] sm:$0xf]  ;;  %v8104_v23 = vld [vmem:[#allocation2 + $0x2ec] sm:$0xf]  ;;  %v5640_v31 = vor.u32 %v8072_v18, %v5637_v22 }
  0xb9   :  { %1920 = vmatpush.bf16.msrb.mxu0 %v6020_v32  ;;  %1933 = vmatpush.bf16.msrb.mxu1 %v6148_v33  ;;  %v6067_v32 = vld [vmem:[#allocation2 + $0x548] sm:$0xf]  ;;  %v8214_v41 = vld [vmem:[#allocation2 + $0x654] sm:$0xf0]  ;;  %v5445_v18 = vld [vmem:[#allocation2 + $0x78] sm:$0xf0] }
  0xba   :  { %1946 = vmatpush.bf16.msrb.mxu2 %v6276_v35  ;;  %1915 = vmatmul.bf16.vlgmr.msra.gmra.mxu3 %v8912_v16  ;;  %v6340_v35 = vor.u32 %v8250_v25, %v6339_v24  ;;  %v8246_v43 = vld [vmem:[#allocation2 + $0x754] sm:$0xf0]  ;;  %v6179_v55 = vld [vmem:[#allocation2 + $0x628] sm:$0xf]  ;;  %v5765_v24 = vld [vmem:[#allocation2 + $0x2f8] sm:$0xf0] }
  0xbb   :  { %1959 = vmatpush.bf16.msrb.mxu3 %v6404_v42  ;;  %1902 = vmatmul.bf16.vlgmr.msra.gmra.mxu2 %v8898_v63  ;;  %v6323_v42 = vld [vmem:[#allocation2 + $0x748] sm:$0xf]  ;;  %v8146_v51 = vld [vmem:[#allocation2 + $0x434] sm:$0xf0] }
  0xbc   :  { %v6324_v53 = vor.u32 %v8246_v43, %v6323_v42  ;;  %v8210_v56 = vld [vmem:[#allocation2 + $0x634] sm:$0xf0]  ;;  %v6307_v58 = vld [vmem:[#allocation2 + $0x728] sm:$0xf]  ;;  %v5621_v42 = vld [vmem:[#allocation2 + $0x1d8] sm:$0xf0] }
  0xbd   :  { %1921 = vmatpush.bf16.msrb.mxu0 %v6004_v48  ;;  %1934 = vmatpush.bf16.msrb.mxu1 %v6132_v49  ;;  %v6068_v48 = vor.u32 %v8182_v36, %v6067_v32  ;;  %v6196_v49 = vor.u32 %v8214_v41, %v6195_v39  ;;  %v8242_v59 = vld [vmem:[#allocation2 + $0x734] sm:$0xf0]  ;;  %v6035_v5 = vld [vmem:[#allocation2 + $0x508] sm:$0xf]  ;;  %v5768_v32 = vor.u32 %v8104_v23, %v5765_v24  ;;  %v8068_v36 = vld [vmem:[#allocation2 + $0x1cc] sm:$0xf] }
  0xbe   :  { %1947 = vmatpush.bf16.msrb.mxu2 %v6260_v50  ;;  %v5923_v50 = vld [vmem:[#allocation2 + $0x428] sm:$0xf]  ;;  %v8174_v6 = vld [vmem:[#allocation2 + $0x514] sm:$0xf0]  ;;  %v6308_v10 = vor.u32 %v8242_v59, %v6307_v58  ;;  %v8100_v43 = vld [vmem:[#allocation2 + $0x2cc] sm:$0xf] }
  0xbf   :  { %1960 = vmatpush.bf16.msrb.mxu3 %v6388_v54  ;;  %v8178_v54 = vld [vmem:[#allocation2 + $0x534] sm:$0xf0]  ;;  %v5924_v61 = vor.u32 %v8146_v51, %v5923_v50  ;;  %v6163_v8 = vld [vmem:[#allocation2 + $0x608] sm:$0xf]  ;;  %v6036_v25 = vor.u32 %v8174_v6, %v6035_v5  ;;  %v8032_v50 = vld [vmem:[#allocation2 + $0xac] sm:$0xf] }
  0xc0   :  { %v6052_v3 = vor.u32 %v8178_v54, %v6051_v52  ;;  %v6291_v12 = vld [vmem:[#allocation2 + $0x708] sm:$0xf]  ;;  %v5477_v51 = vld [vmem:[#allocation2 + $0xb8] sm:$0xf0]  ;;  %v8064_v52 = vld [vmem:[#allocation2 + $0x1ac] sm:$0xf] }
  0xc1   :  { %1922 = vmatpush.bf16.msrb.mxu0 %v5988_v60  ;;  %1935 = vmatpush.bf16.msrb.mxu1 %v6116_v62  ;;  %v1669_v27 = vpop.f32.mrf.mxu0  ;;  %v1708_v60 = vpop.f32.mrf.mxu3  ;;  %v5907_v62 = vld [vmem:[#allocation2 + $0x408] sm:$0xf]  ;;  %v5605_v54 = vld [vmem:[#allocation2 + $0x1b8] sm:$0xf0]  ;;  %v5480_v59 = vor.u32 %v8032_v50, %v5477_v51  ;;  %v8092_v5 = vld [vmem:[#allocation2 + $0x28c] sm:$0xf] }
  0xc2   :  { %1948 = vmatpush.bf16.msrb.mxu2 %v6244_v0  ;;  %v1670_v33 = vadd.f32 %v1669_v27, %v372_v19  ;;  %v8142_v0 = vld [vmem:[#allocation2 + $0x414] sm:$0xf0]  ;;  %v1684_v19 = vpop.f32.mrf.mxu1  ;;  %v8136_v27 = vld [vmem:[#allocation2 + $0x3ec] sm:$0xf]  ;;  %v5861_v58 = vld [vmem:[#allocation2 + $0x3b8] sm:$0xf0] }
  0xc3   :  { %1961 = vmatpush.bf16.msrb.mxu3 %v6372_v4  ;;  %v1695_v45 = vpop.f32.mrf.mxu2  ;;  %v6180_v4 = vor.u32 %v8210_v56, %v6179_v55  ;;  %v5908_v21 = vor.u32 %v8142_v0, %v5907_v62  ;;  %v8096_v55 = vld [vmem:[#allocation2 + $0x2ac] sm:$0xf]  ;;  %v5733_v56 = vld [vmem:[#allocation2 + $0x2b8] sm:$0xf0] }
  0xc4   :  { %v1683_v47 = vadd.f32 %v1682_v44, %v1670_v33  ;;  %v8036_v33 = vld [vmem:[#allocation2 + $0xcc] sm:$0xf]  ;;  %v5749_v44 = vld [vmem:[#allocation2 + $0x2d8] sm:$0xf0] }
  0xc5   :  { %1923 = vmatpush.bf16.msrb.mxu0 %v5972_v11  ;;  %1936 = vmatpush.bf16.msrb.mxu1 %v6100_v13  ;;  %v8206_v11 = vld [vmem:[#allocation2 + $0x614] sm:$0xf0]  ;;  %v8028_v62 = vld [vmem:[#allocation2 + $0x8c] sm:$0xf]  ;;  %v5461_v0 = vld [vmem:[#allocation2 + $0x98] sm:$0xf0] }
  0xc6   :  { %1949 = vmatpush.bf16.msrb.mxu2 %v6228_v14  ;;  %v1696_v57 = vadd.f32 %v1695_v45, %v1683_v47  ;;  %v8238_v13 = vld [vmem:[#allocation2 + $0x714] sm:$0xf0]  ;;  %v8040_v14 = vld [vmem:[#allocation2 + $0xec] sm:$0xf]  ;;  %v5717_v6 = vld [vmem:[#allocation2 + $0x298] sm:$0xf0] }
  0xc7   :  { %1962 = vmatpush.bf16.msrb.mxu3 %v6356_v20  ;;  %v5512_v30 = vor.u32 %v8040_v14, %v5509_v15  ;;  %v8132_v45 = vld [vmem:[#allocation2 + $0x3cc] sm:$0xf]  ;;  %v5720_v14 = vor.u32 %v8092_v5, %v5717_v6  ;;  %v5573_v23 = vld [vmem:[#allocation2 + $0x178] sm:$0xf0] }
  0xc8   :  { %v8961_v1 = vadd.f32 %v1708_v60, %v1696_v57  ;;  %v8128_v57 = vld [vmem:[#allocation2 + $0x3ac] sm:$0xf]  ;;  %v5608_v60 = vor.u32 %v8064_v52, %v5605_v54  ;;  %v5525_v6 = vld [vmem:[#allocation2 + $0x118] sm:$0xf0] }
  0xc9   :  { %1924 = vmatpush.bf16.msrb.mxu0 %v5956_v26  ;;  %1937 = vmatpush.bf16.msrb.mxu1 %v6084_v28  ;;  %v1671_v2 = vpop.f32.mrf.mxu0  ;;  %v6164_v26 = vor.u32 %v8206_v11, %v6163_v8  ;;  %v5893_v28 = vld [vmem:[#allocation2 + $0x3f8] sm:$0xf0]  ;;  %v1710_v39 = vpop.f32.mrf.mxu3  ;;  %v8124_v8 = vld [vmem:[#allocation2 + $0x38c] sm:$0xf]  ;;  %v5464_v11 = vor.u32 %v8028_v62, %v5461_v0 }
  0xca   :  { %1950 = vmatpush.bf16.msrb.mxu2 %v6212_v29  ;;  %v6292_v29 = vor.u32 %v8238_v13, %v6291_v12  ;;  %v5896_v41 = vor.u32 %v8136_v27, %v5893_v28  ;;  %v8060_v2 = vld [vmem:[#allocation2 + $0x18c] sm:$0xf]  ;;  %v5829_v27 = vld [vmem:[#allocation2 + $0x378] sm:$0xf0] }
  0xcb   :  { %1963 = vmatpush.bf16.msrb.mxu3 %v6340_v35  ;;  %v1697_v20 = vpop.f32.mrf.mxu2  ;;  %v5493_v35 = vld [vmem:[#allocation2 + $0xd8] sm:$0xf0]  ;;  %v8024_v15 = vld [vmem:[#allocation2 + $0x6c] sm:$0xf] }
  0xcc   :  { %v5496_v47 = vor.u32 %v8036_v33, %v5493_v35  ;;  %v8056_v19 = vld [vmem:[#allocation2 + $0x16c] sm:$0xf]  ;;  %v5429_v33 = vld [vmem:[#allocation2 + $0x58] sm:$0xf0] }
  0xcd   :  { %1925 = vmatpush.bf16.msrb.mxu0 %v5940_v46  ;;  %1938 = vmatpush.bf16.msrb.mxu1 %v6068_v48  ;;  %v5877_v46 = vld [vmem:[#allocation2 + $0x3d8] sm:$0xf0]  ;;  %v5624_v48 = vor.u32 %v8068_v36, %v5621_v42  ;;  %v8088_v24 = vld [vmem:[#allocation2 + $0x26c] sm:$0xf] }
  0xce   :  { %1951 = vmatpush.bf16.msrb.mxu2 %v6196_v49  ;;  %v5752_v49 = vor.u32 %v8100_v43, %v5749_v44  ;;  %v8052_v35 = vld [vmem:[#allocation2 + $0x14c] sm:$0xf]  ;;  %v5557_v39 = vld [vmem:[#allocation2 + $0x158] sm:$0xf0] }
  0xcf   :  { %1964 = vmatpush.bf16.msrb.mxu3 %v6324_v53  ;;  %v5880_v53 = vor.u32 %v8132_v45, %v5877_v46  ;;  %v5685_v42 = vld [vmem:[#allocation2 + $0x258] sm:$0xf0]  ;;  %v8116_v45 = vld [vmem:[#allocation2 + $0x34c] sm:$0xf]  ;;  %v5560_v50 = vor.u32 %v8052_v35, %v5557_v39 }
  0xd0   :  { %v5813_v46 = vld [vmem:[#allocation2 + $0x358] sm:$0xf0]  ;;  %v8016_v52 = vld [vmem:[#allocation2 + $0x2c] sm:$0xf] }
  0xd1   :  { %1926 = vmatpush.bf16.msrb.mxu0 %v5924_v61  ;;  %1939 = vmatpush.bf16.msrb.mxu1 %v6052_v3  ;;  %v5736_v61 = vor.u32 %v8096_v55, %v5733_v56  ;;  %v5864_v3 = vor.u32 %v8128_v57, %v5861_v58  ;;  %v8048_v54 = vld [vmem:[#allocation2 + $0x12c] sm:$0xf]  ;;  %v5816_v56 = vor.u32 %v8116_v45, %v5813_v46  ;;  %v5541_v57 = vld [vmem:[#allocation2 + $0x138] sm:$0xf0] }
  0xd2   :  { %1952 = vmatpush.bf16.msrb.mxu2 %v6180_v4  ;;  %v5589_v4 = vld [vmem:[#allocation2 + $0x198] sm:$0xf0]  ;;  %v8080_v58 = vld [vmem:[#allocation2 + $0x22c] sm:$0xf] }
  0xd3   :  { %1965 = vmatpush.bf16.msrb.mxu3 %v6308_v10  ;;  %v5845_v10 = vld [vmem:[#allocation2 + $0x398] sm:$0xf0]  ;;  %v5592_v13 = vor.u32 %v8060_v2, %v5589_v4  ;;  %v8012_v0 = vld [vmem:[#allocation2 + $0xc] sm:$0xf] }
  0xd4   :  { %v5848_v22 = vor.u32 %v8124_v8, %v5845_v10  ;;  %v5397_v2 = vld [vmem:[#allocation2 + $0x18] sm:$0xf0]  ;;  %v8044_v5 = vld [vmem:[#allocation2 + $0x10c] sm:$0xf] }
  0xd5   :  { %1927 = vmatpush.bf16.msrb.mxu0 %v5908_v21  ;;  %1940 = vmatpush.bf16.msrb.mxu1 %v6036_v25  ;;  %v1721_v12 = vpop.f32.mrf.mxu0  ;;  %v1734_v21 = vpop.f32.mrf.mxu1  ;;  %v5701_v25 = vld [vmem:[#allocation2 + $0x278] sm:$0xf0]  ;;  %v8076_v8 = vld [vmem:[#allocation2 + $0x20c] sm:$0xf] }
  0xd6   :  { %1953 = vmatpush.bf16.msrb.mxu2 %v6164_v26  ;;  %v1722_v20 = vadd.f32 %v1721_v12, %v8961_v1  ;;  %v8120_v26 = vld [vmem:[#allocation2 + $0x36c] sm:$0xf]  ;;  %v5653_v12 = vld [vmem:[#allocation2 + $0x218] sm:$0xf0] }
  0xd7   :  { %1966 = vmatpush.bf16.msrb.mxu3 %v6292_v29  ;;  %v5448_v29 = vor.u32 %v8024_v15, %v5445_v18  ;;  %v5832_v1 = vor.u32 %v8120_v26, %v5829_v27  ;;  %v8168_v18 = vld [vmem:[#allocation2 + $0x4ec] sm:$0xf]  ;;  %v5656_v26 = vor.u32 %v8076_v8, %v5653_v12  ;;  %v6005_v35 = vld [vmem:[#allocation2 + $0x4d8] sm:$0xf0] }
  0xd8   :  { %1928 = vmatmul.bf16.vlgmr.msrb.gmra.mxu0 %v8933_v37  ;;  %1941 = vmatmul.bf16.vlgmr.msrb.gmra.mxu1 %v8937_v40  ;;  %v1735_v28 = vadd.f32 %v1734_v21, %v1722_v20  ;;  %v8200_v20 = vld [vmem:[#allocation2 + $0x5ec] sm:$0xf]  ;;  %v5400_v21 = vor.u32 %v8012_v0, %v5397_v2  ;;  %v6133_v39 = vld [vmem:[#allocation2 + $0x5d8] sm:$0xf0] }
  0xd9   :  { %1972 = vmatpush.bf16.msra.mxu0 %v5512_v30  ;;  %1985 = vmatpush.bf16.msra.mxu1 %v5640_v31  ;;  %v5576_v30 = vor.u32 %v8056_v19, %v5573_v23  ;;  %v5704_v31 = vor.u32 %v8088_v24, %v5701_v25  ;;  %v6021_v19 = vld [vmem:[#allocation2 + $0x4f8] sm:$0xf0]  ;;  %v8232_v23 = vld [vmem:[#allocation2 + $0x6ec] sm:$0xf]  ;;  %v5528_v25 = vor.u32 %v8044_v5, %v5525_v6 }
  0xda   :  { %1998 = vmatpush.bf16.msra.mxu2 %v5768_v32  ;;  %1967 = vmatmul.bf16.vlgmr.msrb.gmra.mxu3 %v8935_v38  ;;  %v8020_v32 = vld [vmem:[#allocation2 + $0x4c] sm:$0xf]  ;;  %v6277_v24 = vld [vmem:[#allocation2 + $0x6f8] sm:$0xf0] }
  0xdb   :  { %2011 = vmatpush.bf16.msra.mxu3 %v5896_v41  ;;  %1954 = vmatmul.bf16.vlgmr.msrb.gmra.mxu2 %v8931_v34  ;;  %v8084_v41 = vld [vmem:[#allocation2 + $0x24c] sm:$0xf]  ;;  %v6101_v2 = vld [vmem:[#allocation2 + $0x598] sm:$0xf0] }
  0xdc   :  { %v5688_v51 = vor.u32 %v8084_v41, %v5685_v42  ;;  %v8264_v27 = vld [vmem:[#allocation2 + $0x7ec] sm:$0xf]  ;;  %v6261_v42 = vld [vmem:[#allocation2 + $0x6d8] sm:$0xf0] }
  0xdd   :  { %1973 = vmatpush.bf16.msra.mxu0 %v5496_v47  ;;  %1986 = vmatpush.bf16.msra.mxu1 %v5624_v48  ;;  %v1760_v44 = vpop.f32.mrf.mxu3  ;;  %v5432_v47 = vor.u32 %v8020_v32, %v5429_v33  ;;  %v1736_v55 = vpop.f32.mrf.mxu1  ;;  %v6280_v32 = vor.u32 %v8232_v23, %v6277_v24  ;;  %v8164_v33 = vld [vmem:[#allocation2 + $0x4cc] sm:$0xf] }
  0xde   :  { %1999 = vmatpush.bf16.msra.mxu2 %v5752_v49  ;;  %v1747_v36 = vpop.f32.mrf.mxu2  ;;  %v1723_v49 = vpop.f32.mrf.mxu0  ;;  %v8228_v41 = vld [vmem:[#allocation2 + $0x6cc] sm:$0xf]  ;;  %v6008_v45 = vor.u32 %v8164_v33, %v6005_v35  ;;  %v6245_v55 = vld [vmem:[#allocation2 + $0x6b8] sm:$0xf0] }
  0xdf   :  { %2012 = vmatpush.bf16.msra.mxu3 %v5880_v53  ;;  %v1748_v43 = vadd.f32 %v1747_v36, %v1735_v28  ;;  %v5413_v53 = vld [vmem:[#allocation2 + $0x38] sm:$0xf0]  ;;  %v8196_v36 = vld [vmem:[#allocation2 + $0x5cc] sm:$0xf] }
  0xe0   :  { %v5416_v62 = vor.u32 %v8016_v52, %v5413_v53  ;;  %v6405_v28 = vld [vmem:[#allocation2 + $0x7f8] sm:$0xf0]  ;;  %v6136_v46 = vor.u32 %v8196_v36, %v6133_v39  ;;  %v8160_v49 = vld [vmem:[#allocation2 + $0x4ac] sm:$0xf] }
  0xe1   :  { %1974 = vmatpush.bf16.msra.mxu0 %v5480_v59  ;;  %1987 = vmatpush.bf16.msra.mxu1 %v5608_v60  ;;  %v8968_v48 = vadd.f32 %v1760_v44, %v1748_v43  ;;  %v5669_v59 = vld [vmem:[#allocation2 + $0x238] sm:$0xf0]  ;;  %v8112_v60 = vld [vmem:[#allocation2 + $0x32c] sm:$0xf] }
  0xe2   :  { %2000 = vmatpush.bf16.msra.mxu2 %v5736_v61  ;;  %v5797_v61 = vld [vmem:[#allocation2 + $0x338] sm:$0xf0]  ;;  %v5672_v4 = vor.u32 %v8080_v58, %v5669_v59  ;;  %v8260_v43 = vld [vmem:[#allocation2 + $0x7cc] sm:$0xf] }
  0xe3   :  { %2013 = vmatpush.bf16.msra.mxu3 %v5864_v3  ;;  %v5544_v3 = vor.u32 %v8048_v54, %v5541_v57  ;;  %v6389_v44 = vld [vmem:[#allocation2 + $0x7d8] sm:$0xf0]  ;;  %v8224_v54 = vld [vmem:[#allocation2 + $0x6ac] sm:$0xf] }
  0xe4   :  { %v6392_v52 = vor.u32 %v8260_v43, %v6389_v44  ;;  %v6117_v53 = vld [vmem:[#allocation2 + $0x5b8] sm:$0xf0]  ;;  %v8252_v5 = vld [vmem:[#allocation2 + $0x78c] sm:$0xf] }
  0xe5   :  { %1975 = vmatpush.bf16.msra.mxu0 %v5464_v11  ;;  %1988 = vmatpush.bf16.msra.mxu1 %v5592_v13  ;;  %v5800_v11 = vor.u32 %v8112_v60, %v5797_v61  ;;  %v8108_v13 = vld [vmem:[#allocation2 + $0x30c] sm:$0xf]  ;;  %v1762_v15 = vpop.f32.mrf.mxu3  ;;  %v6373_v57 = vld [vmem:[#allocation2 + $0x7b8] sm:$0xf0]  ;;  %v6248_v60 = vor.u32 %v8224_v54, %v6245_v55  ;;  %v373_v54 = vperm.slane %v8958_v7, 1 }
  0xe6   :  { %2001 = vmatpush.bf16.msra.mxu2 %v5720_v14  ;;  %v1749_v10 = vpop.f32.mrf.mxu2  ;;  %v5781_v14 = vld [vmem:[#allocation2 + $0x318] sm:$0xf0]  ;;  %v8156_v61 = vld [vmem:[#allocation2 + $0x48c] sm:$0xf] }
  0xe7   :  { %2014 = vmatpush.bf16.msra.mxu3 %v5848_v22  ;;  %v6149_v22 = vld [vmem:[#allocation2 + $0x5f8] sm:$0xf0]  ;;  %v8152_v10 = vld [vmem:[#allocation2 + $0x46c] sm:$0xf] }
  0xe8   :  { %v8184_v12 = vld [vmem:[#allocation2 + $0x56c] sm:$0xf]  ;;  %v6085_v15 = vld [vmem:[#allocation2 + $0x578] sm:$0xf0] }
  0xe9   :  { %1976 = vmatpush.bf16.msra.mxu0 %v5448_v29  ;;  %1989 = vmatpush.bf16.msra.mxu1 %v5576_v30  ;;  %v5784_v29 = vor.u32 %v8108_v13, %v5781_v14  ;;  %v6024_v30 = vor.u32 %v8168_v18, %v6021_v19  ;;  %v8216_v18 = vld [vmem:[#allocation2 + $0x66c] sm:$0xf]  ;;  %v6213_v19 = vld [vmem:[#allocation2 + $0x678] sm:$0xf0]  ;;  %v6088_v23 = vor.u32 %v8184_v12, %v6085_v15 }
  0xea   :  { %2002 = vmatpush.bf16.msra.mxu2 %v5704_v31  ;;  %v6152_v31 = vor.u32 %v8200_v20, %v6149_v22  ;;  %v8248_v20 = vld [vmem:[#allocation2 + $0x76c] sm:$0xf]  ;;  %v6216_v24 = vor.u32 %v8216_v18, %v6213_v19  ;;  %v6325_v36 = vld [vmem:[#allocation2 + $0x758] sm:$0xf0] }
  0xeb   :  { %2015 = vmatpush.bf16.msra.mxu3 %v5832_v1  ;;  %v6408_v1 = vor.u32 %v8264_v27, %v6405_v28  ;;  %v8180_v27 = vld [vmem:[#allocation2 + $0x54c] sm:$0xf]  ;;  %v5925_v44 = vld [vmem:[#allocation2 + $0x438] sm:$0xf0] }
  0xec   :  { %v8244_v35 = vld [vmem:[#allocation2 + $0x74c] sm:$0xf] }
  0xed   :  { %1977 = vmatpush.bf16.msra.mxu0 %v5432_v47  ;;  %1990 = vmatpush.bf16.msra.mxu1 %v5560_v50  ;;  %v6264_v47 = vor.u32 %v8228_v41, %v6261_v42  ;;  %v5989_v50 = vld [vmem:[#allocation2 + $0x4b8] sm:$0xf0]  ;;  %v8144_v43 = vld [vmem:[#allocation2 + $0x42c] sm:$0xf] }
  0xee   :  { %2003 = vmatpush.bf16.msra.mxu2 %v5688_v51  ;;  %v8192_v51 = vld [vmem:[#allocation2 + $0x5ac] sm:$0xf]  ;;  %v5992_v58 = vor.u32 %v8160_v49, %v5989_v50  ;;  %v6053_v49 = vld [vmem:[#allocation2 + $0x538] sm:$0xf0]  ;;  %v5928_v55 = vor.u32 %v8144_v43, %v5925_v44  ;;  %v6435_v43 = vld [vmem:[#allocation4 + $0x30] sm:$0xf] }
  0xef   :  { %2016 = vmatpush.bf16.msra.mxu3 %v5816_v56  ;;  %v8256_v56 = vld [vmem:[#allocation2 + $0x7ac] sm:$0xf]  ;;  %v6120_v59 = vor.u32 %v8192_v51, %v6117_v53  ;;  %v6181_v51 = vld [vmem:[#allocation2 + $0x638] sm:$0xf0] }
  0xf0   :  { %v6376_v0 = vor.u32 %v8256_v56, %v6373_v57  ;;  %v8208_v50 = vld [vmem:[#allocation2 + $0x62c] sm:$0xf]  ;;  %v6309_v53 = vld [vmem:[#allocation2 + $0x738] sm:$0xf0] }
  0xf1   :  { %1978 = vmatpush.bf16.msra.mxu0 %v5416_v62  ;;  %1991 = vmatpush.bf16.msra.mxu1 %v5544_v3  ;;  %v5973_v62 = vld [vmem:[#allocation2 + $0x498] sm:$0xf0]  ;;  %v8220_v3 = vld [vmem:[#allocation2 + $0x68c] sm:$0xf] }
  0xf2   :  { %2004 = vmatpush.bf16.msra.mxu2 %v5672_v4  ;;  %v6229_v4 = vld [vmem:[#allocation2 + $0x698] sm:$0xf0]  ;;  %v8140_v56 = vld [vmem:[#allocation2 + $0x40c] sm:$0xf] }
  0xf3   :  { %2017 = vmatpush.bf16.msra.mxu3 %v5800_v11  ;;  %v6232_v8 = vor.u32 %v8220_v3, %v6229_v4  ;;  %v5957_v11 = vld [vmem:[#allocation2 + $0x478] sm:$0xf0]  ;;  %v8236_v3 = vld [vmem:[#allocation2 + $0x70c] sm:$0xf] }
  0xf4   :  { %v5960_v22 = vor.u32 %v8152_v10, %v5957_v11  ;;  %v8298_v10 = vld [vmem:[#allocation4 + $0xf4] sm:$0xf0] }
  0xf5   :  { %1979 = vmatpush.bf16.msra.mxu0 %v5400_v21  ;;  %1992 = vmatpush.bf16.msra.mxu1 %v5528_v25  ;;  %v8974_v6 = vpop.f32.mrf.mxu0  ;;  %v8976_v13 = vpop.f32.mrf.mxu1  ;;  %v6341_v21 = vld [vmem:[#allocation2 + $0x778] sm:$0xf0]  ;;  %v8148_v25 = vld [vmem:[#allocation2 + $0x44c] sm:$0xf] }
  0xf6   :  { %2005 = vmatpush.bf16.msra.mxu2 %v5656_v26  ;;  %v5941_v26 = vld [vmem:[#allocation2 + $0x458] sm:$0xf0]  ;;  %v1774_v7 = vadd.f32 %v8974_v6, %v373_v54  ;;  %v6523_v6 = vld [vmem:[#allocation4 + $0xe0] sm:$0xf] }
  0xf7   :  { %2018 = vmatpush.bf16.msra.mxu3 %v5784_v29  ;;  %v6344_v29 = vor.u32 %v8248_v20, %v6341_v21  ;;  %v6459_v20 = vld [vmem:[#allocation4 + $0x60] sm:$0xf]  ;;  %v8280_v21 = vld [vmem:[#allocation4 + $0x64] sm:$0xf0] }
  0xf8   :  { %1980 = vmatmul.bf16.vlgmr.msra.gmra.mxu0 %v8904_v9  ;;  %1993 = vmatmul.bf16.vlgmr.msra.gmra.mxu1 %v8914_v17  ;;  %v6357_v9 = vld [vmem:[#allocation2 + $0x798] sm:$0xf0]  ;;  %v1787_v19 = vadd.f32 %v8976_v13, %v1774_v7  ;;  %v6515_v13 = vld [vmem:[#allocation4 + $0xd0] sm:$0xf]  ;;  %v6427_v54 = vld [vmem:[#allocation4 + $0x20] sm:$0xf] }
  0xf9   :  { %2024 = vmatpush.bf16.msrb.mxu0 %v6024_v30  ;;  %2037 = vmatpush.bf16.msrb.mxu1 %v6152_v31  ;;  %v6360_v14 = vor.u32 %v8252_v5, %v6357_v9  ;;  %v6069_v30 = vld [vmem:[#allocation2 + $0x558] sm:$0xf0]  ;;  %v8212_v31 = vld [vmem:[#allocation2 + $0x64c] sm:$0xf]  ;;  %v6467_v9 = vld [vmem:[#allocation4 + $0x70] sm:$0xf] }
  0xfa   :  { %2050 = vmatpush.bf16.msrb.mxu2 %v6280_v32  ;;  %2019 = vmatmul.bf16.vlgmr.msra.gmra.mxu3 %v8912_v16  ;;  %v5976_v16 = vor.u32 %v8156_v61, %v5973_v62  ;;  %v6197_v32 = vld [vmem:[#allocation2 + $0x658] sm:$0xf0]  ;;  %v6072_v41 = vor.u32 %v8180_v27, %v6069_v30  ;;  %v8278_v27 = vld [vmem:[#allocation4 + $0x54] sm:$0xf0] }
  0xfb   :  { %2063 = vmatpush.bf16.msrb.mxu3 %v6408_v1  ;;  %2006 = vmatmul.bf16.vlgmr.msra.gmra.mxu2 %v8898_v63  ;;  %v8188_v63 = vld [vmem:[#allocation2 + $0x58c] sm:$0xf]  ;;  %v5944_v1 = vor.u32 %v8148_v25, %v5941_v26  ;;  %v6200_v42 = vor.u32 %v8212_v31, %v6197_v32  ;;  %v6037_v61 = vld [vmem:[#allocation2 + $0x518] sm:$0xf0]  ;;  %v6451_v26 = vld [vmem:[#allocation4 + $0x50] sm:$0xf] }
  0xfc   :  { %v6104_v17 = vor.u32 %v8188_v63, %v6101_v2  ;;  %v6165_v2 = vld [vmem:[#allocation2 + $0x618] sm:$0xf0]  ;;  %v6452_v30 = vor.u32 %v8278_v27, %v6451_v26  ;;  %v8297_v26 = vld [vmem:[#allocation4 + $0xf4] sm:$0xf] }
  0xfd   :  { %2025 = vmatpush.bf16.msrb.mxu0 %v6008_v45  ;;  %2038 = vmatpush.bf16.msrb.mxu1 %v6136_v46  ;;  %v8980_v33 = vpop.f32.mrf.mxu3  ;;  %v1775_v39 = vpop.f32.mrf.mxu0  ;;  %v8176_v45 = vld [vmem:[#allocation2 + $0x52c] sm:$0xf]  ;;  %v6293_v5 = vld [vmem:[#allocation2 + $0x718] sm:$0xf0] }
  0xfe   :  { %2051 = vmatpush.bf16.msrb.mxu2 %v6264_v47  ;;  %v8978_v28 = vpop.f32.mrf.mxu2  ;;  %v1788_v46 = vpop.f32.mrf.mxu1  ;;  %v6328_v47 = vor.u32 %v8244_v35, %v6325_v36  ;;  %v6056_v57 = vor.u32 %v8176_v45, %v6053_v49  ;;  %v8276_v35 = vld [vmem:[#allocation4 + $0x44] sm:$0xf0]  ;;  %v6533_v27 = vld [vmem:[#allocation4 + $0xf8] sm:$0xf0] }
  0xff   :  { %2064 = vmatpush.bf16.msrb.mxu3 %v6392_v52  ;;  %v8240_v52 = vld [vmem:[#allocation2 + $0x72c] sm:$0xf]  ;;  %v8292_v36 = vld [vmem:[#allocation4 + $0xc4] sm:$0xf0]  ;;  %v6499_v46 = vld [vmem:[#allocation4 + $0xb0] sm:$0xf] }
 0x100   :  { %v6312_v63 = vor.u32 %v8240_v52, %v6309_v53 }
 0x101   :  { %2026 = vmatpush.bf16.msrb.mxu0 %v5992_v58  ;;  %2039 = vmatpush.bf16.msrb.mxu1 %v6120_v59  ;;  %v6184_v58 = vor.u32 %v8208_v50, %v6181_v51  ;;  %v5909_v59 = vld [vmem:[#allocation2 + $0x418] sm:$0xf0]  ;;  %v6587_v50 = vld [vmem:[#allocation4 + $0x160] sm:$0xf]  ;;  %v8312_v51 = vld [vmem:[#allocation4 + $0x164] sm:$0xf0] }
 0x102   :  { %2052 = vmatpush.bf16.msrb.mxu2 %v6248_v60  ;;  %v8172_v60 = vld [vmem:[#allocation2 + $0x50c] sm:$0xf] }
 0x103   :  { %2065 = vmatpush.bf16.msrb.mxu3 %v6376_v0  ;;  %v8204_v0 = vld [vmem:[#allocation2 + $0x60c] sm:$0xf]  ;;  %v6040_v11 = vor.u32 %v8172_v60, %v6037_v61 }
 0x104   :  { %v6168_v12 = vor.u32 %v8204_v0, %v6165_v2  ;;  %v6579_v0 = vld [vmem:[#allocation4 + $0x150] sm:$0xf]  ;;  %v8310_v2 = vld [vmem:[#allocation4 + $0x154] sm:$0xf0] }
 0x105   :  { %2027 = vmatpush.bf16.msrb.mxu0 %v5976_v16  ;;  %2040 = vmatpush.bf16.msrb.mxu1 %v6104_v17  ;;  %v1814_v4 = vpop.f32.mrf.mxu3  ;;  %v8282_v16 = vld [vmem:[#allocation4 + $0x74] sm:$0xf0]  ;;  %v5912_v17 = vor.u32 %v8140_v56, %v5909_v59  ;;  %v6588_v56 = vor.u32 %v8312_v51, %v6587_v50  ;;  %v8288_v59 = vld [vmem:[#allocation4 + $0xa4] sm:$0xf0]  ;;  %v8293_v50 = vld [vmem:[#allocation4 + $0xd4] sm:$0xf] }
 0x106   :  { %2053 = vmatpush.bf16.msrb.mxu2 %v6232_v8  ;;  %v1801_v62 = vpop.f32.mrf.mxu2  ;;  %v6531_v8 = vld [vmem:[#allocation4 + $0xf0] sm:$0xf]  ;;  %v6468_v15 = vor.u32 %v8282_v16, %v6467_v9  ;;  %v6580_v9 = vor.u32 %v8310_v2, %v6579_v0  ;;  %v6517_v51 = vld [vmem:[#allocation4 + $0xd8] sm:$0xf0] }
 0x107   :  { %2066 = vmatpush.bf16.msrb.mxu3 %v6360_v14  ;;  %v6296_v14 = vor.u32 %v8236_v3, %v6293_v5  ;;  %v6532_v18 = vor.u32 %v8298_v10, %v6531_v8  ;;  %v6419_v4 = vld [vmem:[#allocation4 + $0x10] sm:$0xf]  ;;  %v8270_v5 = vld [vmem:[#allocation4 + $0x14] sm:$0xf0]  ;;  %v2076_v8 = vmul.f32 0.01, %v8968_v48 }
 0x108   :  { %v6483_v16 = vld [vmem:[#allocation4 + $0x90] sm:$0xf]  ;;  %v6597_v0 = vld [vmem:[#allocation4 + $0x178] sm:$0xf0] }
 0x109   :  { %2028 = vmatpush.bf16.msrb.mxu0 %v5960_v22  ;;  %2041 = vmatpush.bf16.msrb.mxu1 %v6088_v23  ;;  %v8296_v22 = vld [vmem:[#allocation4 + $0xe4] sm:$0xf0]  ;;  %v6460_v23 = vor.u32 %v8280_v21, %v6459_v20  ;;  %v6475_v20 = vld [vmem:[#allocation4 + $0x80] sm:$0xf] }
 0x10a   :  { %2054 = vmatpush.bf16.msrb.mxu2 %v6216_v24  ;;  %v1800_v24 = vadd.f32 %v8978_v28, %v1787_v19  ;;  %v6524_v25 = vor.u32 %v8296_v22, %v6523_v6  ;;  %v6507_v28 = vld [vmem:[#allocation4 + $0xc0] sm:$0xf]  ;;  %v8268_v19 = vld [vmem:[#allocation4 + $0x4] sm:$0xf0] }
 0x10b   :  { %2067 = vmatpush.bf16.msrb.mxu3 %v6344_v29  ;;  %v8294_v29 = vld [vmem:[#allocation4 + $0xd4] sm:$0xf0]  ;;  %v8284_v22 = vld [vmem:[#allocation4 + $0x84] sm:$0xf0] }
 0x10c   :  { %v1813_v31 = vadd.f32 %v8980_v33, %v1800_v24  ;;  %v6516_v32 = vor.u32 %v8294_v29, %v6515_v13  ;;  %v6469_v24 = vld [vmem:[#allocation4 + $0x78] sm:$0xf0] }
 0x10d   :  { %2029 = vmatpush.bf16.msrb.mxu0 %v5944_v1  ;;  %2042 = vmatpush.bf16.msrb.mxu1 %v6072_v41  ;;  %v8314_v41 = vld [vmem:[#allocation4 + $0x174] sm:$0xf0] }
 0x10e   :  { %2055 = vmatpush.bf16.msrb.mxu2 %v6200_v42 }
 0x10f   :  { %2068 = vmatpush.bf16.msrb.mxu3 %v6328_v47  ;;  %v8290_v47 = vld [vmem:[#allocation4 + $0xb4] sm:$0xf0] }
 0x110   :  { %v6500_v52 = vor.u32 %v8290_v47, %v6499_v46  ;;  %v8302_v46 = vld [vmem:[#allocation4 + $0x114] sm:$0xf0] }
 0x111   :  { %2030 = vmatpush.bf16.msrb.mxu0 %v5928_v55  ;;  %2043 = vmatpush.bf16.msrb.mxu1 %v6056_v57  ;;  %v8272_v55 = vld [vmem:[#allocation4 + $0x24] sm:$0xf0] }
 0x112   :  { %2056 = vmatpush.bf16.msrb.mxu2 %v6184_v58  ;;  %v6491_v58 = vld [vmem:[#allocation4 + $0xa0] sm:$0xf]  ;;  %v6428_v61 = vor.u32 %v8272_v55, %v6427_v54  ;;  %v8300_v54 = vld [vmem:[#allocation4 + $0x104] sm:$0xf0] }
 0x113   :  { %2069 = vmatpush.bf16.msrb.mxu3 %v6312_v63  ;;  %v6492_v3 = vor.u32 %v8288_v59, %v6491_v58  ;;  %v6445_v58 = vld [vmem:[#allocation4 + $0x48] sm:$0xf0]  ;;  %v8291_v59 = vld [vmem:[#allocation4 + $0xc4] sm:$0xf] }
 0x115   :  { %2031 = vmatpush.bf16.msrb.mxu0 %v5912_v17  ;;  %2044 = vmatpush.bf16.msrb.mxu1 %v6040_v11  ;;  %v1825_v39 = vpop.f32.mrf.mxu0  ;;  %v1838_v44 = vpop.f32.mrf.mxu1  ;;  %v8286_v17 = vld [vmem:[#allocation4 + $0x94] sm:$0xf0]  ;;  %v6420_v11 = vor.u32 %v8270_v5, %v6419_v4  ;;  %v6437_v4 = vld [vmem:[#allocation4 + $0x38] sm:$0xf0] }
 0x116   :  { %2057 = vmatpush.bf16.msrb.mxu2 %v6168_v12  ;;  %v1826_v42 = vadd.f32 %v1825_v39, %v1813_v31  ;;  %v6571_v12 = vld [vmem:[#allocation4 + $0x140] sm:$0xf]  ;;  %v8306_v31 = vld [vmem:[#allocation4 + $0x134] sm:$0xf0]  ;;  %v6461_v39 = vld [vmem:[#allocation4 + $0x68] sm:$0xf0] }
 0x117   :  { %2070 = vmatpush.bf16.msrb.mxu3 %v6296_v14  ;;  %v8308_v14 = vld [vmem:[#allocation4 + $0x144] sm:$0xf0] }
 0x118   :  { %2032 = vmatmul.bf16.vlgmr.msrb.gmra.mxu0 %v8933_v37  ;;  %2045 = vmatmul.bf16.vlgmr.msrb.gmra.mxu1 %v8937_v40  ;;  %v6443_v37 = vld [vmem:[#allocation4 + $0x40] sm:$0xf]  ;;  %v6595_v40 = vld [vmem:[#allocation4 + $0x170] sm:$0xf]  ;;  %v1839_v33 = vadd.f32 %v1838_v44, %v1826_v42  ;;  %v6572_v6 = vor.u32 %v8308_v14, %v6571_v12  ;;  %v8271_v14 = vld [vmem:[#allocation4 + $0x24] sm:$0xf] }
 0x119   :  { %2478 = vmatpush.bf16.msra.mxu0 %v6468_v15  ;;  %2491 = vmatpush.bf16.msra.mxu1 %v6532_v18  ;;  %v6444_v1 = vor.u32 %v8276_v35, %v6443_v37  ;;  %v6596_v45 = vor.u32 %v8314_v41, %v6595_v40  ;;  %v6484_v15 = vor.u32 %v8286_v17, %v6483_v16  ;;  %v6411_v18 = vld [vmem:[#allocation4] sm:$0xf]  ;;  %v8295_v40 = vld [vmem:[#allocation4 + $0xe4] sm:$0xf]  ;;  %v6525_v41 = vld [vmem:[#allocation4 + $0xe8] sm:$0xf0] }
 0x11a   :  { %2058 = vmatmul.bf16.vlgmr.msrb.gmra.mxu2 %v8931_v34  ;;  %2071 = vmatmul.bf16.vlgmr.msrb.gmra.mxu3 %v8935_v38  ;;  %v6508_v34 = vor.u32 %v8292_v36, %v6507_v28  ;;  %v8274_v38 = vld [vmem:[#allocation4 + $0x34] sm:$0xf0]  ;;  %v6412_v29 = vor.u32 %v8268_v19, %v6411_v18  ;;  %v6476_v37 = vor.u32 %v8284_v22, %v6475_v20  ;;  %v6555_v42 = vld [vmem:[#allocation4 + $0x120] sm:$0xf]  ;;  %v6501_v16 = vld [vmem:[#allocation4 + $0xb8] sm:$0xf0] }
 0x11b   :  { %2504 = vmatpush.bf16.msra.mxu2 %v6596_v45  ;;  %v6436_v49 = vor.u32 %v8274_v38, %v6435_v43  ;;  %v6536_v36 = vor.u32 %v8297_v26, %v6533_v27  ;;  %v8304_v43 = vld [vmem:[#allocation4 + $0x124] sm:$0xf0]  ;;  %v6547_v45 = vld [vmem:[#allocation4 + $0x110] sm:$0xf]  ;;  %v6528_v47 = vor.u32 %v8295_v40, %v6525_v41  ;;  %v8287_v19 = vld [vmem:[#allocation4 + $0xa4] sm:$0xf] }
 0x11c   :  { %v6556_v44 = vor.u32 %v8304_v43, %v6555_v42  ;;  %v6493_v20 = vld [vmem:[#allocation4 + $0xa8] sm:$0xf0]  ;;  %v8269_v26 = vld [vmem:[#allocation4 + $0x14] sm:$0xf]  ;;  %v6421_v27 = vld [vmem:[#allocation4 + $0x18] sm:$0xf0] }
 0x11d   :  { %2479 = vmatpush.bf16.msra.mxu0 %v6460_v23  ;;  %2492 = vmatpush.bf16.msra.mxu1 %v6524_v25  ;;  %v1864_v60 = vpop.f32.mrf.mxu3  ;;  %v1827_v63 = vpop.f32.mrf.mxu0  ;;  %v8281_v23 = vld [vmem:[#allocation4 + $0x74] sm:$0xf]  ;;  %v8267_v40 = vld [vmem:[#allocation4 + $0x4] sm:$0xf]  ;;  %v6413_v41 = vld [vmem:[#allocation4 + $0x8] sm:$0xf0] }
 0x11e   :  { %v1851_v53 = vpop.f32.mrf.mxu2  ;;  %v1840_v7 = vpop.f32.mrf.mxu1  ;;  %v6472_v35 = vor.u32 %v8281_v23, %v6469_v24  ;;  %v8313_v63 = vld [vmem:[#allocation4 + $0x174] sm:$0xf]  ;;  %v6581_v24 = vld [vmem:[#allocation4 + $0x158] sm:$0xf0]  ;;  %v8283_v43 = vld [vmem:[#allocation4 + $0x84] sm:$0xf] }
 0x11f   :  { %v1852_v57 = vadd.f32 %v1851_v53, %v1839_v33  ;;  %2505 = vmatpush.bf16.msra.mxu2 %v6588_v56  ;;  %v8277_v33 = vld [vmem:[#allocation4 + $0x54] sm:$0xf]  ;;  %v6539_v53 = vld [vmem:[#allocation4 + $0x100] sm:$0xf]  ;;  %v6520_v56 = vor.u32 %v8293_v50, %v6517_v51  ;;  %v6600_v7 = vor.u32 %v8313_v63, %v6597_v0  ;;  %v8303_v51 = vld [vmem:[#allocation4 + $0x124] sm:$0xf] }
 0x120   :  { %v8309_v23 = vld [vmem:[#allocation4 + $0x154] sm:$0xf]  ;;  %v8299_v63 = vld [vmem:[#allocation4 + $0x104] sm:$0xf]  ;;  %v6541_v0 = vld [vmem:[#allocation4 + $0x108] sm:$0xf0] }
 0x121   :  { %2480 = vmatpush.bf16.msra.mxu0 %v6452_v30  ;;  %2493 = vmatpush.bf16.msra.mxu1 %v6516_v32  ;;  %v1865_v62 = vadd.f32 %v1864_v60, %v1852_v57  ;;  %v6563_v30 = vld [vmem:[#allocation4 + $0x130] sm:$0xf]  ;;  %v2080_v32 = vmax.f32 %v8968_v48, %v2076_v8  ;;  %v8275_v57 = vld [vmem:[#allocation4 + $0x44] sm:$0xf]  ;;  %v6509_v60 = vld [vmem:[#allocation4 + $0xc8] sm:$0xf0] }
 0x122   :  { %v6564_v28 = vor.u32 %v8306_v31, %v6563_v30  ;;  %v6512_v2 = vor.u32 %v8291_v59, %v6509_v60  ;;  %v8285_v30 = vld [vmem:[#allocation4 + $0x94] sm:$0xf]  ;;  %v6485_v31 = vld [vmem:[#allocation4 + $0x98] sm:$0xf0] }
 0x123   :  { %2506 = vmatpush.bf16.msra.mxu2 %v6580_v9  ;;  %v2077_v10 = vmul.f32 0.01, %v1865_v62  ;;  %v8995_v38 = vpack.c.bf16 %v2080_v32, %v2080_v32  ;;  %v8289_v9 = vld [vmem:[#allocation4 + $0xb4] sm:$0xf]  ;;  %v6549_v60 = vld [vmem:[#allocation4 + $0x118] sm:$0xf0] }
 0x124   :  { %v6504_v12 = vor.u32 %v8289_v9, %v6501_v16  ;;  %v8301_v59 = vld [vmem:[#allocation4 + $0x114] sm:$0xf] }
 0x125   :  { %2481 = vmatpush.bf16.msra.mxu0 %v6444_v1  ;;  %2494 = vmatpush.bf16.msra.mxu1 %v6508_v34  ;;  %v1866_v25 = vpop.f32.mrf.mxu3  ;;  %v2081_v13 = vmax.f32 %v1865_v62, %v2077_v10  ;;  %v8279_v1 = vld [vmem:[#allocation4 + $0x64] sm:$0xf]  ;;  %v6448_v62 = vor.u32 %v8275_v57, %v6445_v58 }
 0x126   :  { %v1853_v21 = vpop.f32.mrf.mxu2  ;;  %v6464_v48 = vor.u32 %v8279_v1, %v6461_v39  ;;  %v8311_v10 = vld [vmem:[#allocation4 + $0x164] sm:$0xf]  ;;  %v6496_v25 = vor.u32 %v8287_v19, %v6493_v20  ;;  %v6573_v1 = vld [vmem:[#allocation4 + $0x148] sm:$0xf0]  ;;  %v6488_v39 = vor.u32 %v8285_v30, %v6485_v31 }
 0x127   :  { %2507 = vmatpush.bf16.msra.mxu2 %v6572_v6  ;;  %v8993_v34 = vpack.c.bf16 %v2081_v13, %v2081_v13 }
 0x129   :  { %2482 = vmatpush.bf16.msra.mxu0 %v6436_v49  ;;  %2495 = vmatpush.bf16.msra.mxu1 %v6500_v52  ;;  %v6453_v49 = vld [vmem:[#allocation4 + $0x58] sm:$0xf0]  ;;  %v6548_v52 = vor.u32 %v8302_v46, %v6547_v45  ;;  %v8305_v46 = vld [vmem:[#allocation4 + $0x134] sm:$0xf] }
 0x12a   :  { %v6456_v55 = vor.u32 %v8277_v33, %v6453_v49  ;;  %v6416_v49 = vor.u32 %v8267_v40, %v6413_v41  ;;  %v8329_v41 = vld [vmem:[#allocation4 + $0x1f4] sm:$0xf] }
 0x12b   :  { %2508 = vmatpush.bf16.msra.mxu2 %v6564_v28 }
 0x12d   :  { %2483 = vmatpush.bf16.msra.mxu0 %v6428_v61  ;;  %2496 = vmatpush.bf16.msra.mxu1 %v6492_v3  ;;  %v6540_v61 = vor.u32 %v8300_v54, %v6539_v53  ;;  %v8273_v3 = vld [vmem:[#allocation4 + $0x34] sm:$0xf]  ;;  %v6659_v54 = vld [vmem:[#allocation4 + $0x1f0] sm:$0xf] }
 0x12e   :  { %v6440_v8 = vor.u32 %v8273_v3, %v6437_v4 }
 0x12f   :  { %2509 = vmatpush.bf16.msra.mxu2 %v6556_v44 }
 0x131   :  { %2484 = vmatpush.bf16.msra.mxu0 %v6420_v11  ;;  %2497 = vmatpush.bf16.msra.mxu1 %v6484_v15  ;;  %v6589_v11 = vld [vmem:[#allocation4 + $0x168] sm:$0xf0] }
 0x132   :  { %v6429_v15 = vld [vmem:[#allocation4 + $0x28] sm:$0xf0]  ;;  %v6592_v18 = vor.u32 %v8311_v10, %v6589_v11  ;;  %v8326_v10 = vld [vmem:[#allocation4 + $0x1d4] sm:$0xf0] }
 0x133   :  { %2510 = vmatpush.bf16.msra.mxu2 %v6548_v52  ;;  %v6432_v22 = vor.u32 %v8271_v14, %v6429_v15  ;;  %v6557_v52 = vld [vmem:[#allocation4 + $0x128] sm:$0xf0]  ;;  %v6635_v15 = vld [vmem:[#allocation4 + $0x1c0] sm:$0xf] }
 0x135   :  { %2485 = vmatpush.bf16.msra.mxu0 %v6412_v29  ;;  %2498 = vmatpush.bf16.msra.mxu1 %v6476_v37  ;;  %v1877_v5 = vpop.f32.mrf.mxu0  ;;  %v1890_v17 = vpop.f32.mrf.mxu1  ;;  %v6584_v29 = vor.u32 %v8309_v23, %v6581_v24  ;;  %v6424_v37 = vor.u32 %v8269_v26, %v6421_v27  ;;  %v6619_v27 = vld [vmem:[#allocation4 + $0x1a0] sm:$0xf] }
 0x137   :  { %2511 = vmatpush.bf16.msra.mxu2 %v6540_v61  ;;  %v6552_v61 = vor.u32 %v8301_v59, %v6549_v60  ;;  %v8321_v60 = vld [vmem:[#allocation4 + $0x1b4] sm:$0xf] }
 0x138   :  { %2486 = vmatmul.bf16.vlgmr.msra.gmra.mxu0 %v8995_v38  ;;  %2499 = vmatmul.bf16.vlgmr.msra.gmra.mxu1 %v8993_v34 }
 0x139   :  { %2530 = vmatpush.bf16.msrb.mxu0 %v6472_v35  ;;  %2543 = vmatpush.bf16.msrb.mxu1 %v6536_v36  ;;  %v9002_v35 = vld [vmem:[%s9205_s8] sm:$0xf]  ;;  %v8307_v36 = vld [vmem:[#allocation4 + $0x144] sm:$0xf] }
 0x13a   :  { %v374_v28 = vperm.slane %v9002_v35, 2  ;;  %v6576_v42 = vor.u32 %v8307_v36, %v6573_v1  ;;  %v6603_v1 = vld [vmem:[#allocation4 + $0x180] sm:$0xf] }
 0x13b   :  { %2556 = vmatpush.bf16.msrb.mxu2 %v6600_v7  ;;  %v8328_v7 = vld [vmem:[#allocation4 + $0x1e4] sm:$0xf0] }
 0x13c   :  { %v1878_v33 = vadd.f32 %v1877_v5, %v374_v28  ;;  %v6651_v5 = vld [vmem:[#allocation4 + $0x1e0] sm:$0xf]  ;;  %v8318_v28 = vld [vmem:[#allocation4 + $0x194] sm:$0xf0] }
 0x13d   :  { %2531 = vmatpush.bf16.msrb.mxu0 %v6464_v48  ;;  %2544 = vmatpush.bf16.msrb.mxu1 %v6528_v47  ;;  %v1916_v6 = vpop.f32.mrf.mxu3  ;;  %v1879_v13 = vpop.f32.mrf.mxu0  ;;  %v6477_v48 = vld [vmem:[#allocation4 + $0x88] sm:$0xf0]  ;;  %v6565_v47 = vld [vmem:[#allocation4 + $0x138] sm:$0xf0] }
 0x13e   :  { %v1903_v21 = vpop.f32.mrf.mxu2  ;;  %v1892_v32 = vpop.f32.mrf.mxu1  ;;  %v6568_v50 = vor.u32 %v8305_v46, %v6565_v47  ;;  %v6480_v53 = vor.u32 %v8283_v43, %v6477_v48  ;;  %v1891_v58 = vadd.f32 %v1890_v17, %v1878_v33  ;;  %v6652_v17 = vor.u32 %v8328_v7, %v6651_v5  ;;  %v8320_v13 = vld [vmem:[#allocation4 + $0x1a4] sm:$0xf0]  ;;  %v6653_v46 = vld [vmem:[#allocation4 + $0x1e8] sm:$0xf0]  ;;  %v8317_v5 = vld [vmem:[#allocation4 + $0x194] sm:$0xf] }
 0x13f   :  { %2557 = vmatpush.bf16.msrb.mxu2 %v6592_v18  ;;  %v8324_v18 = vld [vmem:[#allocation4 + $0x1c4] sm:$0xf0]  ;;  %v6620_v32 = vor.u32 %v8320_v13, %v6619_v27  ;;  %v6613_v7 = vld [vmem:[#allocation4 + $0x198] sm:$0xf0]  ;;  %v2152_v27 = vld [vmem:[%s9205_s8 + $0x4] sm:$0x3] }
 0x140   :  { %v6636_v19 = vor.u32 %v8324_v18, %v6635_v15  ;;  %v2154_v13 = vperm.slane %v2152_v27, 0 }
 0x141   :  { %2532 = vmatpush.bf16.msrb.mxu0 %v6456_v55  ;;  %2545 = vmatpush.bf16.msrb.mxu1 %v6520_v56  ;;  %v8330_v55 = vld [vmem:[#allocation4 + $0x1f4] sm:$0xf0]  ;;  %v6560_v56 = vor.u32 %v8303_v51, %v6557_v52 }
 0x142   :  { %v6660_v57 = vor.u32 %v8330_v55, %v6659_v54  ;;  %v8323_v55 = vld [vmem:[#allocation4 + $0x1c4] sm:$0xf] }
 0x143   :  { %2558 = vmatpush.bf16.msrb.mxu2 %v6584_v29 }
 0x144   :  { %2517 = vmatpush.bf16.msra.mxu3 %v6660_v57 }
 0x145   :  { %2533 = vmatpush.bf16.msrb.mxu0 %v6448_v62  ;;  %2546 = vmatpush.bf16.msrb.mxu1 %v6512_v2  ;;  %v1918_v45 = vpop.f32.mrf.mxu3  ;;  %v1904_v62 = vadd.f32 %v1903_v21, %v1891_v58  ;;  %v6544_v2 = vor.u32 %v8299_v63, %v6541_v0  ;;  %v375_v58 = vperm.slane %v9002_v35, 3  ;;  %v8319_v0 = vld [vmem:[#allocation4 + $0x1a4] sm:$0xf]  ;;  %v6605_v35 = vld [vmem:[#allocation4 + $0x188] sm:$0xf0] }
 0x146   :  { %v1905_v44 = vpop.f32.mrf.mxu2  ;;  %v8327_v45 = vld [vmem:[#allocation4 + $0x1e4] sm:$0xf] }
 0x147   :  { %2559 = vmatpush.bf16.msrb.mxu2 %v6576_v42  ;;  %v1917_v3 = vadd.f32 %v1916_v6, %v1904_v62  ;;  %v6627_v6 = vld [vmem:[#allocation4 + $0x1b0] sm:$0xf]  ;;  %v6661_v42 = vld [vmem:[#allocation4 + $0x1f8] sm:$0xf0]  ;;  %v6656_v47 = vor.u32 %v8327_v45, %v6653_v46 }
 0x148   :  { %2518 = vmatpush.bf16.msra.mxu3 %v6652_v17  ;;  %v6664_v43 = vor.u32 %v8329_v41, %v6661_v42  ;;  %v8337_v45 = vld [vmem:[%s9201_s4 + $0x30] sm:$0xff] }
 0x149   :  { %2534 = vmatpush.bf16.msrb.mxu0 %v6440_v8  ;;  %2547 = vmatpush.bf16.msrb.mxu1 %v6504_v12  ;;  %v6643_v8 = vld [vmem:[#allocation4 + $0x1d0] sm:$0xf] }
 0x14a   :  { %v6644_v11 = vor.u32 %v8326_v10, %v6643_v8  ;;  %v8315_v8 = vld [vmem:[#allocation4 + $0x184] sm:$0xf]  ;;  %v8345_v46 = vld [vmem:[%s9201_s4 + $0x70] sm:$0xff] }
 0x14b   :  { %2560 = vmatpush.bf16.msrb.mxu2 %v6568_v50  ;;  %v6645_v50 = vld [vmem:[#allocation4 + $0x1d8] sm:$0xf0]  ;;  %v6608_v10 = vor.u32 %v8315_v8, %v6605_v35 }
 0x14c   :  { %2519 = vmatpush.bf16.msra.mxu3 %v6644_v11 }
 0x14d   :  { %2535 = vmatpush.bf16.msrb.mxu0 %v6432_v22  ;;  %2548 = vmatpush.bf16.msrb.mxu1 %v6496_v25  ;;  %v8322_v22 = vld [vmem:[#allocation4 + $0x1b4] sm:$0xf0] }
 0x14e   :  { %v6628_v25 = vor.u32 %v8322_v22, %v6627_v6 }
 0x14f   :  { %2561 = vmatpush.bf16.msrb.mxu2 %v6560_v56  ;;  %v6637_v56 = vld [vmem:[#allocation4 + $0x1c8] sm:$0xf0] }
 0x150   :  { %2520 = vmatpush.bf16.msra.mxu3 %v6636_v19  ;;  %v6640_v57 = vor.u32 %v8323_v55, %v6637_v56  ;;  %v8332_v55 = vld [vmem:[%s9201_s4 + $0x8] sm:$0xff] }
 0x151   :  { %2536 = vmatpush.bf16.msrb.mxu0 %v6424_v37  ;;  %2549 = vmatpush.bf16.msrb.mxu1 %v6488_v39  ;;  %v6611_v37 = vld [vmem:[#allocation4 + $0x190] sm:$0xf]  ;;  %v8316_v39 = vld [vmem:[#allocation4 + $0x184] sm:$0xf0] }
 0x152   :  { %v6612_v36 = vor.u32 %v8318_v28, %v6611_v37  ;;  %v6604_v40 = vor.u32 %v8316_v39, %v6603_v1  ;;  %v8344_v56 = vld [vmem:[%s9201_s4 + $0x68] sm:$0xff] }
 0x153   :  { %2562 = vmatpush.bf16.msrb.mxu2 %v6552_v61  ;;  %v6629_v61 = vld [vmem:[#allocation4 + $0x1b8] sm:$0xf0] }
 0x154   :  { %2521 = vmatpush.bf16.msra.mxu3 %v6628_v25  ;;  %v6632_v63 = vor.u32 %v8321_v60, %v6629_v61  ;;  %v8341_v60 = vld [vmem:[%s9201_s4 + $0x50] sm:$0xff]  ;;  %v8340_v61 = vld [vmem:[%s9201_s4 + $0x48] sm:$0xff] }
 0x155   :  { %2537 = vmatpush.bf16.msrb.mxu0 %v6416_v49  ;;  %2550 = vmatpush.bf16.msrb.mxu1 %v6480_v53  ;;  %v1929_v4 = vpop.f32.mrf.mxu0  ;;  %v1942_v16 = vpop.f32.mrf.mxu1  ;;  %v8325_v49 = vld [vmem:[#allocation4 + $0x1d4] sm:$0xf] }
 0x156   :  { %v1930_v9 = vadd.f32 %v1929_v4, %v1917_v3  ;;  %v6648_v52 = vor.u32 %v8325_v49, %v6645_v50  ;;  %v8335_v49 = vld [vmem:[%s9201_s4 + $0x20] sm:$0xff]  ;;  %v8334_v50 = vld [vmem:[%s9201_s4 + $0x18] sm:$0xff] }
 0x157   :  { %2563 = vmatpush.bf16.msrb.mxu2 %v6544_v2  ;;  %v6621_v2 = vld [vmem:[#allocation4 + $0x1a8] sm:$0xf0] }
 0x158   :  { %2538 = vmatmul.bf16.vlgmr.msrb.gmra.mxu0 %v8995_v38  ;;  %2551 = vmatmul.bf16.vlgmr.msrb.gmra.mxu1 %v8993_v34  ;;  %v1943_v38 = vadd.f32 %v1942_v16, %v1930_v9  ;;  %v6624_v4 = vor.u32 %v8319_v0, %v6621_v2  ;;  %v6616_v16 = vor.u32 %v8317_v5, %v6613_v7 }
 0x159   :  { %2522 = vmatpush.bf16.msra.mxu3 %v6620_v32 }
 0x15d   :  { %v1968_v34 = vpop.f32.mrf.mxu3  ;;  %v1931_v21 = vpop.f32.mrf.mxu0  ;;  %2523 = vmatpush.bf16.msra.mxu3 %v6612_v36  ;;  %v2155_v36 = vperm.slane %v2152_v27, 1 }
 0x15e   :  { %v1955_v12 = vpop.f32.mrf.mxu2  ;;  %v1944_v23 = vpop.f32.mrf.mxu1 }
 0x15f   :  { %v1956_v14 = vadd.f32 %v1955_v12, %v1943_v38 }
 0x161   :  { %v1969_v20 = vadd.f32 %v1968_v34, %v1956_v14  ;;  %2524 = vmatpush.bf16.msra.mxu3 %v6604_v40 }
 0x163   :  { %v2078_v24 = vmul.f32 0.01, %v1969_v20 }
 0x165   :  { %v2082_v26 = vmax.f32 %v1969_v20, %v2078_v24  ;;  %v1970_v31 = vpop.f32.mrf.mxu3  ;;  %2569 = vmatpush.bf16.msrb.mxu3 %v6664_v43 }
 0x166   :  { %v1957_v29 = vpop.f32.mrf.mxu2 }
 0x167   :  { %v2086_v30 = vpack.c.bf16 %v2082_v26, %v2082_v26 }
 0x169   :  { %2512 = vmatmul.bf16.vlgmr.msra.gmra.mxu2 %v2086_v30  ;;  %2570 = vmatpush.bf16.msrb.mxu3 %v6656_v47  ;;  %v8336_v47 = vld [vmem:[%s9201_s4 + $0x28] sm:$0xff] }
 0x16d   :  { %2571 = vmatpush.bf16.msrb.mxu3 %v6648_v52  ;;  %v8333_v52 = vld [vmem:[%s9201_s4 + $0x10] sm:$0xff] }
 0x171   :  { %2572 = vmatpush.bf16.msrb.mxu3 %v6640_v57  ;;  %v8331_v57 = vld [vmem:[%s9201_s4] sm:$0xff] }
 0x175   :  { %v1981_v48 = vpop.f32.mrf.mxu0  ;;  %v1994_v44 = vpop.f32.mrf.mxu1  ;;  %2573 = vmatpush.bf16.msrb.mxu3 %v6632_v63  ;;  %v2751_v63 = vld [vmem:[%s9198_s1] sm:$0xff] }
 0x176   :  { %v1982_v3 = vadd.f32 %v1981_v48, %v375_v58  ;;  %v8338_v48 = vld [vmem:[%s9201_s4 + $0x38] sm:$0xff]  ;;  %v8343_v58 = vld [vmem:[%s9201_s4 + $0x60] sm:$0xff]  ;;  %2753 = vrot.lane.b32.xlu0 %v2751_v63, %s8818_s22  ;;  %v6815_v63 = vld [vmem:[#allocation6 + $0xb0] sm:$0xf0] }
 0x177   :  { %2720 = vmatpush.bf16.msra.mxu0 %v8338_v48  ;;  %v6975_v48 = vld [vmem:[#allocation6 + $0x1f0] sm:$0xf0] }
 0x178   :  { %v1995_v9 = vadd.f32 %v1994_v44, %v1982_v3  ;;  %v8346_v44 = vld [vmem:[%s9201_s4 + $0x78] sm:$0xff] }
 0x179   :  { %2564 = vmatmul.bf16.vlgmr.msrb.gmra.mxu2 %v2086_v30  ;;  %2574 = vmatpush.bf16.msrb.mxu3 %v6624_v4 }
 0x17a   :  { %2733 = vmatpush.bf16.msra.mxu1 %v8346_v44  ;;  %v6829_v44 = vld [vmem:[#allocation6 + $0xc0] sm:$0xf] }
 0x17b   :  { %2721 = vmatpush.bf16.msra.mxu0 %v8337_v45 }
 0x17d   :  { %v2020_v51 = vpop.f32.mrf.mxu3  ;;  %v1983_v53 = vpop.f32.mrf.mxu0  ;;  %2575 = vmatpush.bf16.msrb.mxu3 %v6616_v16 }
 0x17e   :  { %v2007_v33 = vpop.f32.mrf.mxu2  ;;  %v1996_v54 = vpop.f32.mrf.mxu1  ;;  %2734 = vmatpush.bf16.msra.mxu1 %v8345_v46  ;;  %v8373_v46 = vld [vmem:[#allocation6 + $0xcc] sm:$0xf0] }
 0x17f   :  { %v2008_v17 = vadd.f32 %v2007_v33, %v1995_v9  ;;  %2722 = vmatpush.bf16.msra.mxu0 %v8336_v47  ;;  %v6957_v47 = vld [vmem:[#allocation6 + $0x1c0] sm:$0xf] }
 0x181   :  { %v2021_v38 = vadd.f32 %v2020_v51, %v2008_v17  ;;  %2576 = vmatpush.bf16.msrb.mxu3 %v6608_v10 }
 0x182   :  { %2735 = vmatpush.bf16.msra.mxu1 %v8344_v56  ;;  %v6813_v56 = vld [vmem:[#allocation6 + $0xa0] sm:$0xf] }
 0x183   :  { %2723 = vmatpush.bf16.msra.mxu0 %v8335_v49  ;;  %v6830_v49 = vor.u32 %v8373_v46, %v6829_v44  ;;  %v8351_v46 = vld [vmem:[#allocation6 + $0x24] sm:$0xf] }
 0x185   :  { %v2022_v62 = vpop.f32.mrf.mxu3 }
 0x186   :  { %v2009_v59 = vpop.f32.mrf.mxu2  ;;  %2736 = vmatpush.bf16.msra.mxu1 %v8343_v58  ;;  %v8339_v62 = vld [vmem:[%s9201_s4 + $0x40] sm:$0xff] }
 0x187   :  { %2724 = vmatpush.bf16.msra.mxu0 %v8334_v50  ;;  %v8342_v59 = vld [vmem:[%s9201_s4 + $0x58] sm:$0xff] }
 0x18a   :  { %2737 = vmatpush.bf16.msra.mxu1 %v8342_v59  ;;  %v6941_v59 = vld [vmem:[#allocation6 + $0x1a0] sm:$0xf] }
 0x18b   :  { %2725 = vmatpush.bf16.msra.mxu0 %v8333_v52  ;;  %v6831_v52 = vld [vmem:[#allocation6 + $0xd0] sm:$0xf0] }
 0x18e   :  { %2738 = vmatpush.bf16.msra.mxu1 %v8341_v60  ;;  %v8401_v60 = vld [vmem:[#allocation6 + $0x1ac] sm:$0xf0] }
 0x18f   :  { %2726 = vmatpush.bf16.msra.mxu0 %v8332_v55  ;;  %v6959_v55 = vld [vmem:[#allocation6 + $0x1d0] sm:$0xf0] }
 0x192   :  { %2739 = vmatpush.bf16.msra.mxu1 %v8340_v61  ;;  %v8367_v61 = vld [vmem:[#allocation6 + $0xa4] sm:$0xf] }
 0x193   :  { %2727 = vmatpush.bf16.msra.mxu0 %v8331_v57  ;;  %v8369_v57 = vld [vmem:[#allocation6 + $0xac] sm:$0xf0] }
 0x195   :  { %v2033_v11 = vpop.f32.mrf.mxu0  ;;  %v2046_v12 = vpop.f32.mrf.mxu1 }
 0x196   :  { %v2034_v14 = vadd.f32 %v2033_v11, %v2021_v38  ;;  %2740 = vmatpush.bf16.msra.mxu1 %v8339_v62  ;;  %v6814_v62 = vor.u32 %v8369_v57, %v6813_v56  ;;  %v6861_v56 = vld [vmem:[#allocation6 + $0x100] sm:$0xf]  ;;  %v8381_v57 = vld [vmem:[#allocation6 + $0x10c] sm:$0xf0] }
 0x198   :  { %v2047_v34 = vadd.f32 %v2046_v12, %v2034_v14 }
 0x19d   :  { %v2059_v15 = vpop.f32.mrf.mxu2  ;;  %v2072_v19 = vpop.f32.mrf.mxu3 }
 0x19e   :  { %v2060_v18 = vadd.f32 %v2059_v15, %v2047_v34  ;;  %v2035_v20 = vpop.f32.mrf.mxu0  ;;  %v2048_v21 = vpop.f32.mrf.mxu1  ;;  %v8678_v34 = vld [vmem:[%s9205_s8 + $0x6] ss:$0 sm:$0xff] }
 0x1a0   :  { %v2073_v6 = vadd.f32 %v2072_v19, %v2060_v18 }
 0x1a2   :  { %v2079_v22 = vmul.f32 0.01, %v2073_v6 }
 0x1a4   :  { %v2083_v23 = vmax.f32 %v2073_v6, %v2079_v22 }
 0x1a5   :  { %v2061_v24 = vpop.f32.mrf.mxu2  ;;  %v2074_v26 = vpop.f32.mrf.mxu3 }
 0x1a6   :  { %v2087_v25 = vpack.c.bf16 %v2083_v23, %v2083_v23 }
 0x1a8   :  { %2525 = vmatmul.bf16.vlgmr.msra.gmra.mxu3 %v2087_v25 }
 0x1b5   :  { %v2487_v29 = vpop.f32.mrf.mxu0  ;;  %v2500_v31 = vpop.f32.mrf.mxu1 }
 0x1b6   :  { %v2488_v30 = vadd.f32 %v2487_v29, %v2154_v13 }
 0x1b8   :  { %v2501_v32 = vadd.f32 %v2500_v31, %v2488_v30  ;;  %2577 = vmatmul.bf16.vlgmr.msrb.gmra.mxu3 %v2087_v25  ;;  %v2763_v25 = vld [vmem:[%s9202_s5] sm:$0xff] }
 0x1b9   :  { %v2771_v26 = vunpack.c.l.b16 %v2763_v25  ;;  %v2772_v27 = vunpack.c.h.b16 %v2763_v25 }
 0x1bb   :  { %v2773_v13 = vpack.c.b16 %v2771_v26, %v2771_v26  ;;  %v2774_v29 = vpack.c.b16 %v2772_v27, %v2772_v27 }
 0x1bd   :  { %v2489_v37 = vpop.f32.mrf.mxu0  ;;  %v2502_v28 = vpop.f32.mrf.mxu1  ;;  %v2781_v30 = vsel %vm2779_vm1, %v2773_v13, 0  ;;  %v2784_v31 = vsel %vm2779_vm1, %v2774_v29, 0  ;;  %v6765_v13 = vld [vmem:[#allocation6 + $0x40] sm:$0xf]  ;;  %v8357_v29 = vld [vmem:[#allocation6 + $0x4c] sm:$0xf0] }
 0x1be   :  { %2793 = vmatpush.bf16.msra.mxu2 %v2781_v30  ;;  %2806 = vmatpush.bf16.msra.mxu3 %v2784_v31  ;;  %v8377_v37 = vld [vmem:[#allocation6 + $0xec] sm:$0xf0]  ;;  %v6973_v28 = vld [vmem:[#allocation6 + $0x1e0] sm:$0xf] }
 0x1bf   :  { %v6893_v30 = vld [vmem:[#allocation6 + $0x140] sm:$0xf] }
 0x1d5   :  { %v2539_v1 = vpop.f32.mrf.mxu0  ;;  %v2552_v40 = vpop.f32.mrf.mxu1 }
 0x1d6   :  { %v2540_v39 = vadd.f32 %v2539_v1, %v2155_v36  ;;  %v8409_v1 = vld [vmem:[#allocation6 + $0x1ec] sm:$0xf0] }
 0x1d8   :  { %v2553_v41 = vadd.f32 %v2552_v40, %v2540_v39  ;;  %v8375_v39 = vld [vmem:[#allocation6 + $0xe4] sm:$0xf]  ;;  %v6847_v40 = vld [vmem:[#allocation6 + $0xf0] sm:$0xf0] }
 0x1dd   :  { %v2541_v42 = vpop.f32.mrf.mxu0  ;;  %v2554_v43 = vpop.f32.mrf.mxu1 }
 0x1de   :  { %v6850_v42 = vor.u32 %v8375_v39, %v6847_v40  ;;  %v8407_v43 = vld [vmem:[#allocation6 + $0x1e4] sm:$0xf]  ;;  %v6766_v39 = vor.u32 %v8357_v29, %v6765_v13  ;;  %v8370_v13 = vld [vmem:[#allocation6 + $0xb4] sm:$0xf0]  ;;  %v6949_v29 = vld [vmem:[#allocation6 + $0x1a8] sm:$0xf] }
 0x1df   :  { %v6978_v45 = vor.u32 %v8407_v43, %v6975_v48  ;;  %v8353_v43 = vld [vmem:[#allocation6 + $0x2c] sm:$0xf0]  ;;  %v6877_v48 = vld [vmem:[#allocation6 + $0x120] sm:$0xf] }
 0x1e0   :  { %3234 = vmatpush.bf16.msrb.mxu0 %v6850_v42  ;;  %v6749_v42 = vld [vmem:[#allocation6 + $0x20] sm:$0xf] }
 0x1e1   :  { %3247 = vmatpush.bf16.msrb.mxu1 %v6978_v45  ;;  %v8385_v45 = vld [vmem:[#allocation6 + $0x12c] sm:$0xf0] }
 0x1e8   :  { %v2754_v22 = vpop.permute.xlu0 %2753 }
 0x1ec   :  { %v2513_v33 = vpop.f32.mrf.mxu2 }
 0x1ed   :  { %v2514_v0 = vadd.f32 %v2513_v33, %v2501_v32  ;;  %v6845_v32 = vld [vmem:[#allocation6 + $0xe0] sm:$0xf]  ;;  %v8405_v33 = vld [vmem:[#allocation6 + $0x1cc] sm:$0xf0] }
 0x1ee   :  { %v6846_v36 = vor.u32 %v8377_v37, %v6845_v32  ;;  %v6958_v50 = vor.u32 %v8405_v33, %v6957_v47  ;;  %v8389_v32 = vld [vmem:[#allocation6 + $0x14c] sm:$0xf0]  ;;  %v8355_v37 = vld [vmem:[#allocation6 + $0x44] sm:$0xf]  ;;  %v6751_v47 = vld [vmem:[#allocation6 + $0x30] sm:$0xf0] }
 0x1ef   :  { %v6894_v40 = vor.u32 %v8389_v32, %v6893_v30  ;;  %v8383_v33 = vld [vmem:[#allocation6 + $0x124] sm:$0xf]  ;;  %v8368_v32 = vld [vmem:[#allocation6 + $0xac] sm:$0xf] }
 0x1f0   :  { %3208 = vmatpush.bf16.msrb.mxu2 %v6846_v36  ;;  %v8387_v36 = vld [vmem:[#allocation6 + $0x144] sm:$0xf] }
 0x1f4   :  { %v2515_v51 = vpop.f32.mrf.mxu2  ;;  %3209 = vmatpush.bf16.msrb.mxu2 %v6830_v49  ;;  %v6879_v49 = vld [vmem:[#allocation6 + $0x130] sm:$0xf0] }
 0x1f5   :  { %v8371_v51 = vld [vmem:[#allocation6 + $0xc4] sm:$0xf] }
 0x1f8   :  { %3210 = vmatpush.bf16.msrb.mxu2 %v6814_v62 }
 0x1fc   :  { %v2565_v53 = vpop.f32.mrf.mxu2 }
 0x1fd   :  { %v2566_v16 = vadd.f32 %v2565_v53, %v2553_v41  ;;  %v6974_v41 = vor.u32 %v8409_v1, %v6973_v28  ;;  %v8403_v53 = vld [vmem:[#allocation6 + $0x1c4] sm:$0xf]  ;;  %v6767_v28 = vld [vmem:[#allocation6 + $0x50] sm:$0xf0] }
 0x1fe   :  { %v6962_v58 = vor.u32 %v8403_v53, %v6959_v55  ;;  %v6895_v1 = vld [vmem:[#allocation6 + $0x150] sm:$0xf0]  ;;  %v6733_v53 = vld [vmem:[#allocation6] sm:$0xf]  ;;  %v6882_v55 = vor.u32 %v8383_v33, %v6879_v49  ;;  %v6807_v33 = vld [vmem:[#allocation6 + $0x98] sm:$0xf0] }
 0x1ff   :  { %3221 = vmatpush.bf16.msrb.mxu3 %v6974_v41  ;;  %v6770_v41 = vor.u32 %v8355_v37, %v6767_v28  ;;  %v6898_v44 = vor.u32 %v8387_v36, %v6895_v1  ;;  %v6823_v37 = vld [vmem:[#allocation6 + $0xb8] sm:$0xf0]  ;;  %v8400_v28 = vld [vmem:[#allocation6 + $0x1ac] sm:$0xf] }
 0x200   :  { %3248 = vmatpush.bf16.msrb.mxu1 %v6962_v58  ;;  %v8347_v58 = vld [vmem:[#allocation6 + $0x4] sm:$0xf]  ;;  %v6951_v36 = vld [vmem:[#allocation6 + $0x1b8] sm:$0xf0]  ;;  %v8396_v49 = vld [vmem:[#allocation6 + $0x18c] sm:$0xf] }
 0x203   :  { %3222 = vmatpush.bf16.msrb.mxu3 %v6958_v50  ;;  %v6750_v50 = vor.u32 %v8353_v43, %v6749_v42  ;;  %v6805_v42 = vld [vmem:[#allocation6 + $0x88] sm:$0xf]  ;;  %v8366_v43 = vld [vmem:[#allocation6 + $0x94] sm:$0xf0] }
 0x204   :  { %v2567_v54 = vpop.f32.mrf.mxu2 }
 0x205   :  { %v6834_v54 = vor.u32 %v8371_v51, %v6831_v52  ;;  %v6878_v51 = vor.u32 %v8385_v45, %v6877_v48  ;;  %v6754_v52 = vor.u32 %v8351_v46, %v6751_v47  ;;  %v6806_v48 = vor.u32 %v8366_v43, %v6805_v42  ;;  %v8398_v45 = vld [vmem:[#allocation6 + $0x194] sm:$0xf0]  ;;  %v8364_v46 = vld [vmem:[#allocation6 + $0x8c] sm:$0xf]  ;;  %v8535_v42 = vld [vmem:[#allocation7 + $0x3dc] sm:$0xf0] }
 0x207   :  { %3235 = vmatpush.bf16.msrb.mxu0 %v6834_v54  ;;  %v8349_v54 = vld [vmem:[#allocation6 + $0xc] sm:$0xf0] }
 0x22b   :  { %v2526_v2 = vpop.f32.mrf.mxu3 }
 0x22c   :  { %v2527_v3 = vadd.f32 %v2526_v2, %v2514_v0  ;;  %v8399_v0 = vld [vmem:[#allocation6 + $0x1a4] sm:$0xf]  ;;  %v6943_v2 = vld [vmem:[#allocation6 + $0x1b0] sm:$0xf0] }
 0x22e   :  { %v2582_v4 = vmul.f32 0.01, %v2527_v3 }
 0x230   :  { %v2584_v5 = vmax.f32 %v2527_v3, %v2582_v4  ;;  %v6942_v3 = vor.u32 %v8401_v60, %v6941_v59  ;;  %v6818_v4 = vor.u32 %v8367_v61, %v6815_v63  ;;  %v6735_v59 = vld [vmem:[#allocation6 + $0x10] sm:$0xf0]  ;;  %v8379_v60 = vld [vmem:[#allocation6 + $0x104] sm:$0xf]  ;;  %v6734_v63 = vor.u32 %v8349_v54, %v6733_v53  ;;  %v6789_v53 = vld [vmem:[#allocation6 + $0x68] sm:$0xf] }
 0x231   :  { %v6863_v61 = vld [vmem:[#allocation6 + $0x110] sm:$0xf0]  ;;  %v8362_v54 = vld [vmem:[#allocation6 + $0x74] sm:$0xf0] }
 0x232   :  { %v2586_v7 = vpack.c.bf16 %v2584_v5, %v2584_v5  ;;  %v6797_v5 = vld [vmem:[#allocation6 + $0x80] sm:$0xf]  ;;  %3223 = vmatpush.bf16.msrb.mxu3 %v6942_v3  ;;  %3236 = vmatpush.bf16.msrb.mxu0 %v6818_v4  ;;  %v6981_v3 = vld [vmem:[#allocation6 + $0x1e8] sm:$0xf] }
 0x233   :  { %v2528_v9 = vpop.f32.mrf.mxu3 }
 0x234   :  { %2728 = vmatmul.bf16.vlgmr.msra.gmra.mxu0 %v2586_v7  ;;  %v8365_v7 = vld [vmem:[#allocation6 + $0x8c] sm:$0xf0]  ;;  %v6925_v9 = vld [vmem:[#allocation6 + $0x180] sm:$0xf] }
 0x23b   :  { %v2578_v17 = vpop.f32.mrf.mxu3 }
 0x23c   :  { %v2579_v8 = vadd.f32 %v2578_v17, %v2566_v16  ;;  %v6946_v16 = vor.u32 %v8399_v0, %v6943_v2  ;;  %v8397_v17 = vld [vmem:[#allocation6 + $0x18c] sm:$0xf0]  ;;  %v6853_v0 = vld [vmem:[#allocation6 + $0xe8] sm:$0xf]  ;;  %v8378_v2 = vld [vmem:[#allocation6 + $0xf4] sm:$0xf0] }
 0x23e   :  { %v2583_v35 = vmul.f32 0.01, %v2579_v8  ;;  %3249 = vmatpush.bf16.msrb.mxu1 %v6946_v16  ;;  %v6862_v16 = vor.u32 %v8381_v57, %v6861_v56  ;;  %v6790_v56 = vor.u32 %v8362_v54, %v6789_v53  ;;  %v8394_v57 = vld [vmem:[#allocation6 + $0x174] sm:$0xf0] }
 0x240   :  { %v2585_v10 = vmax.f32 %v2579_v8, %v2583_v35  ;;  %v8363_v8 = vld [vmem:[#allocation6 + $0x84] sm:$0xf]  ;;  %v6799_v35 = vld [vmem:[#allocation6 + $0x90] sm:$0xf0] }
 0x242   :  { %v2587_v38 = vpack.c.bf16 %v2585_v10, %v2585_v10  ;;  %v8395_v10 = vld [vmem:[#allocation6 + $0x184] sm:$0xf] }
 0x243   :  { %v2580_v11 = vpop.f32.mrf.mxu3 }
 0x244   :  { %2741 = vmatmul.bf16.vlgmr.msra.gmra.mxu1 %v2587_v38  ;;  %v6927_v38 = vld [vmem:[#allocation6 + $0x190] sm:$0xf0]  ;;  %v6798_v11 = vor.u32 %v8365_v7, %v6797_v5  ;;  %v8410_v5 = vld [vmem:[#allocation6 + $0x1f4] sm:$0xf0]  ;;  %v8376_v7 = vld [vmem:[#allocation6 + $0xec] sm:$0xf] }
 0x246   :  { %3211 = vmatpush.bf16.msrb.mxu2 %v6798_v11  ;;  %v6854_v11 = vor.u32 %v8378_v2, %v6853_v0  ;;  %v6773_v2 = vld [vmem:[#allocation6 + $0x48] sm:$0xf] }
 0x2b1   :  { %v2729_v12 = vpop.f32.mrf.mxu0 }
 0x2b2   :  { %v2730_v15 = vadd.f32 %v8678_v34, %v2729_v12  ;;  %v6926_v12 = vor.u32 %v8397_v17, %v6925_v9  ;;  %v6781_v34 = vld [vmem:[#allocation6 + $0x60] sm:$0xf]  ;;  %v6855_v9 = vld [vmem:[#allocation6 + $0xf8] sm:$0xf0]  ;;  %v6738_v17 = vor.u32 %v8347_v58, %v6735_v59  ;;  %v8360_v58 = vld [vmem:[#allocation6 + $0x6c] sm:$0xf] }
 0x2b3   :  { %v6791_v59 = vld [vmem:[#allocation6 + $0x78] sm:$0xf0] }
 0x2b4   :  { %3224 = vmatpush.bf16.msrb.mxu3 %v6926_v12  ;;  %v6982_v12 = vor.u32 %v8410_v5, %v6981_v3  ;;  %v8358_v3 = vld [vmem:[#allocation6 + $0x54] sm:$0xf0] }
 0x2b5   :  { %v6774_v5 = vor.u32 %v8358_v3, %v6773_v2  ;;  %v8591_v2 = vld [vmem:[#allocation7 + $0x59c] sm:$0xf0] }
 0x2b9   :  { %v2731_v14 = vpop.f32.mrf.mxu0 }
 0x2ba   :  { %v6802_v14 = vor.u32 %v8363_v8, %v6799_v35  ;;  %v8408_v8 = vld [vmem:[#allocation6 + $0x1ec] sm:$0xf]  ;;  %v6983_v35 = vld [vmem:[#allocation6 + $0x1f8] sm:$0xf0] }
 0x2bc   :  { %3237 = vmatpush.bf16.msrb.mxu0 %v6802_v14  ;;  %v6858_v14 = vor.u32 %v8376_v7, %v6855_v9  ;;  %v8390_v7 = vld [vmem:[#allocation6 + $0x154] sm:$0xf0]  ;;  %v8356_v9 = vld [vmem:[#allocation6 + $0x4c] sm:$0xf] }
 0x2c1   :  { %v2742_v18 = vpop.f32.mrf.mxu1 }
 0x2c2   :  { %v9066_v19 = vadd.f32 %v2742_v18, %v2730_v15  ;;  %v8361_v15 = vld [vmem:[#allocation6 + $0x6c] sm:$0xf0]  ;;  %v6909_v18 = vld [vmem:[#allocation6 + $0x160] sm:$0xf] }
 0x2c3   :  { %v6782_v25 = vor.u32 %v8361_v15, %v6781_v34  ;;  %v6837_v34 = vld [vmem:[#allocation6 + $0xc8] sm:$0xf]  ;;  %v8374_v15 = vld [vmem:[#allocation6 + $0xd4] sm:$0xf0] }
 0x2c4   :  { %2747 = vst.msk [vmem:[%s9206_s9] sm:$0xff] %vm2746_vm0, %v9066_v19  ;;  %v2748_v20 = vmul.f32 0.5, %v9066_v19 }
 0x2c5   :  { %3212 = vmatpush.bf16.msrb.mxu2 %v6782_v25 }
 0x2c6   :  { %v2749_v21 = vmul.f32 1.442695, %v2748_v20  ;;  %v6930_v20 = vor.u32 %v8395_v10, %v6927_v38  ;;  %v6866_v38 = vor.u32 %v8379_v60, %v6863_v61  ;;  %v6794_v61 = vor.u32 %v8360_v58, %v6791_v59  ;;  %v7181_v58 = vld [vmem:[#allocation7 + $0x180] sm:$0xf] }
 0x2c7   :  { %v8463_v59 = vld [vmem:[#allocation7 + $0x19c] sm:$0xf0] }
 0x2c8   :  { %8679 = vpow2.f32 %v2749_v21  ;;  %v8393_v21 = vld [vmem:[#allocation6 + $0x16c] sm:$0xf0]  ;;  %3250 = vmatpush.bf16.msrb.mxu1 %v6930_v20  ;;  %v8406_v20 = vld [vmem:[#allocation6 + $0x1d4] sm:$0xf0] }
 0x2c9   :  { %v2744_v6 = vpop.f32.mrf.mxu1  ;;  %v6910_v26 = vor.u32 %v8393_v21, %v6909_v18  ;;  %3213 = vmatpush.bf16.msrb.mxu2 %v6766_v39  ;;  %v6986_v18 = vor.u32 %v8408_v8, %v6983_v35  ;;  %v8372_v21 = vld [vmem:[#allocation6 + $0xcc] sm:$0xf] }
 0x2ca   :  { %v8359_v6 = vld [vmem:[#allocation6 + $0x64] sm:$0xf]  ;;  %v8388_v35 = vld [vmem:[#allocation6 + $0x14c] sm:$0xf] }
 0x2cb   :  { %3225 = vmatpush.bf16.msrb.mxu3 %v6910_v26 }
 0x2cd   :  { %3214 = vmatpush.bf16.msrb.mxu2 %v6750_v50  ;;  %v6935_v50 = vld [vmem:[#allocation6 + $0x198] sm:$0xf0] }
 0x2ce   :  { %v8680_v23 = vpop.eup %8679 }
 0x2cf   :  { %v2756_v24 = vmul.f32 %v8680_v23, %v2754_v22  ;;  %v6783_v22 = vld [vmem:[#allocation6 + $0x70] sm:$0xf0]  ;;  %v8391_v23 = vld [vmem:[#allocation6 + $0x164] sm:$0xf]  ;;  %3226 = vmatpush.bf16.msrb.mxu3 %v6894_v40  ;;  %v6826_v40 = vor.u32 %v8368_v32, %v6823_v37  ;;  %v6871_v32 = vld [vmem:[#allocation6 + $0x118] sm:$0xf0] }
 0x2d0   :  { %v6786_v27 = vor.u32 %v8359_v6, %v6783_v22  ;;  %v6839_v6 = vld [vmem:[#allocation6 + $0xd8] sm:$0xf0]  ;;  %v8404_v22 = vld [vmem:[#allocation6 + $0x1cc] sm:$0xf] }
 0x2d1   :  { %2758 = vrot.lane.b32.xlu0 %v2756_v24, %s8826_s25  ;;  %v6911_v24 = vld [vmem:[#allocation6 + $0x170] sm:$0xf0]  ;;  %3215 = vmatpush.bf16.msrb.mxu2 %v6734_v63  ;;  %v6842_v26 = vor.u32 %v8372_v21, %v6839_v6  ;;  %v6919_v63 = vld [vmem:[#allocation6 + $0x178] sm:$0xf0]  ;;  %v8384_v21 = vld [vmem:[#allocation6 + $0x12c] sm:$0xf] }
 0x2d2   :  { %v6914_v31 = vor.u32 %v8391_v23, %v6911_v24  ;;  %3238 = vmatpush.bf16.msrb.mxu0 %v6786_v27  ;;  %v6967_v23 = vld [vmem:[#allocation6 + $0x1d8] sm:$0xf0]  ;;  %v6838_v24 = vor.u32 %v8374_v15, %v6837_v34  ;;  %v6821_v27 = vld [vmem:[#allocation6 + $0xa8] sm:$0xf]  ;;  %v8386_v34 = vld [vmem:[#allocation6 + $0x134] sm:$0xf0] }
 0x2d3   :  { %3227 = vmatpush.bf16.msrb.mxu3 %v6878_v51  ;;  %v6970_v30 = vor.u32 %v8404_v22, %v6967_v23  ;;  %v6822_v1 = vor.u32 %v8370_v13, %v6821_v27  ;;  %v6810_v51 = vor.u32 %v8364_v46, %v6807_v33  ;;  %v6887_v22 = vld [vmem:[#allocation6 + $0x138] sm:$0xf0]  ;;  %v6741_v23 = vld [vmem:[#allocation6 + $0x8] sm:$0xf]  ;;  %v8382_v27 = vld [vmem:[#allocation6 + $0x114] sm:$0xf0] }
 0x2d4   :  { %3251 = vmatpush.bf16.msrb.mxu1 %v6914_v31  ;;  %v8402_v31 = vld [vmem:[#allocation6 + $0x1b4] sm:$0xf0]  ;;  %v8348_v13 = vld [vmem:[#allocation6 + $0xc] sm:$0xf]  ;;  %v7981_v46 = vld [vmem:[#allocation7 + $0x7c0] sm:$0xf] }
 0x2d5   :  { %v6950_v39 = vor.u32 %v8402_v31, %v6949_v29  ;;  %v8380_v31 = vld [vmem:[#allocation6 + $0x10c] sm:$0xf] }
 0x2d6   :  { %3239 = vmatpush.bf16.msrb.mxu0 %v6770_v41  ;;  %v6954_v41 = vor.u32 %v8400_v28, %v6951_v36  ;;  %v6874_v36 = vor.u32 %v8380_v31, %v6871_v32  ;;  %v7085_v31 = vld [vmem:[#allocation7 + $0xc0] sm:$0xf] }
 0x2d7   :  { %3228 = vmatpush.bf16.msrb.mxu3 %v6862_v16  ;;  %v6775_v16 = vld [vmem:[#allocation6 + $0x58] sm:$0xf0]  ;;  %v8439_v32 = vld [vmem:[#allocation7 + $0xdc] sm:$0xf0] }
 0x2d8   :  { %3252 = vmatpush.bf16.msrb.mxu1 %v6898_v44  ;;  %v6933_v44 = vld [vmem:[#allocation6 + $0x188] sm:$0xf]  ;;  %v6778_v8 = vor.u32 %v8356_v9, %v6775_v16 }
 0x2d9   :  { %v6934_v47 = vor.u32 %v8398_v45, %v6933_v44  ;;  %v7213_v44 = vld [vmem:[#allocation7 + $0x1c0] sm:$0xf] }
 0x2da   :  { %3240 = vmatpush.bf16.msrb.mxu0 %v6754_v52  ;;  %v6938_v52 = vor.u32 %v8396_v49, %v6935_v50  ;;  %v8471_v45 = vld [vmem:[#allocation7 + $0x1dc] sm:$0xf0] }
 0x2db   :  { %v8663_v49 = vld [vmem:[#allocation7 + $0x7dc] sm:$0xf0] }
 0x2dc   :  { %3253 = vmatpush.bf16.msrb.mxu1 %v6882_v55  ;;  %v6917_v55 = vld [vmem:[#allocation6 + $0x168] sm:$0xf]  ;;  %v7725_v50 = vld [vmem:[#allocation7 + $0x5c0] sm:$0xf] }
 0x2dd   :  { %v6918_v60 = vor.u32 %v8394_v57, %v6917_v55  ;;  %v7437_v55 = vld [vmem:[#allocation7 + $0x380] sm:$0xf]  ;;  %v7214_v57 = vor.u32 %v8471_v45, %v7213_v44 }
 0x2de   :  { %3241 = vmatpush.bf16.msrb.mxu0 %v6738_v17  ;;  %v7053_v44 = vld [vmem:[#allocation7 + $0x80] sm:$0xf] }
 0x2df   :  { %v8431_v45 = vld [vmem:[#allocation7 + $0x9c] sm:$0xf0] }
 0x2e0   :  { %3254 = vmatpush.bf16.msrb.mxu1 %v6866_v38  ;;  %v6757_v38 = vld [vmem:[#allocation6 + $0x28] sm:$0xf] }
 0x2e2   :  { %3286 = vmatpush.bf16.msra.mxu0 %v6858_v14  ;;  %v6885_v14 = vld [vmem:[#allocation6 + $0x128] sm:$0xf] }
 0x2e4   :  { %3299 = vmatpush.bf16.msra.mxu1 %v6986_v18  ;;  %v8352_v18 = vld [vmem:[#allocation6 + $0x2c] sm:$0xf] }
 0x2e6   :  { %3287 = vmatpush.bf16.msra.mxu0 %v6842_v26  ;;  %v6869_v26 = vld [vmem:[#allocation6 + $0x108] sm:$0xf] }
 0x2e7   :  { %v6870_v37 = vor.u32 %v8382_v27, %v6869_v26  ;;  %v8575_v26 = vld [vmem:[#allocation7 + $0x51c] sm:$0xf0] }
 0x2e8   :  { %3300 = vmatpush.bf16.msra.mxu1 %v6970_v30  ;;  %v6743_v30 = vld [vmem:[#allocation6 + $0x18] sm:$0xf0] }
 0x2e9   :  { %v6746_v28 = vor.u32 %v8348_v13, %v6743_v30  ;;  %v7341_v13 = vld [vmem:[#allocation7 + $0x2c0] sm:$0xf] }
 0x2ea   :  { %3288 = vmatpush.bf16.msra.mxu0 %v6826_v40 }
 0x2ec   :  { %3301 = vmatpush.bf16.msra.mxu1 %v6954_v41  ;;  %v7469_v41 = vld [vmem:[#allocation7 + $0x3c0] sm:$0xf] }
 0x2ed   :  { %v7470_v54 = vor.u32 %v8535_v42, %v7469_v41  ;;  %v7309_v42 = vld [vmem:[#allocation7 + $0x280] sm:$0xf] }
 0x2ee   :  { %3289 = vmatpush.bf16.msra.mxu0 %v6810_v51  ;;  %v8599_v51 = vld [vmem:[#allocation7 + $0x5dc] sm:$0xf0] }
 0x2f0   :  { %3302 = vmatpush.bf16.msra.mxu1 %v6938_v52 }
 0x2f2   :  { %3290 = vmatpush.bf16.msra.mxu0 %v6794_v61  ;;  %v7949_v61 = vld [vmem:[#allocation7 + $0x780] sm:$0xf] }
 0x2f6   :  { %3291 = vmatpush.bf16.msra.mxu0 %v6778_v8  ;;  %v8455_v8 = vld [vmem:[#allocation7 + $0x15c] sm:$0xf0] }
 0x343   :  { %v2759_v62 = vpop.permute.xlu0 %2758 }
 0x344   :  { %v2761_v4 = vadd.f32 %v2759_v62, %v9066_v19  ;;  %v6965_v19 = vld [vmem:[#allocation6 + $0x1c8] sm:$0xf]  ;;  %v8392_v62 = vld [vmem:[#allocation6 + $0x16c] sm:$0xf] }
 0x345   :  { %v6966_v25 = vor.u32 %v8406_v20, %v6965_v19  ;;  %v6922_v0 = vor.u32 %v8392_v62, %v6919_v63  ;;  %v6886_v19 = vor.u32 %v8386_v34, %v6885_v14  ;;  %v6759_v20 = vld [vmem:[#allocation6 + $0x38] sm:$0xf0]  ;;  %v7726_v62 = vor.u32 %v8599_v51, %v7725_v50  ;;  %v8655_v63 = vld [vmem:[#allocation7 + $0x79c] sm:$0xf0] }
 0x346   :  { %v2762_v10 = vpack.c.bf16 %v2761_v4, %v2761_v4  ;;  %v6901_v4 = vld [vmem:[#allocation6 + $0x148] sm:$0xf]  ;;  %v6762_v6 = vor.u32 %v8352_v18, %v6759_v20  ;;  %v8583_v14 = vld [vmem:[#allocation7 + $0x55c] sm:$0xf0] }
 0x347   :  { %3303 = vmatpush.bf16.msra.mxu1 %v6922_v0  ;;  %v6902_v17 = vor.u32 %v8390_v7, %v6901_v4  ;;  %v7693_v0 = vld [vmem:[#allocation7 + $0x580] sm:$0xf]  ;;  %v7182_v7 = vor.u32 %v8463_v59, %v7181_v58 }
 0x348   :  { %6729 = vmatmul.msk.bf16.vlgmr.msra.gmra.mxu2 %vm2775_vm2, %v2762_v10  ;;  %6730 = vmatmul.msk.bf16.vlgmr.msra.gmra.mxu3 %vm2775_vm2, %v2762_v10  ;;  %v6903_v10 = vld [vmem:[#allocation6 + $0x158] sm:$0xf0]  ;;  %v7405_v4 = vld [vmem:[#allocation7 + $0x340] sm:$0xf] }
 0x349   :  { %3260 = vmatpush.bf16.msra.mxu2 %v6854_v11  ;;  %3273 = vmatpush.bf16.msra.mxu3 %v6982_v12  ;;  %v6906_v11 = vor.u32 %v8388_v35, %v6903_v10  ;;  %v8354_v12 = vld [vmem:[#allocation6 + $0x34] sm:$0xf0]  ;;  %v7950_v35 = vor.u32 %v8655_v63, %v7949_v61  ;;  %v7917_v10 = vld [vmem:[#allocation7 + $0x740] sm:$0xf] }
 0x34a   :  { %v6758_v15 = vor.u32 %v8354_v12, %v6757_v38  ;;  %3292 = vmatpush.bf16.msra.mxu0 %v6762_v6  ;;  %v7694_v38 = vor.u32 %v8591_v2, %v7693_v0  ;;  %v7661_v12 = vld [vmem:[#allocation7 + $0x540] sm:$0xf] }
 0x34b   :  { %3304 = vmatpush.bf16.msra.mxu1 %v6906_v11  ;;  %v8647_v11 = vld [vmem:[#allocation7 + $0x75c] sm:$0xf0] }
 0x34c   :  { %v7117_v20 = vld [vmem:[#allocation7 + $0x100] sm:$0xf]  ;;  %v7918_v6 = vor.u32 %v8647_v11, %v7917_v10  ;;  %v7215_v10 = vld [vmem:[#allocation7 + $0x1e0] sm:$0xf0] }
 0x34d   :  { %3261 = vmatpush.bf16.msra.mxu2 %v6838_v24  ;;  %3274 = vmatpush.bf16.msra.mxu3 %v6966_v25  ;;  %v8350_v24 = vld [vmem:[#allocation6 + $0x14] sm:$0xf0]  ;;  %v6890_v25 = vor.u32 %v8384_v21, %v6887_v22  ;;  %v8447_v21 = vld [vmem:[#allocation7 + $0x11c] sm:$0xf0] }
 0x34e   :  { %v6742_v29 = vor.u32 %v8350_v24, %v6741_v23  ;;  %3293 = vmatpush.bf16.msra.mxu0 %v6746_v28  ;;  %v7885_v22 = vld [vmem:[#allocation7 + $0x700] sm:$0xf]  ;;  %v7662_v23 = vor.u32 %v8583_v14, %v7661_v12  ;;  %v7118_v30 = vor.u32 %v8447_v21, %v7117_v20  ;;  %v7439_v21 = vld [vmem:[#allocation7 + $0x3a0] sm:$0xf0] }
 0x34f   :  { %3305 = vmatpush.bf16.msra.mxu1 %v6890_v25  ;;  %v8639_v24 = vld [vmem:[#allocation7 + $0x71c] sm:$0xf0] }
 0x350   :  { %v7629_v25 = vld [vmem:[#allocation7 + $0x500] sm:$0xf] }
 0x351   :  { %3262 = vmatpush.bf16.msra.mxu2 %v6822_v1  ;;  %3275 = vmatpush.bf16.msra.mxu3 %v6950_v39  ;;  %v2764_v1 = vld [vmem:[%s9205_s8 + $0x7] sm:$0x3]  ;;  %v7853_v28 = vld [vmem:[#allocation7 + $0x6c0] sm:$0xf] }
 0x352   :  { %v2766_v39 = vperm.slane %v2764_v1, 0  ;;  %v2767_v40 = vperm.slane %v2764_v1, 1  ;;  %v8631_v1 = vld [vmem:[#allocation7 + $0x6dc] sm:$0xf0] }
 0x353   :  { %3306 = vmatpush.bf16.msra.mxu1 %v6874_v36  ;;  %v7630_v36 = vor.u32 %v8575_v26, %v7629_v25  ;;  %v7565_v50 = vld [vmem:[#allocation7 + $0x480] sm:$0xf]  ;;  %v8515_v26 = vld [vmem:[#allocation7 + $0x344] sm:$0xf] }
 0x354   :  { %v8559_v51 = vld [vmem:[#allocation7 + $0x49c] sm:$0xf0] }
 0x355   :  { %3263 = vmatpush.bf16.msra.mxu2 %v6806_v48  ;;  %3276 = vmatpush.bf16.msra.mxu3 %v6934_v47  ;;  %v7021_v58 = vld [vmem:[#allocation7 + $0x40] sm:$0xf] }
 0x356   :  { %v8423_v59 = vld [vmem:[#allocation7 + $0x5c] sm:$0xf0] }
 0x357   :  { %v7789_v61 = vld [vmem:[#allocation7 + $0x640] sm:$0xf] }
 0x358   :  { %v8615_v63 = vld [vmem:[#allocation7 + $0x65c] sm:$0xf0] }
 0x359   :  { %3264 = vmatpush.bf16.msra.mxu2 %v6790_v56  ;;  %3277 = vmatpush.bf16.msra.mxu3 %v6918_v60  ;;  %v8527_v56 = vld [vmem:[#allocation7 + $0x39c] sm:$0xf0]  ;;  %v7982_v60 = vor.u32 %v8663_v49, %v7981_v46  ;;  %v7854_v46 = vor.u32 %v8631_v1, %v7853_v28  ;;  %v7375_v28 = vld [vmem:[#allocation7 + $0x320] sm:$0xf0] }
 0x35a   :  { %v7438_v3 = vor.u32 %v8527_v56, %v7437_v55  ;;  %v8623_v49 = vld [vmem:[#allocation7 + $0x69c] sm:$0xf0]  ;;  %v8499_v1 = vld [vmem:[#allocation7 + $0x2c4] sm:$0xf] }
 0x35b   :  { %v7277_v55 = vld [vmem:[#allocation7 + $0x240] sm:$0xf] }
 0x35c   :  { %v8487_v56 = vld [vmem:[#allocation7 + $0x25c] sm:$0xf0] }
 0x35d   :  { %3265 = vmatpush.bf16.msra.mxu2 %v6774_v5  ;;  %3278 = vmatpush.bf16.msra.mxu3 %v6902_v17  ;;  %v8519_v5 = vld [vmem:[#allocation7 + $0x35c] sm:$0xf0] }
 0x35e   :  { %v7149_v17 = vld [vmem:[#allocation7 + $0x140] sm:$0xf]  ;;  %v7406_v34 = vor.u32 %v8519_v5, %v7405_v4  ;;  %v7022_v4 = vor.u32 %v8423_v59, %v7021_v58  ;;  %v8531_v5 = vld [vmem:[#allocation7 + $0x3c4] sm:$0xf] }
 0x35f   :  { %v7150_v18 = vor.u32 %v8455_v8, %v7149_v17  ;;  %v7533_v0 = vld [vmem:[#allocation7 + $0x440] sm:$0xf]  ;;  %v7471_v8 = vld [vmem:[#allocation7 + $0x3e0] sm:$0xf0] }
 0x360   :  { %v8551_v2 = vld [vmem:[#allocation7 + $0x45c] sm:$0xf0]  ;;  %v7727_v58 = vld [vmem:[#allocation7 + $0x5e0] sm:$0xf0] }
 0x361   :  { %3266 = vmatpush.bf16.msra.mxu2 %v6758_v15  ;;  %3279 = vmatpush.bf16.msra.mxu3 %v6886_v19  ;;  %v7373_v15 = vld [vmem:[#allocation7 + $0x300] sm:$0xf]  ;;  %v7534_v17 = vor.u32 %v8551_v2, %v7533_v0  ;;  %v7919_v0 = vld [vmem:[#allocation7 + $0x760] sm:$0xf0] }
 0x362   :  { %v8511_v19 = vld [vmem:[#allocation7 + $0x31c] sm:$0xf0] }
 0x363   :  { %v7374_v27 = vor.u32 %v8511_v19, %v7373_v15  ;;  %v8607_v11 = vld [vmem:[#allocation7 + $0x61c] sm:$0xf0]  ;;  %v7983_v15 = vld [vmem:[#allocation7 + $0x7e0] sm:$0xf0]  ;;  %v7474_v19 = vor.u32 %v8531_v5, %v7471_v8 }
 0x364   :  { %v7695_v5 = vld [vmem:[#allocation7 + $0x5a0] sm:$0xf0] }
 0x365   :  { %3267 = vmatpush.bf16.msra.mxu2 %v6742_v29  ;;  %3280 = vmatpush.bf16.msra.mxu3 %v6870_v37  ;;  %v8503_v29 = vld [vmem:[#allocation7 + $0x2dc] sm:$0xf0]  ;;  %v7886_v37 = vor.u32 %v8639_v24, %v7885_v22  ;;  %v7183_v22 = vld [vmem:[#allocation7 + $0x1a0] sm:$0xf0] }
 0x366   :  { %v7342_v41 = vor.u32 %v8503_v29, %v7341_v13  ;;  %v7407_v13 = vld [vmem:[#allocation7 + $0x360] sm:$0xf0] }
 0x367   :  { %v8451_v29 = vld [vmem:[#allocation7 + $0x144] sm:$0xf] }
 0x3cb   :  { %v2795_v43 = vpop.f32.mrf.mxu2  ;;  %v2808_v48 = vpop.f32.mrf.mxu3 }
 0x3cc   :  { %v2796_v47 = vadd.f32 %v2795_v43, %v2766_v39  ;;  %v2809_v33 = vadd.f32 %v2808_v48, %v2767_v40  ;;  %v7597_v39 = vld [vmem:[#allocation7 + $0x4c0] sm:$0xf]  ;;  %v7086_v48 = vor.u32 %v8439_v32, %v7085_v31  ;;  %v7410_v31 = vor.u32 %v8515_v26, %v7407_v13  ;;  %v8619_v26 = vld [vmem:[#allocation7 + $0x684] sm:$0xf] }
 0x3cd   :  { %v8567_v40 = vld [vmem:[#allocation7 + $0x4dc] sm:$0xf0] }
 0x3ce   :  { %v9082_v52 = vpack.c.bf16 %v2796_v47, %v2796_v47  ;;  %v9084_v53 = vpack.c.bf16 %v2809_v33, %v2809_v33  ;;  %v8495_v43 = vld [vmem:[#allocation7 + $0x29c] sm:$0xf0]  ;;  %v7598_v33 = vor.u32 %v8567_v40, %v7597_v39  ;;  %v7343_v39 = vld [vmem:[#allocation7 + $0x2e0] sm:$0xf0] }
 0x3cf   :  { %v7821_v47 = vld [vmem:[#allocation7 + $0x680] sm:$0xf]  ;;  %v7346_v40 = vor.u32 %v8499_v1, %v7343_v39  ;;  %v7567_v1 = vld [vmem:[#allocation7 + $0x4a0] sm:$0xf0] }
 0x3d0   :  { %3216 = vmatmul.bf16.vlgmr.msrb.gmra.mxu2 %v9082_v52  ;;  %3229 = vmatmul.bf16.vlgmr.msrb.gmra.mxu3 %v9084_v53 }
 0x3d1   :  { %3242 = vmatmul.bf16.vlgmr.msrb.gmra.mxu0 %v9082_v52  ;;  %3255 = vmatmul.bf16.vlgmr.msrb.gmra.mxu1 %v9084_v53 }
 0x3d2   :  { %4891 = vmatpush.bf16.msrb.mxu3 %v7470_v54  ;;  %4878 = vmatpush.bf16.msrb.mxu2 %v7214_v57  ;;  %v7310_v54 = vor.u32 %v8495_v43, %v7309_v42  ;;  %v7054_v57 = vor.u32 %v8431_v45, %v7053_v44  ;;  %v7119_v42 = vld [vmem:[#allocation7 + $0x120] sm:$0xf0] }
 0x3d3   :  { %v2797_v9 = vpop.f32.mrf.mxu2  ;;  %v2810_v16 = vpop.f32.mrf.mxu3  ;;  %4917 = vmatpush.bf16.msrb.mxu1 %v7982_v60  ;;  %4904 = vmatpush.bf16.msrb.mxu0 %v7726_v62  ;;  %v7822_v60 = vor.u32 %v8623_v49, %v7821_v47  ;;  %v7566_v62 = vor.u32 %v8559_v51, %v7565_v50  ;;  %v7311_v44 = vld [vmem:[#allocation7 + $0x2a0] sm:$0xf0]  ;;  %v8543_v49 = vld [vmem:[#allocation7 + $0x41c] sm:$0xf0] }
 0x3d4   :  { %v8415_v9 = vld [vmem:[#allocation7 + $0x1c] sm:$0xf0]  ;;  %v7790_v16 = vor.u32 %v8615_v63, %v7789_v61  ;;  %v8651_v45 = vld [vmem:[#allocation7 + $0x784] sm:$0xf] }
 0x3d5   :  { %v7951_v47 = vld [vmem:[#allocation7 + $0x7a0] sm:$0xf0] }
 0x3d6   :  { %4892 = vmatpush.bf16.msrb.mxu3 %v7438_v3  ;;  %4879 = vmatpush.bf16.msrb.mxu2 %v7182_v7  ;;  %v8479_v3 = vld [vmem:[#allocation7 + $0x21c] sm:$0xf0]  ;;  %v7954_v50 = vor.u32 %v8651_v45, %v7951_v47  ;;  %v7279_v61 = vld [vmem:[#allocation7 + $0x260] sm:$0xf0] }
 0x3d7   :  { %4918 = vmatpush.bf16.msrb.mxu1 %v7950_v35  ;;  %4905 = vmatpush.bf16.msrb.mxu0 %v7694_v38  ;;  %v6989_v7 = vld [vmem:[#allocation7] sm:$0xf]  ;;  %v8467_v35 = vld [vmem:[#allocation7 + $0x1c4] sm:$0xf] }
 0x3d8   :  { %v7757_v38 = vld [vmem:[#allocation7 + $0x600] sm:$0xf]  ;;  %v6990_v14 = vor.u32 %v8415_v9, %v6989_v7  ;;  %v7218_v20 = vor.u32 %v8467_v35, %v7215_v10  ;;  %v8475_v9 = vld [vmem:[#allocation7 + $0x204] sm:$0xf] }
 0x3d9   :  { %v7887_v35 = vld [vmem:[#allocation7 + $0x720] sm:$0xf0] }
 0x3da   :  { %4893 = vmatpush.bf16.msrb.mxu3 %v7406_v34  ;;  %4880 = vmatpush.bf16.msrb.mxu2 %v7150_v18  ;;  %v8659_v34 = vld [vmem:[#allocation7 + $0x7c4] sm:$0xf] }
 0x3db   :  { %4919 = vmatpush.bf16.msrb.mxu1 %v7918_v6  ;;  %4906 = vmatpush.bf16.msrb.mxu0 %v7662_v23  ;;  %v8523_v18 = vld [vmem:[#allocation7 + $0x384] sm:$0xf]  ;;  %v7758_v23 = vor.u32 %v8607_v11, %v7757_v38  ;;  %v7986_v24 = vor.u32 %v8659_v34, %v7983_v15 }
 0x3dc   :  { %v8459_v6 = vld [vmem:[#allocation7 + $0x184] sm:$0xf]  ;;  %v7442_v25 = vor.u32 %v8523_v18, %v7439_v21 }
 0x3dd   :  { %v8419_v38 = vld [vmem:[#allocation7 + $0x44] sm:$0xf] }
 0x3de   :  { %4894 = vmatpush.bf16.msrb.mxu3 %v7374_v27  ;;  %4881 = vmatpush.bf16.msrb.mxu2 %v7118_v30  ;;  %v7186_v27 = vor.u32 %v8459_v6, %v7183_v22  ;;  %v7151_v30 = vld [vmem:[#allocation7 + $0x160] sm:$0xf0] }
 0x3df   :  { %4920 = vmatpush.bf16.msrb.mxu1 %v7886_v37  ;;  %4907 = vmatpush.bf16.msrb.mxu0 %v7630_v36  ;;  %v7154_v32 = vor.u32 %v8451_v29, %v7151_v30  ;;  %v8507_v37 = vld [vmem:[#allocation7 + $0x304] sm:$0xf] }
 0x3e0   :  { %3268 = vmatmul.bf16.vlgmr.msra.gmra.mxu2 %v9082_v52  ;;  %3281 = vmatmul.bf16.vlgmr.msra.gmra.mxu3 %v9084_v53  ;;  %v7378_v36 = vor.u32 %v8507_v37, %v7375_v28  ;;  %v7023_v11 = vld [vmem:[#allocation7 + $0x60] sm:$0xf0] }
 0x3e1   :  { %3294 = vmatmul.bf16.vlgmr.msra.gmra.mxu0 %v9082_v52  ;;  %3307 = vmatmul.bf16.vlgmr.msra.gmra.mxu1 %v9084_v53  ;;  %v7278_v52 = vor.u32 %v8487_v56, %v7277_v55  ;;  %v7245_v53 = vld [vmem:[#allocation7 + $0x200] sm:$0xf]  ;;  %v7087_v55 = vld [vmem:[#allocation7 + $0xe0] sm:$0xf0] }
 0x3e2   :  { %4895 = vmatpush.bf16.msrb.mxu3 %v7342_v41  ;;  %4882 = vmatpush.bf16.msrb.mxu2 %v7086_v48  ;;  %v7246_v12 = vor.u32 %v8479_v3, %v7245_v53  ;;  %v8443_v41 = vld [vmem:[#allocation7 + $0x104] sm:$0xf] }
 0x3e3   :  { %4921 = vmatpush.bf16.msrb.mxu1 %v7854_v46  ;;  %4908 = vmatpush.bf16.msrb.mxu0 %v7598_v33  ;;  %v7122_v43 = vor.u32 %v8443_v41, %v7119_v42  ;;  %v8491_v48 = vld [vmem:[#allocation7 + $0x284] sm:$0xf]  ;;  %v7501_v33 = vld [vmem:[#allocation7 + $0x400] sm:$0xf] }
 0x3e4   :  { %v7314_v46 = vor.u32 %v8491_v48, %v7311_v44  ;;  %v7502_v51 = vor.u32 %v8543_v49, %v7501_v33  ;;  %v8595_v56 = vld [vmem:[#allocation7 + $0x5c4] sm:$0xf] }
 0x3e5   :  { %v7730_v59 = vor.u32 %v8595_v56, %v7727_v58  ;;  %v7055_v53 = vld [vmem:[#allocation7 + $0xa0] sm:$0xf0] }
 0x3e6   :  { %4896 = vmatpush.bf16.msrb.mxu3 %v7310_v54  ;;  %4883 = vmatpush.bf16.msrb.mxu2 %v7054_v57  ;;  %v8435_v54 = vld [vmem:[#allocation7 + $0xc4] sm:$0xf] }
 0x3e7   :  { %4922 = vmatpush.bf16.msrb.mxu1 %v7822_v60  ;;  %4909 = vmatpush.bf16.msrb.mxu0 %v7566_v62  ;;  %v7090_v57 = vor.u32 %v8435_v54, %v7087_v55  ;;  %v8483_v60 = vld [vmem:[#allocation7 + $0x244] sm:$0xf] }
 0x3e8   :  { %v8643_v62 = vld [vmem:[#allocation7 + $0x744] sm:$0xf]  ;;  %v7282_v63 = vor.u32 %v8483_v60, %v7279_v61  ;;  %v7477_v60 = vld [vmem:[#allocation7 + $0x3c8] sm:$0xf] }
 0x3e9   :  { %v7922_v2 = vor.u32 %v8643_v62, %v7919_v0  ;;  %v7663_v34 = vld [vmem:[#allocation7 + $0x560] sm:$0xf0]  ;;  %v8536_v61 = vld [vmem:[#allocation7 + $0x3e4] sm:$0xf0] }
 0x3ea   :  { %4897 = vmatpush.bf16.msrb.mxu3 %v7278_v52  ;;  %4884 = vmatpush.bf16.msrb.mxu2 %v7022_v4  ;;  %v8427_v52 = vld [vmem:[#allocation7 + $0x84] sm:$0xf] }
 0x3eb   :  { %4923 = vmatpush.bf16.msrb.mxu1 %v7790_v16  ;;  %4910 = vmatpush.bf16.msrb.mxu0 %v7534_v17  ;;  %v7058_v3 = vor.u32 %v8427_v52, %v7055_v53  ;;  %v8587_v4 = vld [vmem:[#allocation7 + $0x584] sm:$0xf]  ;;  %v7478_v53 = vor.u32 %v8536_v61, %v7477_v60  ;;  %v8600_v60 = vld [vmem:[#allocation7 + $0x5e4] sm:$0xf0] }
 0x3ec   :  { %v7698_v7 = vor.u32 %v8587_v4, %v7695_v5  ;;  %v7247_v16 = vld [vmem:[#allocation7 + $0x220] sm:$0xf0]  ;;  %v7445_v4 = vld [vmem:[#allocation7 + $0x388] sm:$0xf] }
 0x3ed   :  { %v8635_v17 = vld [vmem:[#allocation7 + $0x704] sm:$0xf]  ;;  %v7250_v8 = vor.u32 %v8475_v9, %v7247_v16  ;;  %v8528_v5 = vld [vmem:[#allocation7 + $0x3a4] sm:$0xf0] }
 0x3ee   :  { %4898 = vmatpush.bf16.msrb.mxu3 %v7246_v12  ;;  %4885 = vmatpush.bf16.msrb.mxu2 %v6990_v14  ;;  %v7890_v10 = vor.u32 %v8635_v17, %v7887_v35  ;;  %v8579_v12 = vld [vmem:[#allocation7 + $0x544] sm:$0xf]  ;;  %v7026_v14 = vor.u32 %v8419_v38, %v7023_v11  ;;  %v7221_v9 = vld [vmem:[#allocation7 + $0x1c8] sm:$0xf] }
 0x3ef   :  { %4924 = vmatpush.bf16.msrb.mxu1 %v7758_v23  ;;  %4911 = vmatpush.bf16.msrb.mxu0 %v7502_v51  ;;  %v7666_v15 = vor.u32 %v8579_v12, %v7663_v34  ;;  %v7855_v18 = vld [vmem:[#allocation7 + $0x6e0] sm:$0xf0]  ;;  %v8472_v16 = vld [vmem:[#allocation7 + $0x1e4] sm:$0xf0] }
 0x3f0   :  { %v8411_v21 = vld [vmem:[#allocation7 + $0x4] sm:$0xf]  ;;  %v7222_v11 = vor.u32 %v8472_v16, %v7221_v9  ;;  %v7413_v12 = vld [vmem:[#allocation7 + $0x348] sm:$0xf] }
 0x3f1   :  { %v6991_v6 = vld [vmem:[#allocation7 + $0x20] sm:$0xf0] }
 0x3f2   :  { %4943 = vmatpush.bf16.msra.mxu3 %v7474_v19  ;;  %4930 = vmatpush.bf16.msra.mxu2 %v7218_v20  ;;  %v8627_v19 = vld [vmem:[#allocation7 + $0x6c4] sm:$0xf]  ;;  %v6994_v23 = vor.u32 %v8411_v21, %v6991_v6 }
 0x3f3   :  { %4969 = vmatpush.bf16.msra.mxu1 %v7986_v24  ;;  %4956 = vmatpush.bf16.msra.mxu0 %v7730_v59  ;;  %v7858_v20 = vor.u32 %v8627_v19, %v7855_v18  ;;  %v8571_v22 = vld [vmem:[#allocation7 + $0x504] sm:$0xf]  ;;  %v8464_v19 = vld [vmem:[#allocation7 + $0x1a4] sm:$0xf0] }
 0x3f4   :  { %v7631_v24 = vld [vmem:[#allocation7 + $0x520] sm:$0xf0] }
 0x3f5   :  { %v8563_v29 = vld [vmem:[#allocation7 + $0x4c4] sm:$0xf] }
 0x3f6   :  { %4944 = vmatpush.bf16.msra.mxu3 %v7442_v25  ;;  %4931 = vmatpush.bf16.msra.mxu2 %v7186_v27  ;;  %v7634_v25 = vor.u32 %v8571_v22, %v7631_v24  ;;  %v7823_v27 = vld [vmem:[#allocation7 + $0x6a0] sm:$0xf0]  ;;  %v8512_v24 = vld [vmem:[#allocation7 + $0x324] sm:$0xf0] }
 0x3f7   :  { %4970 = vmatpush.bf16.msra.mxu1 %v7954_v50  ;;  %4957 = vmatpush.bf16.msra.mxu0 %v7698_v7  ;;  %v7826_v13 = vor.u32 %v8619_v26, %v7823_v27  ;;  %v7599_v30 = vld [vmem:[#allocation7 + $0x4e0] sm:$0xf0]  ;;  %v7157_v26 = vld [vmem:[#allocation7 + $0x148] sm:$0xf] }
 0x3f8   :  { %v7791_v37 = vld [vmem:[#allocation7 + $0x660] sm:$0xf0]  ;;  %v8456_v27 = vld [vmem:[#allocation7 + $0x164] sm:$0xf0] }
 0x3f9   :  { %v7759_v41 = vld [vmem:[#allocation7 + $0x620] sm:$0xf0] }
 0x3fa   :  { %4945 = vmatpush.bf16.msra.mxu3 %v7410_v31  ;;  %4932 = vmatpush.bf16.msra.mxu2 %v7154_v32  ;;  %v7602_v31 = vor.u32 %v8563_v29, %v7599_v30  ;;  %v8611_v32 = vld [vmem:[#allocation7 + $0x644] sm:$0xf]  ;;  %v7349_v30 = vld [vmem:[#allocation7 + $0x2c8] sm:$0xf] }
 0x3fb   :  { %4971 = vmatpush.bf16.msra.mxu1 %v7922_v2  ;;  %4958 = vmatpush.bf16.msra.mxu0 %v7666_v15  ;;  %v7794_v28 = vor.u32 %v8611_v32, %v7791_v37  ;;  %v8547_v48 = vld [vmem:[#allocation7 + $0x444] sm:$0xf]  ;;  %v7189_v15 = vld [vmem:[#allocation7 + $0x188] sm:$0xf] }
 0x3fc   :  { %v7535_v44 = vld [vmem:[#allocation7 + $0x460] sm:$0xf0]  ;;  %v7190_v22 = vor.u32 %v8464_v19, %v7189_v15  ;;  %v7893_v15 = vld [vmem:[#allocation7 + $0x708] sm:$0xf] }
 0x3fd   :  { %v7538_v45 = vor.u32 %v8547_v48, %v7535_v44  ;;  %v8539_v47 = vld [vmem:[#allocation7 + $0x404] sm:$0xf]  ;;  %v8640_v19 = vld [vmem:[#allocation7 + $0x724] sm:$0xf0] }
 0x3fe   :  { %4946 = vmatpush.bf16.msra.mxu3 %v7378_v36  ;;  %4933 = vmatpush.bf16.msra.mxu2 %v7122_v43  ;;  %v8555_v36 = vld [vmem:[#allocation7 + $0x484] sm:$0xf]  ;;  %v9097_v43 = vld [vmem:[%s9205_s8 + $0x9] sm:$0xf] }
 0x3ff   :  { %4972 = vmatpush.bf16.msra.mxu1 %v7890_v10  ;;  %4959 = vmatpush.bf16.msra.mxu0 %v7634_v25  ;;  %v7570_v39 = vor.u32 %v8555_v36, %v7567_v1  ;;  %v7503_v33 = vld [vmem:[#allocation7 + $0x420] sm:$0xf0]  ;;  %v2880_v55 = vperm.slane %v9097_v43, 0  ;;  %v2883_v38 = vperm.slane %v9097_v43, 3  ;;  %v2882_v25 = vperm.slane %v9097_v43, 2 }
 0x400   :  { %v7506_v49 = vor.u32 %v8539_v47, %v7503_v33  ;;  %v7158_v36 = vor.u32 %v8456_v27, %v7157_v26  ;;  %v7989_v1 = vld [vmem:[#allocation7 + $0x7c8] sm:$0xf]  ;;  %v7894_v27 = vor.u32 %v8640_v19, %v7893_v15 }
 0x401   :  { %v7317_v33 = vld [vmem:[#allocation7 + $0x288] sm:$0xf] }
 0x402   :  { %4947 = vmatpush.bf16.msra.mxu3 %v7346_v40  ;;  %4934 = vmatpush.bf16.msra.mxu2 %v7090_v57  ;;  %v8603_v40 = vld [vmem:[#allocation7 + $0x604] sm:$0xf]  ;;  %v7541_v15 = vld [vmem:[#allocation7 + $0x448] sm:$0xf] }
 0x403   :  { %4973 = vmatpush.bf16.msra.mxu1 %v7858_v20  ;;  %4960 = vmatpush.bf16.msra.mxu0 %v7602_v31  ;;  %v7762_v42 = vor.u32 %v8603_v40, %v7759_v41  ;;  %v8504_v31 = vld [vmem:[#allocation7 + $0x2e4] sm:$0xf0] }
 0x404   :  { %v7125_v41 = vld [vmem:[#allocation7 + $0x108] sm:$0xf] }
 0x405   :  { %v8552_v19 = vld [vmem:[#allocation7 + $0x464] sm:$0xf0] }
 0x406   :  { %4948 = vmatpush.bf16.msra.mxu3 %v7314_v46  ;;  %4935 = vmatpush.bf16.msra.mxu2 %v7058_v3  ;;  %v2881_v46 = vperm.slane %v9097_v43, 1 }
 0x407   :  { %4974 = vmatpush.bf16.msra.mxu1 %v7826_v13  ;;  %4961 = vmatpush.bf16.msra.mxu0 %v7570_v39  ;;  %v8664_v39 = vld [vmem:[#allocation7 + $0x7e4] sm:$0xf0] }
 0x408   :  { %v7990_v47 = vor.u32 %v8664_v39, %v7989_v1  ;;  %v8416_v1 = vld [vmem:[#allocation7 + $0x24] sm:$0xf0] }
 0x409   :  { %v7637_v39 = vld [vmem:[#allocation7 + $0x508] sm:$0xf] }
 0x40a   :  { %4949 = vmatpush.bf16.msra.mxu3 %v7282_v63  ;;  %4936 = vmatpush.bf16.msra.mxu2 %v7026_v14  ;;  %v8520_v14 = vld [vmem:[#allocation7 + $0x364] sm:$0xf0] }
 0x40b   :  { %4975 = vmatpush.bf16.msra.mxu1 %v7794_v28  ;;  %4962 = vmatpush.bf16.msra.mxu0 %v7538_v45  ;;  %v7414_v21 = vor.u32 %v8520_v14, %v7413_v12  ;;  %v7253_v12 = vld [vmem:[#allocation7 + $0x208] sm:$0xf] }
 0x40c   :  { %v8480_v14 = vld [vmem:[#allocation7 + $0x224] sm:$0xf0] }
 0x40d   :  { %v7254_v26 = vor.u32 %v8480_v14, %v7253_v12  ;;  %v7991_v12 = vld [vmem:[#allocation7 + $0x7e8] sm:$0xf0] }
 0x40e   :  { %4950 = vmatpush.bf16.msra.mxu3 %v7250_v8  ;;  %4937 = vmatpush.bf16.msra.mxu2 %v6994_v23  ;;  %v7446_v8 = vor.u32 %v8528_v5, %v7445_v4  ;;  %v7381_v23 = vld [vmem:[#allocation7 + $0x308] sm:$0xf] }
 0x40f   :  { %4976 = vmatpush.bf16.msra.mxu1 %v7762_v42  ;;  %4963 = vmatpush.bf16.msra.mxu0 %v7506_v49  ;;  %v7382_v29 = vor.u32 %v8512_v24, %v7381_v23  ;;  %v8448_v42 = vld [vmem:[#allocation7 + $0x124] sm:$0xf0] }
 0x410   :  { %v7925_v4 = vld [vmem:[#allocation7 + $0x748] sm:$0xf] }
 0x411   :  { %v8648_v5 = vld [vmem:[#allocation7 + $0x764] sm:$0xf0] }
 0x412   :  { %v8424_v23 = vld [vmem:[#allocation7 + $0x64] sm:$0xf0] }
 0x413   :  { %v7669_v24 = vld [vmem:[#allocation7 + $0x548] sm:$0xf] }
 0x44e   :  { %v3243_v50 = vpop.f32.mrf.mxu0  ;;  %v3256_v51 = vpop.f32.mrf.mxu1 }
 0x44f   :  { %v3244_v54 = vadd.f32 %v3243_v50, %v2881_v46  ;;  %v7350_v46 = vor.u32 %v8504_v31, %v7349_v30  ;;  %v7126_v50 = vor.u32 %v8448_v42, %v7125_v41  ;;  %v8632_v30 = vld [vmem:[#allocation7 + $0x6e4] sm:$0xf0]  ;;  %v8468_v42 = vld [vmem:[#allocation7 + $0x1cc] sm:$0xf] }
 0x451   :  { %v3257_v56 = vadd.f32 %v3256_v51, %v3244_v54  ;;  %v8496_v51 = vld [vmem:[#allocation7 + $0x2a4] sm:$0xf0] }
 0x452   :  { %v7957_v54 = vld [vmem:[#allocation7 + $0x788] sm:$0xf] }
 0x453   :  { %v3313_v57 = vmul.f32 0.01, %v3257_v56  ;;  %v3217_v58 = vpop.f32.mrf.mxu2  ;;  %v3230_v59 = vpop.f32.mrf.mxu3 }
 0x454   :  { %v3218_v62 = vadd.f32 %v3217_v58, %v2880_v55  ;;  %v8656_v55 = vld [vmem:[#allocation7 + $0x7a4] sm:$0xf0] }
 0x455   :  { %v3317_v63 = vmax.f32 %v3257_v56, %v3313_v57  ;;  %v7093_v57 = vld [vmem:[#allocation7 + $0xc8] sm:$0xf] }
 0x456   :  { %v3231_v0 = vadd.f32 %v3230_v59, %v3218_v62  ;;  %v3245_v2 = vpop.f32.mrf.mxu0  ;;  %v3258_v52 = vpop.f32.mrf.mxu1  ;;  %v8440_v58 = vld [vmem:[#allocation7 + $0xe4] sm:$0xf0]  ;;  %v7318_v62 = vor.u32 %v8496_v51, %v7317_v33  ;;  %v8516_v33 = vld [vmem:[#allocation7 + $0x34c] sm:$0xf] }
 0x457   :  { %v9101_v3 = vpack.c.bf16 %v3317_v63, %v3317_v63  ;;  %v7733_v59 = vld [vmem:[#allocation7 + $0x5c8] sm:$0xf]  ;;  %v7958_v63 = vor.u32 %v8656_v55, %v7957_v54  ;;  %v7094_v9 = vor.u32 %v8440_v58, %v7093_v57  ;;  %v8460_v57 = vld [vmem:[#allocation7 + $0x18c] sm:$0xf] }
 0x458   :  { %v3312_v7 = vmul.f32 0.01, %v3231_v0  ;;  %v7734_v16 = vor.u32 %v8600_v60, %v7733_v59  ;;  %v7605_v54 = vld [vmem:[#allocation7 + $0x4c8] sm:$0xf]  ;;  %v7191_v58 = vld [vmem:[#allocation7 + $0x1a8] sm:$0xf0] }
 0x459   :  { %4899 = vmatmul.bf16.vlgmr.msrb.gmra.mxu3 %v9101_v3  ;;  %v8568_v55 = vld [vmem:[#allocation7 + $0x4e4] sm:$0xf0] }
 0x45a   :  { %v3316_v17 = vmax.f32 %v3231_v0, %v3312_v7  ;;  %4995 = vmatpush.bf16.msrb.mxu3 %v7478_v53  ;;  %v7285_v0 = vld [vmem:[#allocation7 + $0x248] sm:$0xf] }
 0x45b   :  { %v3219_v35 = vpop.f32.mrf.mxu2  ;;  %v3232_v10 = vpop.f32.mrf.mxu3  ;;  %v8488_v53 = vld [vmem:[#allocation7 + $0x264] sm:$0xf0] }
 0x45c   :  { %v9105_v34 = vpack.c.bf16 %v3316_v17, %v3316_v17  ;;  %v7061_v17 = vld [vmem:[#allocation7 + $0x88] sm:$0xf] }
 0x45d   :  { %v7701_v35 = vld [vmem:[#allocation7 + $0x588] sm:$0xf] }
 0x45e   :  { %4996 = vmatpush.bf16.msrb.mxu3 %v7446_v8  ;;  %v3295_v18 = vpop.f32.mrf.mxu0  ;;  %v3308_v20 = vpop.f32.mrf.mxu1  ;;  %4886 = vmatmul.bf16.vlgmr.msrb.gmra.mxu2 %v9105_v34  ;;  %v8432_v8 = vld [vmem:[#allocation7 + $0xa4] sm:$0xf0] }
 0x45f   :  { %v3296_v6 = vadd.f32 %v3295_v18, %v2883_v38  ;;  %4982 = vmatpush.bf16.msrb.mxu2 %v7222_v11  ;;  %v8592_v10 = vld [vmem:[#allocation7 + $0x5a4] sm:$0xf0]  ;;  %v7286_v38 = vor.u32 %v8488_v53, %v7285_v0  ;;  %v7926_v11 = vor.u32 %v8648_v5, %v7925_v4  ;;  %v7062_v18 = vor.u32 %v8432_v8, %v7061_v17  ;;  %v7383_v0 = vld [vmem:[#allocation7 + $0x328] sm:$0xf0] }
 0x460   :  { %v7797_v60 = vld [vmem:[#allocation7 + $0x648] sm:$0xf]  ;;  %v8452_v5 = vld [vmem:[#allocation7 + $0x14c] sm:$0xf] }
 0x461   :  { %v3309_v13 = vadd.f32 %v3308_v20, %v3296_v6  ;;  %v7702_v20 = vor.u32 %v8592_v10, %v7701_v35  ;;  %v7479_v6 = vld [vmem:[#allocation7 + $0x3e8] sm:$0xf0]  ;;  %v8560_v53 = vld [vmem:[#allocation7 + $0x4a4] sm:$0xf0] }
 0x462   :  { %4997 = vmatpush.bf16.msrb.mxu3 %v7414_v21  ;;  %v8532_v21 = vld [vmem:[#allocation7 + $0x3cc] sm:$0xf]  ;;  %v7765_v17 = vld [vmem:[#allocation7 + $0x608] sm:$0xf] }
 0x463   :  { %v3315_v32 = vmul.f32 0.01, %v3309_v13  ;;  %4983 = vmatpush.bf16.msrb.mxu2 %v7190_v22  ;;  %v3269_v37 = vpop.f32.mrf.mxu2  ;;  %v3282_v28 = vpop.f32.mrf.mxu3  ;;  %v7029_v22 = vld [vmem:[#allocation7 + $0x48] sm:$0xf]  ;;  %v8500_v35 = vld [vmem:[#allocation7 + $0x2cc] sm:$0xf] }
 0x464   :  { %v3270_v40 = vadd.f32 %v3269_v37, %v2882_v25  ;;  %v8584_v25 = vld [vmem:[#allocation7 + $0x564] sm:$0xf0]  ;;  %v7030_v31 = vor.u32 %v8424_v23, %v7029_v22  ;;  %v8524_v37 = vld [vmem:[#allocation7 + $0x38c] sm:$0xf] }
 0x465   :  { %v3319_v48 = vmax.f32 %v3309_v13, %v3315_v32  ;;  %v7482_v13 = vor.u32 %v8532_v21, %v7479_v6  ;;  %v7670_v32 = vor.u32 %v8584_v25, %v7669_v24  ;;  %v8608_v8 = vld [vmem:[#allocation7 + $0x624] sm:$0xf0]  ;;  %v7127_v21 = vld [vmem:[#allocation7 + $0x128] sm:$0xf0]  ;;  %v7542_v24 = vor.u32 %v8552_v19, %v7541_v15  ;;  %v7229_v15 = vld [vmem:[#allocation7 + $0x1d0] sm:$0xf] }
 0x466   :  { %v3283_v44 = vadd.f32 %v3282_v28, %v3270_v40  ;;  %4998 = vmatpush.bf16.msrb.mxu3 %v7382_v29  ;;  %v3297_v43 = vpop.f32.mrf.mxu0  ;;  %v3310_v45 = vpop.f32.mrf.mxu1  ;;  %v7861_v29 = vld [vmem:[#allocation7 + $0x6c8] sm:$0xf]  ;;  %v7447_v28 = vld [vmem:[#allocation7 + $0x3a8] sm:$0xf0]  ;;  %v8473_v19 = vld [vmem:[#allocation7 + $0x1ec] sm:$0xf0] }
 0x467   :  { %v9109_v49 = vpack.c.bf16 %v3319_v48, %v3319_v48  ;;  %4984 = vmatpush.bf16.msrb.mxu2 %v7158_v36  ;;  %v6997_v36 = vld [vmem:[#allocation7 + $0x8] sm:$0xf]  ;;  %v7862_v41 = vor.u32 %v8632_v30, %v7861_v29  ;;  %v7223_v48 = vld [vmem:[#allocation7 + $0x1e8] sm:$0xf0] }
 0x468   :  { %v3314_v56 = vmul.f32 0.01, %v3283_v44  ;;  %v8576_v40 = vld [vmem:[#allocation7 + $0x524] sm:$0xf0]  ;;  %v7226_v51 = vor.u32 %v8468_v42, %v7223_v48  ;;  %v8492_v23 = vld [vmem:[#allocation7 + $0x28c] sm:$0xf] }
 0x469   :  { %4925 = vmatmul.bf16.vlgmr.msrb.gmra.mxu1 %v9109_v49  ;;  %4951 = vmatmul.bf16.vlgmr.msra.gmra.mxu3 %v9101_v3  ;;  %v7829_v43 = vld [vmem:[#allocation7 + $0x688] sm:$0xf]  ;;  %v7319_v25 = vld [vmem:[#allocation7 + $0x2a8] sm:$0xf0] }
 0x46a   :  { %v3318_v61 = vmax.f32 %v3283_v44, %v3314_v56  ;;  %4999 = vmatpush.bf16.msrb.mxu3 %v7350_v46  ;;  %5021 = vmatpush.bf16.msrb.mxu1 %v7990_v47  ;;  %v7450_v44 = vor.u32 %v8524_v37, %v7447_v28  ;;  %v8624_v45 = vld [vmem:[#allocation7 + $0x6a4] sm:$0xf0]  ;;  %v6998_v46 = vor.u32 %v8416_v1, %v6997_v36  ;;  %v8596_v37 = vld [vmem:[#allocation7 + $0x5cc] sm:$0xf] }
 0x46b   :  { %4985 = vmatpush.bf16.msrb.mxu2 %v7126_v50  ;;  %v3271_v2 = vpop.f32.mrf.mxu2  ;;  %v3284_v52 = vpop.f32.mrf.mxu3  ;;  %v7638_v47 = vor.u32 %v8576_v40, %v7637_v39  ;;  %v7415_v50 = vld [vmem:[#allocation7 + $0x368] sm:$0xf0]  ;;  %v7830_v56 = vor.u32 %v8624_v45, %v7829_v43  ;;  %v7509_v29 = vld [vmem:[#allocation7 + $0x408] sm:$0xf]  ;;  %v7322_v36 = vor.u32 %v8492_v23, %v7319_v25  ;;  %v7421_v23 = vld [vmem:[#allocation7 + $0x350] sm:$0xf]  ;;  %v7230_v25 = vor.u32 %v8473_v19, %v7229_v15 }
 0x46c   :  { %v9113_v7 = vpack.c.bf16 %v3318_v61, %v3318_v61  ;;  %v7418_v59 = vor.u32 %v8516_v33, %v7415_v50  ;;  %v8616_v61 = vld [vmem:[#allocation7 + $0x664] sm:$0xf0]  ;;  %v7194_v2 = vor.u32 %v8460_v57, %v7191_v58  ;;  %v7735_v28 = vld [vmem:[#allocation7 + $0x5e8] sm:$0xf0] }
 0x46d   :  { %v7573_v52 = vld [vmem:[#allocation7 + $0x488] sm:$0xf]  ;;  %v7798_v4 = vor.u32 %v8616_v61, %v7797_v60  ;;  %v8484_v39 = vld [vmem:[#allocation7 + $0x24c] sm:$0xf]  ;;  %v7738_v43 = vor.u32 %v8596_v37, %v7735_v28  ;;  %v7485_v60 = vld [vmem:[#allocation7 + $0x3d0] sm:$0xf] }
 0x46e   :  { %5000 = vmatpush.bf16.msrb.mxu3 %v7318_v62  ;;  %5022 = vmatpush.bf16.msrb.mxu1 %v7958_v63  ;;  %v7606_v62 = vor.u32 %v8568_v55, %v7605_v54  ;;  %v8508_v63 = vld [vmem:[#allocation7 + $0x30c] sm:$0xf]  ;;  %v7574_v10 = vor.u32 %v8560_v53, %v7573_v52  ;;  %v8544_v30 = vld [vmem:[#allocation7 + $0x424] sm:$0xf0]  ;;  %v8537_v61 = vld [vmem:[#allocation7 + $0x3ec] sm:$0xf0] }
 0x46f   :  { %4912 = vmatmul.bf16.vlgmr.msrb.gmra.mxu0 %v9113_v7  ;;  %4938 = vmatmul.bf16.vlgmr.msra.gmra.mxu2 %v9105_v34  ;;  %v7510_v40 = vor.u32 %v8544_v30, %v7509_v29  ;;  %v8644_v42 = vld [vmem:[#allocation7 + $0x74c] sm:$0xf]  ;;  %v7197_v29 = vld [vmem:[#allocation7 + $0x190] sm:$0xf] }
 0x470   :  { %4986 = vmatpush.bf16.msrb.mxu2 %v7094_v9  ;;  %5008 = vmatpush.bf16.msrb.mxu0 %v7734_v16  ;;  %v7159_v9 = vld [vmem:[#allocation7 + $0x168] sm:$0xf0]  ;;  %v7386_v16 = vor.u32 %v8508_v63, %v7383_v0  ;;  %v8465_v30 = vld [vmem:[#allocation7 + $0x1ac] sm:$0xf0] }
 0x471   :  { %v7162_v14 = vor.u32 %v8452_v5, %v7159_v9  ;;  %v7927_v48 = vld [vmem:[#allocation7 + $0x768] sm:$0xf0] }
 0x472   :  { %5001 = vmatpush.bf16.msrb.mxu3 %v7286_v38  ;;  %5023 = vmatpush.bf16.msrb.mxu1 %v7926_v11  ;;  %v7351_v38 = vld [vmem:[#allocation7 + $0x2e8] sm:$0xf0] }
 0x473   :  { %v8660_v11 = vld [vmem:[#allocation7 + $0x7cc] sm:$0xf]  ;;  %v7354_v6 = vor.u32 %v8500_v35, %v7351_v38  ;;  %v8529_v35 = vld [vmem:[#allocation7 + $0x3ac] sm:$0xf0] }
 0x474   :  { %4987 = vmatpush.bf16.msrb.mxu2 %v7062_v18  ;;  %5009 = vmatpush.bf16.msrb.mxu0 %v7702_v20  ;;  %v7766_v18 = vor.u32 %v8608_v8, %v7765_v17  ;;  %v8444_v20 = vld [vmem:[#allocation7 + $0x10c] sm:$0xf]  ;;  %v7994_v22 = vor.u32 %v8660_v11, %v7991_v12  ;;  %v7453_v8 = vld [vmem:[#allocation7 + $0x390] sm:$0xf] }
 0x475   :  { %v8428_v45 = vld [vmem:[#allocation7 + $0x8c] sm:$0xf] }
 0x476   :  { %5002 = vmatpush.bf16.msrb.mxu3 %v7254_v26  ;;  %5024 = vmatpush.bf16.msrb.mxu1 %v7894_v27  ;;  %v8652_v26 = vld [vmem:[#allocation7 + $0x78c] sm:$0xf] }
 0x477   :  { %v7959_v27 = vld [vmem:[#allocation7 + $0x7a8] sm:$0xf0] }
 0x478   :  { %4988 = vmatpush.bf16.msrb.mxu2 %v7030_v31  ;;  %5010 = vmatpush.bf16.msrb.mxu0 %v7670_v32  ;;  %v8436_v31 = vld [vmem:[#allocation7 + $0xcc] sm:$0xf]  ;;  %v7962_v1 = vor.u32 %v8652_v26, %v7959_v27 }
 0x479   :  { %4977 = vmatmul.bf16.vlgmr.msra.gmra.mxu1 %v9109_v49  ;;  %5003 = vmatmul.bf16.vlgmr.msrb.gmra.mxu3 %v9101_v3  ;;  %v7095_v32 = vld [vmem:[#allocation7 + $0xe8] sm:$0xf0] }
 0x47a   :  { %5047 = vmatpush.bf16.msra.mxu3 %v7482_v13  ;;  %5025 = vmatpush.bf16.msrb.mxu1 %v7862_v41  ;;  %v7130_v13 = vor.u32 %v8444_v20, %v7127_v21  ;;  %v7287_v41 = vld [vmem:[#allocation7 + $0x268] sm:$0xf0] }
 0x47b   :  { %v7703_v33 = vld [vmem:[#allocation7 + $0x5a8] sm:$0xf0]  ;;  %v7290_v50 = vor.u32 %v8484_v39, %v7287_v41  ;;  %v7198_v39 = vor.u32 %v8465_v30, %v7197_v29  ;;  %v8641_v29 = vld [vmem:[#allocation7 + $0x72c] sm:$0xf0] }
 0x47c   :  { %4989 = vmatpush.bf16.msrb.mxu2 %v6998_v46  ;;  %5011 = vmatpush.bf16.msrb.mxu0 %v7638_v47  ;;  %v7063_v46 = vld [vmem:[#allocation7 + $0xa8] sm:$0xf0] }
 0x47d   :  { %v8588_v47 = vld [vmem:[#allocation7 + $0x58c] sm:$0xf]  ;;  %v7066_v58 = vor.u32 %v8428_v45, %v7063_v46 }
 0x47e   :  { %5048 = vmatpush.bf16.msra.mxu3 %v7450_v44  ;;  %5026 = vmatpush.bf16.msrb.mxu1 %v7830_v56  ;;  %v7098_v44 = vor.u32 %v8436_v31, %v7095_v32  ;;  %v8476_v54 = vld [vmem:[#allocation7 + $0x20c] sm:$0xf] }
 0x47f   :  { %4964 = vmatmul.bf16.vlgmr.msra.gmra.mxu0 %v9113_v7  ;;  %4990 = vmatmul.bf16.vlgmr.msrb.gmra.mxu2 %v9105_v34  ;;  %v7255_v55 = vld [vmem:[#allocation7 + $0x228] sm:$0xf0] }
 0x480   :  { %5034 = vmatpush.bf16.msra.mxu2 %v7226_v51  ;;  %5012 = vmatpush.bf16.msrb.mxu0 %v7606_v62  ;;  %v7930_v51 = vor.u32 %v8644_v42, %v7927_v48  ;;  %v8636_v56 = vld [vmem:[#allocation7 + $0x70c] sm:$0xf]  ;;  %v7258_v52 = vor.u32 %v8476_v54, %v7255_v55  ;;  %v7165_v48 = vld [vmem:[#allocation7 + $0x150] sm:$0xf] }
 0x481   :  { %v7895_v57 = vld [vmem:[#allocation7 + $0x728] sm:$0xf0]  ;;  %v8665_v54 = vld [vmem:[#allocation7 + $0x7ec] sm:$0xf0] }
 0x482   :  { %5049 = vmatpush.bf16.msra.mxu3 %v7418_v59  ;;  %5027 = vmatpush.bf16.msrb.mxu1 %v7798_v4  ;;  %v7706_v59 = vor.u32 %v8588_v47, %v7703_v33  ;;  %v8420_v62 = vld [vmem:[#allocation7 + $0x4c] sm:$0xf]  ;;  %v7898_v53 = vor.u32 %v8636_v56, %v7895_v57  ;;  %v7486_v4 = vor.u32 %v8537_v61, %v7485_v60  ;;  %v7357_v47 = vld [vmem:[#allocation7 + $0x2d0] sm:$0xf] }
 0x483   :  { %v7031_v63 = vld [vmem:[#allocation7 + $0x68] sm:$0xf0]  ;;  %v8449_v60 = vld [vmem:[#allocation7 + $0x12c] sm:$0xf0] }
 0x484   :  { %5035 = vmatpush.bf16.msra.mxu2 %v7194_v2  ;;  %5013 = vmatpush.bf16.msrb.mxu0 %v7574_v10  ;;  %v8580_v0 = vld [vmem:[#allocation7 + $0x54c] sm:$0xf] }
 0x485   :  { %v7671_v2 = vld [vmem:[#allocation7 + $0x568] sm:$0xf0] }
 0x486   :  { %5050 = vmatpush.bf16.msra.mxu3 %v7386_v16  ;;  %5028 = vmatpush.bf16.msrb.mxu1 %v7766_v18  ;;  %v8628_v5 = vld [vmem:[#allocation7 + $0x6cc] sm:$0xf]  ;;  %v7034_v16 = vor.u32 %v8420_v62, %v7031_v63  ;;  %v7674_v17 = vor.u32 %v8580_v0, %v7671_v2  ;;  %v7454_v18 = vor.u32 %v8529_v35, %v7453_v8  ;;  %v7325_v63 = vld [vmem:[#allocation7 + $0x290] sm:$0xf] }
 0x487   :  { %v7863_v9 = vld [vmem:[#allocation7 + $0x6e8] sm:$0xf0]  ;;  %v8497_v2 = vld [vmem:[#allocation7 + $0x2ac] sm:$0xf0] }
 0x488   :  { %5036 = vmatpush.bf16.msra.mxu2 %v7162_v14  ;;  %5014 = vmatpush.bf16.msrb.mxu0 %v7542_v24  ;;  %v8412_v10 = vld [vmem:[#allocation7 + $0xc] sm:$0xf]  ;;  %v7866_v14 = vor.u32 %v8628_v5, %v7863_v9  ;;  %v8521_v24 = vld [vmem:[#allocation7 + $0x36c] sm:$0xf0] }
 0x489   :  { %5029 = vmatmul.bf16.vlgmr.msrb.gmra.mxu1 %v9109_v49  ;;  %v6999_v38 = vld [vmem:[#allocation7 + $0x28] sm:$0xf0]  ;;  %v7422_v31 = vor.u32 %v8521_v24, %v7421_v23  ;;  %v7741_v8 = vld [vmem:[#allocation7 + $0x5d0] sm:$0xf] }
 0x48a   :  { %5051 = vmatpush.bf16.msra.mxu3 %v7354_v6  ;;  %5073 = vmatpush.bf16.msra.mxu1 %v7994_v22  ;;  %v8572_v11 = vld [vmem:[#allocation7 + $0x50c] sm:$0xf]  ;;  %v7002_v6 = vor.u32 %v8412_v10, %v6999_v38  ;;  %v8601_v35 = vld [vmem:[#allocation7 + $0x5ec] sm:$0xf0]  ;;  %v7326_v10 = vor.u32 %v8497_v2, %v7325_v63  ;;  %v8517_v63 = vld [vmem:[#allocation7 + $0x354] sm:$0xf] }
 0x48b   :  { %v7639_v12 = vld [vmem:[#allocation7 + $0x528] sm:$0xf0]  ;;  %v7742_v19 = vor.u32 %v8601_v35, %v7741_v8  ;;  %v8593_v23 = vld [vmem:[#allocation7 + $0x5ac] sm:$0xf0]  ;;  %v7423_v2 = vld [vmem:[#allocation7 + $0x370] sm:$0xf0] }
 0x48c   :  { %5037 = vmatpush.bf16.msra.mxu2 %v7130_v13  ;;  %5015 = vmatpush.bf16.msrb.mxu0 %v7510_v40  ;;  %v8620_v20 = vld [vmem:[#allocation7 + $0x68c] sm:$0xf]  ;;  %v7642_v22 = vor.u32 %v8572_v11, %v7639_v12  ;;  %v7293_v12 = vld [vmem:[#allocation7 + $0x250] sm:$0xf] }
 0x48d   :  { %v7831_v21 = vld [vmem:[#allocation7 + $0x6a8] sm:$0xf0]  ;;  %v7805_v8 = vld [vmem:[#allocation7 + $0x650] sm:$0xf] }
 0x48e   :  { %5052 = vmatpush.bf16.msra.mxu3 %v7322_v36  ;;  %5074 = vmatpush.bf16.msra.mxu1 %v7962_v1  ;;  %v8564_v26 = vld [vmem:[#allocation7 + $0x4cc] sm:$0xf]  ;;  %v7834_v13 = vor.u32 %v8620_v20, %v7831_v21  ;;  %v7389_v36 = vld [vmem:[#allocation7 + $0x310] sm:$0xf] }
 0x48f   :  { %5016 = vmatmul.bf16.vlgmr.msrb.gmra.mxu0 %v9113_v7  ;;  %v7607_v27 = vld [vmem:[#allocation7 + $0x4e8] sm:$0xf0]  ;;  %v8513_v1 = vld [vmem:[#allocation7 + $0x32c] sm:$0xf0] }
 0x490   :  { %5038 = vmatpush.bf16.msra.mxu2 %v7098_v44  ;;  %5060 = vmatpush.bf16.msra.mxu0 %v7738_v43  ;;  %v8612_v32 = vld [vmem:[#allocation7 + $0x64c] sm:$0xf]  ;;  %v7610_v28 = vor.u32 %v8564_v26, %v7607_v27  ;;  %v8457_v44 = vld [vmem:[#allocation7 + $0x16c] sm:$0xf0]  ;;  %v7390_v43 = vor.u32 %v8513_v1, %v7389_v36 }
 0x491   :  { %v7799_v37 = vld [vmem:[#allocation7 + $0x668] sm:$0xf0]  ;;  %v7166_v55 = vor.u32 %v8457_v44, %v7165_v48  ;;  %v8649_v20 = vld [vmem:[#allocation7 + $0x76c] sm:$0xf0] }
 0x492   :  { %5053 = vmatpush.bf16.msra.mxu3 %v7290_v50  ;;  %5075 = vmatpush.bf16.msra.mxu1 %v7930_v51  ;;  %v8556_v40 = vld [vmem:[#allocation7 + $0x48c] sm:$0xf]  ;;  %v7802_v42 = vor.u32 %v8612_v32, %v7799_v37  ;;  %v8505_v50 = vld [vmem:[#allocation7 + $0x2ec] sm:$0xf0]  ;;  %v8533_v32 = vld [vmem:[#allocation7 + $0x3d4] sm:$0xf] }
 0x493   :  { %v7575_v41 = vld [vmem:[#allocation7 + $0x4a8] sm:$0xf0]  ;;  %v7997_v51 = vld [vmem:[#allocation7 + $0x7d0] sm:$0xf]  ;;  %v7358_v61 = vor.u32 %v8505_v50, %v7357_v47  ;;  %v7487_v37 = vld [vmem:[#allocation7 + $0x3f0] sm:$0xf0] }
 0x494   :  { %5039 = vmatpush.bf16.msra.mxu2 %v7066_v58  ;;  %5061 = vmatpush.bf16.msra.mxu0 %v7706_v59  ;;  %v8604_v45 = vld [vmem:[#allocation7 + $0x60c] sm:$0xf]  ;;  %v7578_v33 = vor.u32 %v8556_v40, %v7575_v41  ;;  %v7133_v59 = vld [vmem:[#allocation7 + $0x110] sm:$0xf]  ;;  %v7998_v62 = vor.u32 %v8665_v54, %v7997_v51  ;;  %v7455_v47 = vld [vmem:[#allocation7 + $0x3b0] sm:$0xf0] }
 0x495   :  { %v7767_v46 = vld [vmem:[#allocation7 + $0x628] sm:$0xf0]  ;;  %v7069_v21 = vld [vmem:[#allocation7 + $0x90] sm:$0xf] }
 0x496   :  { %5054 = vmatpush.bf16.msra.mxu3 %v7258_v52  ;;  %5076 = vmatpush.bf16.msra.mxu1 %v7898_v53  ;;  %v8548_v56 = vld [vmem:[#allocation7 + $0x44c] sm:$0xf]  ;;  %v7770_v58 = vor.u32 %v8604_v45, %v7767_v46  ;;  %v7965_v52 = vld [vmem:[#allocation7 + $0x790] sm:$0xf]  ;;  %v8525_v46 = vld [vmem:[#allocation7 + $0x394] sm:$0xf] }
 0x497   :  { %v7543_v57 = vld [vmem:[#allocation7 + $0x468] sm:$0xf0]  ;;  %v8657_v53 = vld [vmem:[#allocation7 + $0x7ac] sm:$0xf0] }
 0x498   :  { %5040 = vmatpush.bf16.msra.mxu2 %v7034_v16  ;;  %5062 = vmatpush.bf16.msra.mxu0 %v7674_v17  ;;  %v7546_v0 = vor.u32 %v8548_v56, %v7543_v57  ;;  %v8540_v5 = vld [vmem:[#allocation7 + $0x40c] sm:$0xf]  ;;  %v7101_v16 = vld [vmem:[#allocation7 + $0xd0] sm:$0xf]  ;;  %v7966_v38 = vor.u32 %v8657_v53, %v7965_v52  ;;  %v7231_v56 = vld [vmem:[#allocation7 + $0x1f0] sm:$0xf0] }
 0x499   :  { %5055 = vmatmul.bf16.vlgmr.msra.gmra.mxu3 %v9101_v3  ;;  %v7511_v9 = vld [vmem:[#allocation7 + $0x428] sm:$0xf0]  ;;  %v8441_v17 = vld [vmem:[#allocation7 + $0xec] sm:$0xf0] }
 0x49a   :  { %5099 = vmatpush.bf16.msrb.mxu3 %v7486_v4  ;;  %5077 = vmatpush.bf16.msra.mxu1 %v7866_v14  ;;  %v7134_v4 = vor.u32 %v8449_v60, %v7133_v59  ;;  %v7514_v11 = vor.u32 %v8540_v5, %v7511_v9  ;;  %v8489_v14 = vld [vmem:[#allocation7 + $0x26c] sm:$0xf0]  ;;  %v7102_v15 = vor.u32 %v8441_v17, %v7101_v16  ;;  %v7199_v5 = vld [vmem:[#allocation7 + $0x1b0] sm:$0xf0] }
 0x49b   :  { %v7294_v24 = vor.u32 %v8489_v14, %v7293_v12  ;;  %v8481_v27 = vld [vmem:[#allocation7 + $0x22c] sm:$0xf0]  ;;  %v7426_v16 = vor.u32 %v8517_v63, %v7423_v2  ;;  %v7711_v63 = vld [vmem:[#allocation7 + $0x5b0] sm:$0xf0] }
 0x49c   :  { %5041 = vmatpush.bf16.msra.mxu2 %v7002_v6  ;;  %5063 = vmatpush.bf16.msra.mxu0 %v7642_v22  ;;  %v8433_v6 = vld [vmem:[#allocation7 + $0xac] sm:$0xf0]  ;;  %v8477_v2 = vld [vmem:[#allocation7 + $0x214] sm:$0xf] }
 0x49d   :  { %v7709_v22 = vld [vmem:[#allocation7 + $0x590] sm:$0xf]  ;;  %v7070_v30 = vor.u32 %v8433_v6, %v7069_v21 }
 0x49e   :  { %5100 = vmatpush.bf16.msrb.mxu3 %v7454_v18  ;;  %5078 = vmatpush.bf16.msra.mxu1 %v7834_v13  ;;  %v7933_v18 = vld [vmem:[#allocation7 + $0x750] sm:$0xf] }
 0x49f   :  { %5042 = vmatmul.bf16.vlgmr.msra.gmra.mxu2 %v9105_v34  ;;  %v7934_v26 = vor.u32 %v8649_v20, %v7933_v18  ;;  %v7901_v13 = vld [vmem:[#allocation7 + $0x710] sm:$0xf] }
 0x4a0   :  { %5086 = vmatpush.bf16.msrb.mxu2 %v7230_v25  ;;  %5064 = vmatpush.bf16.msra.mxu0 %v7610_v28  ;;  %v7261_v25 = vld [vmem:[#allocation7 + $0x210] sm:$0xf]  ;;  %v7902_v41 = vor.u32 %v8641_v29, %v7901_v13 }
 0x4a1   :  { %v7037_v28 = vld [vmem:[#allocation7 + $0x50] sm:$0xf]  ;;  %v7262_v40 = vor.u32 %v8481_v27, %v7261_v25  ;;  %v7999_v27 = vld [vmem:[#allocation7 + $0x7f0] sm:$0xf0] }
 0x4a2   :  { %5101 = vmatpush.bf16.msrb.mxu3 %v7422_v31  ;;  %5079 = vmatpush.bf16.msra.mxu1 %v7802_v42  ;;  %v7710_v31 = vor.u32 %v8593_v23, %v7709_v22  ;;  %v8425_v36 = vld [vmem:[#allocation7 + $0x6c] sm:$0xf0]  ;;  %v7490_v42 = vor.u32 %v8533_v32, %v7487_v37  ;;  %v8501_v23 = vld [vmem:[#allocation7 + $0x2d4] sm:$0xf] }
 0x4a3   :  { %v7677_v1 = vld [vmem:[#allocation7 + $0x550] sm:$0xf] }
 0x4a4   :  { %5087 = vmatpush.bf16.msrb.mxu2 %v7198_v39  ;;  %5065 = vmatpush.bf16.msra.mxu0 %v7578_v33  ;;  %v8585_v39 = vld [vmem:[#allocation7 + $0x56c] sm:$0xf0] }
 0x4a5   :  { %v7869_v48 = vld [vmem:[#allocation7 + $0x6d0] sm:$0xf]  ;;  %v7678_v45 = vor.u32 %v8585_v39, %v7677_v1  ;;  %v7327_v1 = vld [vmem:[#allocation7 + $0x2b0] sm:$0xf0] }
 0x4a6   :  { %5102 = vmatpush.bf16.msrb.mxu3 %v7390_v43  ;;  %5080 = vmatpush.bf16.msra.mxu1 %v7770_v58  ;;  %v8633_v44 = vld [vmem:[#allocation7 + $0x6ec] sm:$0xf0]  ;;  %v7038_v43 = vor.u32 %v8425_v36, %v7037_v28  ;;  %v7458_v58 = vor.u32 %v8525_v46, %v7455_v47  ;;  %v8493_v36 = vld [vmem:[#allocation7 + $0x294] sm:$0xf] }
 0x4a7   :  { %v7005_v33 = vld [vmem:[#allocation7 + $0x10] sm:$0xf]  ;;  %v7870_v57 = vor.u32 %v8633_v44, %v7869_v48  ;;  %v8597_v46 = vld [vmem:[#allocation7 + $0x5d4] sm:$0xf] }
 0x4a8   :  { %5088 = vmatpush.bf16.msrb.mxu2 %v7166_v55  ;;  %5066 = vmatpush.bf16.msra.mxu0 %v7546_v0  ;;  %v8417_v50 = vld [vmem:[#allocation7 + $0x2c] sm:$0xf0]  ;;  %v8469_v55 = vld [vmem:[#allocation7 + $0x1d4] sm:$0xf] }
 0x4a9   :  { %5081 = vmatmul.bf16.vlgmr.msra.gmra.mxu1 %v9109_v49  ;;  %v7645_v51 = vld [vmem:[#allocation7 + $0x510] sm:$0xf]  ;;  %v7006_v59 = vor.u32 %v8417_v50, %v7005_v33  ;;  %v7234_v0 = vor.u32 %v8469_v55, %v7231_v56  ;;  %v7743_v47 = vld [vmem:[#allocation7 + $0x5f0] sm:$0xf0]  ;;  %v7330_v33 = vor.u32 %v8493_v36, %v7327_v1  ;;  %v7429_v36 = vld [vmem:[#allocation7 + $0x358] sm:$0xf] }
 0x4aa   :  { %5103 = vmatpush.bf16.msrb.mxu3 %v7358_v61  ;;  %5125 = vmatpush.bf16.msrb.mxu1 %v7998_v62  ;;  %v8577_v54 = vld [vmem:[#allocation7 + $0x52c] sm:$0xf0]  ;;  %v8485_v55 = vld [vmem:[#allocation7 + $0x254] sm:$0xf] }
 0x4ab   :  { %v7646_v60 = vor.u32 %v8577_v54, %v7645_v51  ;;  %v7837_v61 = vld [vmem:[#allocation7 + $0x690] sm:$0xf]  ;;  %v7295_v56 = vld [vmem:[#allocation7 + $0x270] sm:$0xf0] }
 0x4ac   :  { %5089 = vmatpush.bf16.msrb.mxu2 %v7134_v4  ;;  %5067 = vmatpush.bf16.msra.mxu0 %v7514_v11  ;;  %v8625_v62 = vld [vmem:[#allocation7 + $0x6ac] sm:$0xf0]  ;;  %v8461_v4 = vld [vmem:[#allocation7 + $0x194] sm:$0xf] }
 0x4ad   :  { %v7613_v52 = vld [vmem:[#allocation7 + $0x4d0] sm:$0xf]  ;;  %v7838_v9 = vor.u32 %v8625_v62, %v7837_v61  ;;  %v7391_v11 = vld [vmem:[#allocation7 + $0x330] sm:$0xf0] }
 0x4ae   :  { %5104 = vmatpush.bf16.msrb.mxu3 %v7326_v10  ;;  %5126 = vmatpush.bf16.msrb.mxu1 %v7966_v38  ;;  %v8569_v53 = vld [vmem:[#allocation7 + $0x4ec] sm:$0xf0]  ;;  %v8509_v10 = vld [vmem:[#allocation7 + $0x314] sm:$0xf]  ;;  %v7202_v38 = vor.u32 %v8461_v4, %v7199_v5 }
 0x4af   :  { %5068 = vmatmul.bf16.vlgmr.msra.gmra.mxu0 %v9113_v7  ;;  %v7614_v17 = vor.u32 %v8569_v53, %v7613_v52  ;;  %v8617_v35 = vld [vmem:[#allocation7 + $0x66c] sm:$0xf0]  ;;  %v7394_v21 = vor.u32 %v8509_v10, %v7391_v11  ;;  %v7071_v61 = vld [vmem:[#allocation7 + $0xb0] sm:$0xf0] }
 0x4b0   :  { %5090 = vmatpush.bf16.msrb.mxu2 %v7102_v15  ;;  %5112 = vmatpush.bf16.msrb.mxu0 %v7742_v19  ;;  %v7581_v12 = vld [vmem:[#allocation7 + $0x490] sm:$0xf]  ;;  %v8453_v15 = vld [vmem:[#allocation7 + $0x154] sm:$0xf]  ;;  %v7806_v18 = vor.u32 %v8617_v35, %v7805_v8  ;;  %v8538_v8 = vld [vmem:[#allocation7 + $0x3f4] sm:$0xf0] }
 0x4b1   :  { %v8561_v14 = vld [vmem:[#allocation7 + $0x4ac] sm:$0xf0]  ;;  %v7167_v19 = vld [vmem:[#allocation7 + $0x170] sm:$0xf0] }
 0x4b2   :  { %5105 = vmatpush.bf16.msrb.mxu3 %v7294_v24  ;;  %5127 = vmatpush.bf16.msrb.mxu1 %v7934_v26  ;;  %v7773_v20 = vld [vmem:[#allocation7 + $0x610] sm:$0xf]  ;;  %v7582_v6 = vor.u32 %v8561_v14, %v7581_v12  ;;  %v7359_v24 = vld [vmem:[#allocation7 + $0x2f0] sm:$0xf0]  ;;  %v7170_v25 = vor.u32 %v8453_v15, %v7167_v19 }
 0x4b3   :  { %v8609_v22 = vld [vmem:[#allocation7 + $0x62c] sm:$0xf0]  ;;  %v8661_v26 = vld [vmem:[#allocation7 + $0x7d4] sm:$0xf]  ;;  %v7362_v37 = vor.u32 %v8501_v23, %v7359_v24 }
 0x4b4   :  { %5091 = vmatpush.bf16.msrb.mxu2 %v7070_v30  ;;  %5113 = vmatpush.bf16.msrb.mxu0 %v7710_v31  ;;  %v7549_v13 = vld [vmem:[#allocation7 + $0x450] sm:$0xf]  ;;  %v8445_v30 = vld [vmem:[#allocation7 + $0x114] sm:$0xf]  ;;  %v7774_v32 = vor.u32 %v8609_v22, %v7773_v20  ;;  %v8002_v28 = vor.u32 %v8661_v26, %v7999_v27  ;;  %v8530_v22 = vld [vmem:[#allocation7 + $0x3b4] sm:$0xf0] }
 0x4b5   :  { %v8553_v29 = vld [vmem:[#allocation7 + $0x46c] sm:$0xf0]  ;;  %v7135_v31 = vld [vmem:[#allocation7 + $0x130] sm:$0xf0]  ;;  %v7237_v27 = vld [vmem:[#allocation7 + $0x1d8] sm:$0xf] }
 0x4b6   :  { %5106 = vmatpush.bf16.msrb.mxu3 %v7262_v40  ;;  %5128 = vmatpush.bf16.msrb.mxu1 %v7902_v41  ;;  %v7550_v39 = vor.u32 %v8553_v29, %v7549_v13  ;;  %v7138_v40 = vor.u32 %v8445_v30, %v7135_v31  ;;  %v8653_v41 = vld [vmem:[#allocation7 + $0x794] sm:$0xf]  ;;  %v7517_v48 = vld [vmem:[#allocation7 + $0x410] sm:$0xf]  ;;  %v8474_v13 = vld [vmem:[#allocation7 + $0x1f4] sm:$0xf0] }
 0x4b7   :  { %v8545_v44 = vld [vmem:[#allocation7 + $0x42c] sm:$0xf0]  ;;  %v8589_v62 = vld [vmem:[#allocation7 + $0x594] sm:$0xf]  ;;  %v7238_v1 = vor.u32 %v8474_v13, %v7237_v27 }
 0x4b8   :  { %5092 = vmatpush.bf16.msrb.mxu2 %v7038_v43  ;;  %5114 = vmatpush.bf16.msrb.mxu0 %v7678_v45  ;;  %v8437_v43 = vld [vmem:[#allocation7 + $0xd4] sm:$0xf]  ;;  %v7518_v51 = vor.u32 %v8545_v44, %v7517_v48  ;;  %v8466_v48 = vld [vmem:[#allocation7 + $0x1b4] sm:$0xf0] }
 0x4b9   :  { %5107 = vmatmul.bf16.vlgmr.msrb.gmra.mxu3 %v9101_v3  ;;  %v7103_v45 = vld [vmem:[#allocation7 + $0xf0] sm:$0xf0] }
 0x4ba   :  { %5151 = vmatpush.bf16.msra.mxu3 %v7490_v42  ;;  %5129 = vmatpush.bf16.msrb.mxu1 %v7870_v57  ;;  %v7967_v42 = vld [vmem:[#allocation7 + $0x7b0] sm:$0xf0]  ;;  %v7106_v54 = vor.u32 %v8437_v43, %v7103_v45 }
 0x4bb   :  { %v7970_v50 = vor.u32 %v8653_v41, %v7967_v42  ;;  %v8645_v57 = vld [vmem:[#allocation7 + $0x754] sm:$0xf]  ;;  %v7205_v42 = vld [vmem:[#allocation7 + $0x198] sm:$0xf] }
 0x4bc   :  { %5093 = vmatpush.bf16.msrb.mxu2 %v7006_v59  ;;  %5115 = vmatpush.bf16.msrb.mxu0 %v7646_v60  ;;  %v7935_v59 = vld [vmem:[#allocation7 + $0x770] sm:$0xf0] }
 0x4bd   :  { %v8429_v60 = vld [vmem:[#allocation7 + $0x94] sm:$0xf]  ;;  %v7938_v52 = vor.u32 %v8645_v57, %v7935_v59  ;;  %v8458_v57 = vld [vmem:[#allocation7 + $0x174] sm:$0xf0] }
 0x4be   :  { %5152 = vmatpush.bf16.msra.mxu3 %v7458_v58  ;;  %5130 = vmatpush.bf16.msrb.mxu1 %v7838_v9  ;;  %v7746_v58 = vor.u32 %v8597_v46, %v7743_v47  ;;  %v7074_v53 = vor.u32 %v8429_v60, %v7071_v61  ;;  %v7263_v4 = vld [vmem:[#allocation7 + $0x230] sm:$0xf0] }
 0x4bf   :  { %5094 = vmatmul.bf16.vlgmr.msrb.gmra.mxu2 %v9105_v34  ;;  %v8637_v5 = vld [vmem:[#allocation7 + $0x714] sm:$0xf]  ;;  %v7266_v12 = vor.u32 %v8477_v2, %v7263_v4 }
 0x4c0   :  { %5138 = vmatpush.bf16.msra.mxu2 %v7234_v0  ;;  %5116 = vmatpush.bf16.msrb.mxu0 %v7614_v17  ;;  %v7298_v0 = vor.u32 %v8485_v55, %v7295_v56  ;;  %v7903_v9 = vld [vmem:[#allocation7 + $0x730] sm:$0xf0]  ;;  %v7493_v17 = vld [vmem:[#allocation7 + $0x3d8] sm:$0xf] }
 0x4c1   :  { %v8421_v35 = vld [vmem:[#allocation7 + $0x54] sm:$0xf]  ;;  %v7906_v14 = vor.u32 %v8637_v5, %v7903_v9  ;;  %v7494_v15 = vor.u32 %v8538_v8, %v7493_v17  ;;  %v7173_v56 = vld [vmem:[#allocation7 + $0x158] sm:$0xf] }
 0x4c2   :  { %5153 = vmatpush.bf16.msra.mxu3 %v7426_v16  ;;  %5131 = vmatpush.bf16.msrb.mxu1 %v7806_v18  ;;  %v7714_v16 = vor.u32 %v8589_v62, %v7711_v63  ;;  %v7039_v10 = vld [vmem:[#allocation7 + $0x70] sm:$0xf0]  ;;  %v7365_v63 = vld [vmem:[#allocation7 + $0x2d8] sm:$0xf]  ;;  %v7174_v2 = vor.u32 %v8458_v57, %v7173_v56 }
 0x4c3   :  { %v7679_v11 = vld [vmem:[#allocation7 + $0x570] sm:$0xf0]  ;;  %v7042_v20 = vor.u32 %v8421_v35, %v7039_v10  ;;  %v7141_v9 = vld [vmem:[#allocation7 + $0x118] sm:$0xf] }
 0x4c4   :  { %5139 = vmatpush.bf16.msra.mxu2 %v7202_v38  ;;  %5117 = vmatpush.bf16.msrb.mxu0 %v7582_v6  ;;  %v8581_v38 = vld [vmem:[#allocation7 + $0x554] sm:$0xf]  ;;  %v7461_v6 = vld [vmem:[#allocation7 + $0x398] sm:$0xf] }
 0x4c5   :  { %v8629_v19 = vld [vmem:[#allocation7 + $0x6d4] sm:$0xf]  ;;  %v7462_v30 = vor.u32 %v8530_v22, %v7461_v6  ;;  %v8442_v6 = vld [vmem:[#allocation7 + $0xf4] sm:$0xf0] }
 0x4c6   :  { %5154 = vmatpush.bf16.msra.mxu3 %v7394_v21  ;;  %5132 = vmatpush.bf16.msrb.mxu1 %v7774_v32  ;;  %v7871_v18 = vld [vmem:[#allocation7 + $0x6f0] sm:$0xf0]  ;;  %v7682_v21 = vor.u32 %v8581_v38, %v7679_v11  ;;  %v7333_v38 = vld [vmem:[#allocation7 + $0x298] sm:$0xf] }
 0x4c7   :  { %v8413_v23 = vld [vmem:[#allocation7 + $0x14] sm:$0xf]  ;;  %v7874_v29 = vor.u32 %v8629_v19, %v7871_v18  ;;  %v8498_v11 = vld [vmem:[#allocation7 + $0x2b4] sm:$0xf0] }
 0x4c8   :  { %5140 = vmatpush.bf16.msra.mxu2 %v7170_v25  ;;  %5118 = vmatpush.bf16.msrb.mxu0 %v7550_v39  ;;  %v7007_v24 = vld [vmem:[#allocation7 + $0x30] sm:$0xf0]  ;;  %v8522_v39 = vld [vmem:[#allocation7 + $0x374] sm:$0xf0] }
 0x4c9   :  { %5133 = vmatmul.bf16.vlgmr.msrb.gmra.mxu1 %v9109_v49  ;;  %v8573_v25 = vld [vmem:[#allocation7 + $0x514] sm:$0xf]  ;;  %v7010_v31 = vor.u32 %v8413_v23, %v7007_v24  ;;  %v7430_v43 = vor.u32 %v8522_v39, %v7429_v36  ;;  %v8658_v19 = vld [vmem:[#allocation7 + $0x7b4] sm:$0xf0]  ;;  %v7334_v24 = vor.u32 %v8498_v11, %v7333_v38 }
 0x4ca   :  { %5155 = vmatpush.bf16.msra.mxu3 %v7362_v37  ;;  %5177 = vmatpush.bf16.msra.mxu1 %v8002_v28  ;;  %v7647_v26 = vld [vmem:[#allocation7 + $0x530] sm:$0xf0]  ;;  %v7749_v22 = vld [vmem:[#allocation7 + $0x5d8] sm:$0xf] }
 0x4cb   :  { %v7650_v32 = vor.u32 %v8573_v25, %v7647_v26  ;;  %v8621_v37 = vld [vmem:[#allocation7 + $0x694] sm:$0xf]  ;;  %v8602_v23 = vld [vmem:[#allocation7 + $0x5f4] sm:$0xf0] }
 0x4cc   :  { %5141 = vmatpush.bf16.msra.mxu2 %v7138_v40  ;;  %5119 = vmatpush.bf16.msrb.mxu0 %v7518_v51  ;;  %v7839_v28 = vld [vmem:[#allocation7 + $0x6b0] sm:$0xf0]  ;;  %v8514_v51 = vld [vmem:[#allocation7 + $0x334] sm:$0xf0] }
 0x4cd   :  { %v8565_v40 = vld [vmem:[#allocation7 + $0x4d4] sm:$0xf]  ;;  %v7842_v44 = vor.u32 %v8621_v37, %v7839_v28  ;;  %v7750_v37 = vor.u32 %v8602_v23, %v7749_v22  ;;  %v8650_v28 = vld [vmem:[#allocation7 + $0x774] sm:$0xf0] }
 0x4ce   :  { %5156 = vmatpush.bf16.msra.mxu3 %v7330_v33  ;;  %5178 = vmatpush.bf16.msra.mxu1 %v7970_v50  ;;  %v7615_v41 = vld [vmem:[#allocation7 + $0x4f0] sm:$0xf0]  ;;  %v7397_v33 = vld [vmem:[#allocation7 + $0x318] sm:$0xf]  ;;  %v7206_v50 = vor.u32 %v8466_v48, %v7205_v42 }
 0x4cf   :  { %5120 = vmatmul.bf16.vlgmr.msrb.gmra.mxu0 %v9113_v7  ;;  %v7618_v45 = vor.u32 %v8565_v40, %v7615_v41  ;;  %v8613_v46 = vld [vmem:[#allocation7 + $0x654] sm:$0xf]  ;;  %v7398_v60 = vor.u32 %v8514_v51, %v7397_v33  ;;  %v7077_v36 = vld [vmem:[#allocation7 + $0x98] sm:$0xf] }
 0x4d0   :  { %5142 = vmatpush.bf16.msra.mxu2 %v7106_v54  ;;  %5164 = vmatpush.bf16.msra.mxu0 %v7746_v58  ;;  %v7807_v47 = vld [vmem:[#allocation7 + $0x670] sm:$0xf0]  ;;  %v7717_v40 = vld [vmem:[#allocation7 + $0x598] sm:$0xf] }
 0x4d1   :  { %v8557_v54 = vld [vmem:[#allocation7 + $0x494] sm:$0xf]  ;;  %v7810_v58 = vor.u32 %v8613_v46, %v7807_v47  ;;  %v8594_v41 = vld [vmem:[#allocation7 + $0x5b4] sm:$0xf0] }
 0x4d2   :  { %5157 = vmatpush.bf16.msra.mxu3 %v7298_v0  ;;  %5179 = vmatpush.bf16.msra.mxu1 %v7938_v52  ;;  %v7583_v55 = vld [vmem:[#allocation7 + $0x4b0] sm:$0xf0]  ;;  %v8506_v0 = vld [vmem:[#allocation7 + $0x2f4] sm:$0xf0]  ;;  %v7718_v51 = vor.u32 %v8594_v41, %v7717_v40 }
 0x4d3   :  { %v8605_v59 = vld [vmem:[#allocation7 + $0x614] sm:$0xf]  ;;  %v7586_v61 = vor.u32 %v8557_v54, %v7583_v55  ;;  %v8005_v52 = vld [vmem:[#allocation7 + $0x7d8] sm:$0xf]  ;;  %v7366_v35 = vor.u32 %v8506_v0, %v7365_v63  ;;  %v8534_v54 = vld [vmem:[#allocation7 + $0x3dc] sm:$0xf] }
 0x4d4   :  { %5143 = vmatpush.bf16.msra.mxu2 %v7074_v53  ;;  %5165 = vmatpush.bf16.msra.mxu0 %v7714_v16  ;;  %v7775_v62 = vld [vmem:[#allocation7 + $0x630] sm:$0xf0]  ;;  %v8666_v53 = vld [vmem:[#allocation7 + $0x7f4] sm:$0xf0]  ;;  %v7495_v55 = vld [vmem:[#allocation7 + $0x3f8] sm:$0xf0] }
 0x4d5   :  { %v8549_v4 = vld [vmem:[#allocation7 + $0x454] sm:$0xf]  ;;  %v8450_v16 = vld [vmem:[#allocation7 + $0x134] sm:$0xf0]  ;;  %v7778_v17 = vor.u32 %v8605_v59, %v7775_v62  ;;  %v8006_v10 = vor.u32 %v8666_v53, %v8005_v52  ;;  %v7498_v0 = vor.u32 %v8534_v54, %v7495_v55  ;;  %v7175_v54 = vld [vmem:[#allocation7 + $0x178] sm:$0xf0] }
 0x4d6   :  { %5158 = vmatpush.bf16.msra.mxu3 %v7266_v12  ;;  %5180 = vmatpush.bf16.msra.mxu1 %v7906_v14  ;;  %v7551_v5 = vld [vmem:[#allocation7 + $0x470] sm:$0xf0]  ;;  %v7142_v14 = vor.u32 %v8450_v16, %v7141_v9  ;;  %v8482_v46 = vld [vmem:[#allocation7 + $0x234] sm:$0xf0]  ;;  %v7463_v9 = vld [vmem:[#allocation7 + $0x3b8] sm:$0xf0] }
 0x4d7   :  { %v7554_v12 = vor.u32 %v8549_v4, %v7551_v5  ;;  %v8541_v18 = vld [vmem:[#allocation7 + $0x414] sm:$0xf]  ;;  %v7909_v47 = vld [vmem:[#allocation7 + $0x718] sm:$0xf]  ;;  %v8526_v5 = vld [vmem:[#allocation7 + $0x39c] sm:$0xf] }
 0x4d8   :  { %5144 = vmatpush.bf16.msra.mxu2 %v7042_v20  ;;  %5166 = vmatpush.bf16.msra.mxu0 %v7682_v21  ;;  %v7519_v20 = vld [vmem:[#allocation7 + $0x430] sm:$0xf0]  ;;  %v7109_v21 = vld [vmem:[#allocation7 + $0xd8] sm:$0xf] }
 0x4d9   :  { %5159 = vmatmul.bf16.vlgmr.msra.gmra.mxu3 %v9101_v3  ;;  %v9138_v26 = vld [vmem:[%s9205_s8 + $0xd] sm:$0xff]  ;;  %v7522_v13 = vor.u32 %v8541_v18, %v7519_v20  ;;  %v8642_v33 = vld [vmem:[#allocation7 + $0x734] sm:$0xf0]  ;;  %v7466_v20 = vor.u32 %v8526_v5, %v7463_v9  ;;  %v8446_v9 = vld [vmem:[#allocation7 + $0x11c] sm:$0xf] }
 0x4da   :  { %5203 = vmatpush.bf16.msrb.mxu3 %v7494_v15  ;;  %5181 = vmatpush.bf16.msra.mxu1 %v7874_v29  ;;  %v7973_v15 = vld [vmem:[#allocation7 + $0x798] sm:$0xf]  ;;  %v7110_v29 = vor.u32 %v8442_v6, %v7109_v21  ;;  %v3582_v39 = vperm.slane %v9138_v26, 0  ;;  %v7910_v62 = vor.u32 %v8642_v33, %v7909_v47 }
 0x4db   :  { %v7974_v25 = vor.u32 %v8658_v19, %v7973_v15  ;;  %v7045_v56 = vld [vmem:[#allocation7 + $0x58] sm:$0xf]  ;;  %v7239_v15 = vld [vmem:[#allocation7 + $0x1f8] sm:$0xf0] }
 0x4dc   :  { %5145 = vmatpush.bf16.msra.mxu2 %v7010_v31  ;;  %5167 = vmatpush.bf16.msra.mxu0 %v7650_v32  ;;  %v9133_v8 = vpop.f32.mrf.mxu3  ;;  %v8490_v31 = vld [vmem:[#allocation7 + $0x274] sm:$0xf0] }
 0x4dd   :  { %v7941_v32 = vld [vmem:[#allocation7 + $0x758] sm:$0xf] }
 0x4de   :  { %5204 = vmatpush.bf16.msrb.mxu3 %v7462_v30  ;;  %5182 = vmatpush.bf16.msra.mxu1 %v7842_v44  ;;  %v7301_v30 = vld [vmem:[#allocation7 + $0x258] sm:$0xf] }
 0x4df   :  { %5146 = vmatmul.bf16.vlgmr.msra.gmra.mxu2 %v9105_v34  ;;  %v7302_v48 = vor.u32 %v8490_v31, %v7301_v30  ;;  %v7269_v44 = vld [vmem:[#allocation7 + $0x218] sm:$0xf]  ;;  %v8462_v31 = vld [vmem:[#allocation7 + $0x19c] sm:$0xf] }
 0x4e0   :  { %5190 = vmatpush.bf16.msrb.mxu2 %v7238_v1  ;;  %5168 = vmatpush.bf16.msra.mxu0 %v7618_v45  ;;  %v8434_v1 = vld [vmem:[#allocation7 + $0xb4] sm:$0xf0] }
 0x4e1   :  { %v4887_v27 = vpop.f32.mrf.mxu2  ;;  %v7078_v45 = vor.u32 %v8434_v1, %v7077_v36  ;;  %v7685_v59 = vld [vmem:[#allocation7 + $0x558] sm:$0xf] }
 0x4e2   :  { %5205 = vmatpush.bf16.msrb.mxu3 %v7430_v43  ;;  %5183 = vmatpush.bf16.msra.mxu1 %v7810_v58  ;;  %v7942_v43 = vor.u32 %v8650_v28, %v7941_v32  ;;  %v4888_v57 = vadd.f32 %v4887_v27, %v3582_v39  ;;  %v8426_v58 = vld [vmem:[#allocation7 + $0x74] sm:$0xf0]  ;;  %v7207_v32 = vld [vmem:[#allocation7 + $0x1b8] sm:$0xf0] }
 0x4e3   :  { %v8634_v52 = vld [vmem:[#allocation7 + $0x6f4] sm:$0xf0]  ;;  %v7046_v53 = vor.u32 %v8426_v58, %v7045_v56 }
 0x4e4   :  { %5191 = vmatpush.bf16.msrb.mxu2 %v7206_v50  ;;  %5169 = vmatpush.bf16.msra.mxu0 %v7586_v61  ;;  %v4902_v42 = vpop.f32.mrf.mxu3  ;;  %v7270_v61 = vor.u32 %v8482_v46, %v7269_v44  ;;  %v7013_v16 = vld [vmem:[#allocation7 + $0x18] sm:$0xf] }
 0x4e5   :  { %v8578_v38 = vld [vmem:[#allocation7 + $0x534] sm:$0xf0]  ;;  %v8510_v42 = vld [vmem:[#allocation7 + $0x31c] sm:$0xf] }
 0x4e6   :  { %5206 = vmatpush.bf16.msrb.mxu3 %v7398_v60  ;;  %5184 = vmatpush.bf16.msra.mxu1 %v7778_v17  ;;  %v4926_v50 = vpop.f32.mrf.mxu1  ;;  %v8586_v60 = vld [vmem:[#allocation7 + $0x574] sm:$0xf0]  ;;  %v4901_v17 = vadd.f32 %v9133_v8, %v4888_v57 }
 0x4e7   :  { %v7686_v4 = vor.u32 %v8586_v60, %v7685_v59  ;;  %v7845_v8 = vld [vmem:[#allocation7 + $0x698] sm:$0xf] }
 0x4e8   :  { %5192 = vmatpush.bf16.msrb.mxu2 %v7174_v2  ;;  %5170 = vmatpush.bf16.msra.mxu0 %v7554_v12  ;;  %v7877_v2 = vld [vmem:[#allocation7 + $0x6d8] sm:$0xf] }
 0x4e9   :  { %5185 = vmatmul.bf16.vlgmr.msra.gmra.mxu1 %v9109_v49  ;;  %v4889_v63 = vpop.f32.mrf.mxu2  ;;  %v7878_v18 = vor.u32 %v8634_v52, %v7877_v2  ;;  %v8626_v23 = vld [vmem:[#allocation7 + $0x6b4] sm:$0xf0]  ;;  %v8662_v52 = vld [vmem:[#allocation7 + $0x7dc] sm:$0xf] }
 0x4ea   :  { %5207 = vmatpush.bf16.msrb.mxu3 %v7366_v35  ;;  %5229 = vmatpush.bf16.msrb.mxu1 %v8006_v10  ;;  %v8418_v35 = vld [vmem:[#allocation7 + $0x34] sm:$0xf0]  ;;  %v7846_v28 = vor.u32 %v8626_v23, %v7845_v8  ;;  %v7367_v63 = vld [vmem:[#allocation7 + $0x2f8] sm:$0xf0] }
 0x4eb   :  { %v7653_v10 = vld [vmem:[#allocation7 + $0x518] sm:$0xf]  ;;  %v7014_v6 = vor.u32 %v8418_v35, %v7013_v16  ;;  %v7143_v16 = vld [vmem:[#allocation7 + $0x138] sm:$0xf0] }
 0x4ec   :  { %5193 = vmatpush.bf16.msrb.mxu2 %v7142_v14  ;;  %5171 = vmatpush.bf16.msra.mxu0 %v7522_v13  ;;  %v4913_v11 = vpop.f32.mrf.mxu0  ;;  %v9144_v12 = vpop.f32.mrf.mxu3  ;;  %v8470_v14 = vld [vmem:[#allocation7 + $0x1dc] sm:$0xf]  ;;  %v7654_v22 = vor.u32 %v8578_v38, %v7653_v10  ;;  %v8570_v30 = vld [vmem:[#allocation7 + $0x4f4] sm:$0xf0] }
 0x4ed   :  { %v4914_v19 = vadd.f32 %v4913_v11, %v4901_v17  ;;  %v7242_v27 = vor.u32 %v8470_v14, %v7239_v15  ;;  %v7431_v13 = vld [vmem:[#allocation7 + $0x378] sm:$0xf0]  ;;  %v7813_v36 = vld [vmem:[#allocation7 + $0x658] sm:$0xf] }
 0x4ee   :  { %5208 = vmatpush.bf16.msrb.mxu3 %v7334_v24  ;;  %5230 = vmatpush.bf16.msrb.mxu1 %v7974_v25  ;;  %v4928_v21 = vpop.f32.mrf.mxu1  ;;  %v8518_v24 = vld [vmem:[#allocation7 + $0x35c] sm:$0xf]  ;;  %v8618_v41 = vld [vmem:[#allocation7 + $0x674] sm:$0xf0] }
 0x4ef   :  { %5172 = vmatmul.bf16.vlgmr.msra.gmra.mxu0 %v9113_v7  ;;  %v9146_v25 = vadd.f32 %v4926_v50, %v4914_v19  ;;  %v7434_v39 = vor.u32 %v8518_v24, %v7431_v13  ;;  %v7589_v46 = vld [vmem:[#allocation7 + $0x498] sm:$0xf]  ;;  %v7814_v56 = vor.u32 %v8618_v41, %v7813_v36  ;;  %v8494_v11 = vld [vmem:[#allocation7 + $0x29c] sm:$0xf] }
 0x4f0   :  { %5194 = vmatpush.bf16.msrb.mxu2 %v7110_v29  ;;  %5216 = vmatpush.bf16.msrb.mxu0 %v7750_v37  ;;  %v7621_v29 = vld [vmem:[#allocation7 + $0x4d8] sm:$0xf]  ;;  %v7335_v14 = vld [vmem:[#allocation7 + $0x2b8] sm:$0xf0] }
 0x4f1   :  { %v5294_v37 = vand.u32 2147483647, %v9146_v25  ;;  %v7622_v40 = vor.u32 %v8570_v30, %v7621_v29  ;;  %v8562_v47 = vld [vmem:[#allocation7 + $0x4b4] sm:$0xf0]  ;;  %v7975_v21 = vld [vmem:[#allocation7 + $0x7b8] sm:$0xf0] }
 0x4f2   :  { %5209 = vmatpush.bf16.msrb.mxu3 %v7302_v48  ;;  %5231 = vmatpush.bf16.msrb.mxu1 %v7942_v43  ;;  %v4939_v1 = vpop.f32.mrf.mxu2  ;;  %v7399_v48 = vld [vmem:[#allocation7 + $0x338] sm:$0xf0]  ;;  %v3583_v43 = vperm.slane %v9138_v26, 1  ;;  %v7781_v57 = vld [vmem:[#allocation7 + $0x618] sm:$0xf]  ;;  %v7590_v60 = vor.u32 %v8562_v47, %v7589_v46  ;;  %vm5342_vm3 = vcmp.ge.f32.partialorder %v9146_v25, 0.0 }
 0x4f3   :  { %v5302_v44 = vsub.f32 0.0, %v5294_v37  ;;  %v7402_v59 = vor.u32 %v8510_v42, %v7399_v48  ;;  %v8554_v5 = vld [vmem:[#allocation7 + $0x474] sm:$0xf0]  ;;  %v8438_v24 = vld [vmem:[#allocation7 + $0xdc] sm:$0xf] }
 0x4f4   :  { %5195 = vmatpush.bf16.msrb.mxu2 %v7078_v45  ;;  %5217 = vmatpush.bf16.msrb.mxu0 %v7718_v51  ;;  %v7210_v45 = vor.u32 %v8462_v31, %v7207_v32  ;;  %v4915_v33 = vpop.f32.mrf.mxu0  ;;  %v4954_v50 = vpop.f32.mrf.mxu3  ;;  %v8454_v51 = vld [vmem:[#allocation7 + $0x15c] sm:$0xf]  ;;  %v8546_v23 = vld [vmem:[#allocation7 + $0x434] sm:$0xf0] }
 0x4f5   :  { %v5310_v55 = vmul.f32 1.442695, %v5302_v44  ;;  %v7178_v2 = vor.u32 %v8454_v51, %v7175_v54  ;;  %v8598_v30 = vld [vmem:[#allocation7 + $0x5dc] sm:$0xf] }
 0x4f6   :  { %5210 = vmatpush.bf16.msrb.mxu3 %v7270_v61  ;;  %5232 = vmatpush.bf16.msrb.mxu1 %v7910_v62  ;;  %v4978_v58 = vpop.f32.mrf.mxu1  ;;  %v8610_v61 = vld [vmem:[#allocation7 + $0x634] sm:$0xf0]  ;;  %v8502_v62 = vld [vmem:[#allocation7 + $0x2dc] sm:$0xf] }
 0x4f7   :  { %8681 = vpow2.f32 %v5310_v55  ;;  %v7782_v17 = vor.u32 %v8610_v61, %v7781_v57  ;;  %v7370_v10 = vor.u32 %v8502_v62, %v7367_v63  ;;  %v7751_v31 = vld [vmem:[#allocation7 + $0x5f8] sm:$0xf0]  ;;  %v3584_v55 = vperm.slane %v9138_v26, 2 }
 0x4f8   :  { %5196 = vmatpush.bf16.msrb.mxu2 %v7046_v53  ;;  %5218 = vmatpush.bf16.msrb.mxu0 %v7686_v4  ;;  %v8007_v53 = vld [vmem:[#allocation7 + $0x7f8] sm:$0xf0]  ;;  %v7557_v4 = vld [vmem:[#allocation7 + $0x458] sm:$0xf]  ;;  %v7754_v48 = vor.u32 %v8598_v30, %v7751_v31 }
 0x4f9   :  { %5211 = vmatmul.bf16.vlgmr.msrb.gmra.mxu3 %v9101_v3  ;;  %v8010_v38 = vor.u32 %v8662_v52, %v8007_v53  ;;  %v7558_v15 = vor.u32 %v8554_v5, %v7557_v4  ;;  %v7303_v41 = vld [vmem:[#allocation7 + $0x278] sm:$0xf0] }
 0x4fa   :  { %5255 = vmatpush.bf16.msra.mxu3 %v7498_v0  ;;  %5233 = vmatpush.bf16.msrb.mxu1 %v7878_v18  ;;  %v4940_v0 = vadd.f32 %v4939_v1, %v3583_v43  ;;  %v4941_v35 = vpop.f32.mrf.mxu2  ;;  %v7146_v18 = vor.u32 %v8446_v9, %v7143_v16  ;;  %v8646_v42 = vld [vmem:[#allocation7 + $0x75c] sm:$0xf] }
 0x4fb   :  { %v7943_v44 = vld [vmem:[#allocation7 + $0x778] sm:$0xf0] }
 0x4fc   :  { %5197 = vmatpush.bf16.msrb.mxu2 %v7014_v6  ;;  %5219 = vmatpush.bf16.msrb.mxu0 %v7654_v22  ;;  %v4953_v19 = vadd.f32 %v9144_v12, %v4940_v0  ;;  %v7525_v6 = vld [vmem:[#allocation7 + $0x418] sm:$0xf]  ;;  %v4965_v22 = vpop.f32.mrf.mxu0  ;;  %v9153_v8 = vpop.f32.mrf.mxu3  ;;  %v7338_v12 = vor.u32 %v8494_v11, %v7335_v14  ;;  %v8430_v43 = vld [vmem:[#allocation7 + $0x9c] sm:$0xf]  ;;  %v7946_v57 = vor.u32 %v8646_v42, %v7943_v44 }
 0x4fd   :  { %v8682_v13 = vpop.eup %8681  ;;  %v7526_v1 = vor.u32 %v8546_v23, %v7525_v6  ;;  %v8590_v47 = vld [vmem:[#allocation7 + $0x59c] sm:$0xf] }
 0x4fe   :  { %5256 = vmatpush.bf16.msra.mxu3 %v7466_v20  ;;  %5234 = vmatpush.bf16.msrb.mxu1 %v7846_v28  ;;  %v8654_v20 = vld [vmem:[#allocation7 + $0x79c] sm:$0xf]  ;;  %v4966_v29 = vadd.f32 %v4965_v22, %v4953_v19  ;;  %v5326_v32 = vadd.f32 1.0, %v8682_v13  ;;  %v4980_v37 = vpop.f32.mrf.mxu1 }
 0x4ff   :  { %5198 = vmatmul.bf16.vlgmr.msrb.gmra.mxu2 %v9105_v34  ;;  %v7978_v28 = vor.u32 %v8654_v20, %v7975_v21  ;;  %v7719_v33 = vld [vmem:[#allocation7 + $0x5b8] sm:$0xf0] }
 0x500   :  { %5242 = vmatpush.bf16.msra.mxu2 %v7242_v27  ;;  %5220 = vmatpush.bf16.msrb.mxu0 %v7622_v40  ;;  %v7111_v27 = vld [vmem:[#allocation7 + $0xf8] sm:$0xf0]  ;;  %v9155_v36 = vadd.f32 %v4978_v58, %v4966_v29  ;;  %8683 = vrcp.f32 %v5326_v32  ;;  %v7722_v63 = vor.u32 %v8590_v47, %v7719_v33 }
 0x501   :  { %v8486_v40 = vld [vmem:[#allocation7 + $0x25c] sm:$0xf] }
 0x502   :  { %5257 = vmatpush.bf16.msra.mxu3 %v7434_v39  ;;  %5235 = vmatpush.bf16.msrb.mxu1 %v7814_v56  ;;  %v7114_v39 = vor.u32 %v8438_v24, %v7111_v27  ;;  %v5295_v46 = vand.u32 2147483647, %v9155_v36  ;;  %v7306_v50 = vor.u32 %v8486_v40, %v7303_v41  ;;  %v8478_v51 = vld [vmem:[#allocation7 + $0x21c] sm:$0xf]  ;;  %v4991_v56 = vpop.f32.mrf.mxu2  ;;  %vm5343_vm4 = vcmp.ge.f32.partialorder %v9155_v36, 0.0 }
 0x503   :  { %v7911_v0 = vld [vmem:[#allocation7 + $0x738] sm:$0xf0]  ;;  %v3585_v36 = vperm.slane %v9138_v26, 3 }
 0x504   :  { %5243 = vmatpush.bf16.msra.mxu2 %v7210_v45  ;;  %5221 = vmatpush.bf16.msrb.mxu0 %v7590_v60  ;;  %v7079_v45 = vld [vmem:[#allocation7 + $0xb8] sm:$0xf0]  ;;  %v5303_v54 = vsub.f32 0.0, %v5295_v46  ;;  %v4967_v61 = vpop.f32.mrf.mxu0  ;;  %v5006_v62 = vpop.f32.mrf.mxu3 }
 0x505   :  { %v7082_v58 = vor.u32 %v8430_v43, %v7079_v45  ;;  %v8638_v60 = vld [vmem:[#allocation7 + $0x71c] sm:$0xf] }
 0x506   :  { %5258 = vmatpush.bf16.msra.mxu3 %v7402_v59  ;;  %5236 = vmatpush.bf16.msrb.mxu1 %v7782_v17  ;;  %v7271_v59 = vld [vmem:[#allocation7 + $0x238] sm:$0xf0]  ;;  %v5312_v53 = vmul.f32 1.442695, %v5303_v54  ;;  %v8684_v9 = vpop.eup %8683  ;;  %v5030_v16 = vpop.f32.mrf.mxu1 }
 0x507   :  { %v7047_v52 = vld [vmem:[#allocation7 + $0x78] sm:$0xf0]  ;;  %v7274_v17 = vor.u32 %v8478_v51, %v7271_v59  ;;  %v5350_v35 = vmul.f32 %v8684_v9, %v8682_v13 }
 0x508   :  { %5244 = vmatpush.bf16.msra.mxu2 %v7178_v2  ;;  %5222 = vmatpush.bf16.msrb.mxu0 %v7558_v15  ;;  %v8422_v2 = vld [vmem:[#allocation7 + $0x5c] sm:$0xf]  ;;  %8685 = vpow2.f32 %v5312_v53  ;;  %v4992_v15 = vadd.f32 %v4991_v56, %v3584_v55 }
 0x509   :  { %5237 = vmatmul.bf16.vlgmr.msrb.gmra.mxu1 %v9109_v49  ;;  %v8582_v4 = vld [vmem:[#allocation7 + $0x55c] sm:$0xf]  ;;  %v5358_v21 = vsel %vm5342_vm3, %v8684_v9, %v5350_v35 }
 0x50a   :  { %5259 = vmatpush.bf16.msra.mxu3 %v7370_v10  ;;  %5281 = vmatpush.bf16.msra.mxu1 %v8010_v38  ;;  %v7687_v5 = vld [vmem:[#allocation7 + $0x578] sm:$0xf0]  ;;  %v7914_v10 = vor.u32 %v8638_v60, %v7911_v0  ;;  %v7050_v38 = vor.u32 %v8422_v2, %v7047_v52  ;;  %5366 = vst [vmem:[%s9207_s10] sm:$0xff] %v5358_v21  ;;  %v4993_v23 = vpop.f32.mrf.mxu2 }
 0x50b   :  { %v8630_v11 = vld [vmem:[#allocation7 + $0x6dc] sm:$0xf]  ;;  %v7690_v19 = vor.u32 %v8582_v4, %v7687_v5  ;;  %v5005_v25 = vadd.f32 %v9153_v8, %v4992_v15 }
 0x50c   :  { %5245 = vmatpush.bf16.msra.mxu2 %v7146_v18  ;;  %5223 = vmatpush.bf16.msrb.mxu0 %v7526_v1  ;;  %v7879_v14 = vld [vmem:[#allocation7 + $0x6f8] sm:$0xf0]  ;;  %v5017_v32 = vpop.f32.mrf.mxu0 }
 0x50d   :  { %v8414_v18 = vld [vmem:[#allocation7 + $0x1c] sm:$0xf]  ;;  %v7882_v24 = vor.u32 %v8630_v11, %v7879_v14  ;;  %v5018_v1 = vadd.f32 %v5017_v32, %v5005_v25 }
 0x50e   :  { %5260 = vmatpush.bf16.msra.mxu3 %v7338_v12  ;;  %5282 = vmatpush.bf16.msra.mxu1 %v7978_v28  ;;  %v7015_v20 = vld [vmem:[#allocation7 + $0x38] sm:$0xf0]  ;;  %v8686_v31 = vpop.eup %8685 }
 0x50f   :  { %5224 = vmatmul.bf16.vlgmr.msrb.gmra.mxu0 %v9113_v7  ;;  %v8574_v6 = vld [vmem:[#allocation7 + $0x51c] sm:$0xf]  ;;  %v7018_v27 = vor.u32 %v8414_v18, %v7015_v20  ;;  %v5327_v28 = vadd.f32 1.0, %v8686_v31  ;;  %v5031_v41 = vadd.f32 %v5030_v16, %v5018_v1 }
 0x510   :  { %5246 = vmatpush.bf16.msra.mxu2 %v7114_v39  ;;  %5268 = vmatpush.bf16.msra.mxu0 %v7754_v48  ;;  %v7655_v22 = vld [vmem:[#allocation7 + $0x538] sm:$0xf0]  ;;  %v5032_v39 = vpop.f32.mrf.mxu1 }
 0x511   :  { %v7658_v13 = vor.u32 %v8574_v6, %v7655_v22  ;;  %v8622_v29 = vld [vmem:[#allocation7 + $0x69c] sm:$0xf]  ;;  %8687 = vrcp.f32 %v5327_v28  ;;  %v5296_v45 = vand.u32 2147483647, %v5031_v41  ;;  %vm5344_vm5 = vcmp.ge.f32.partialorder %v5031_v41, 0.0 }
 0x512   :  { %5261 = vmatpush.bf16.msra.mxu3 %v7306_v50  ;;  %5283 = vmatpush.bf16.msra.mxu1 %v7946_v57  ;;  %v7847_v30 = vld [vmem:[#allocation7 + $0x6b8] sm:$0xf0] }
 0x513   :  { %v8566_v37 = vld [vmem:[#allocation7 + $0x4dc] sm:$0xf]  ;;  %v7850_v40 = vor.u32 %v8622_v29, %v7847_v30  ;;  %v5304_v46 = vsub.f32 0.0, %v5296_v45 }
 0x514   :  { %5247 = vmatpush.bf16.msra.mxu2 %v7082_v58  ;;  %5269 = vmatpush.bf16.msra.mxu0 %v7722_v63  ;;  %v7623_v12 = vld [vmem:[#allocation7 + $0x4f8] sm:$0xf0]  ;;  %v5019_v51 = vpop.f32.mrf.mxu0 }
 0x515   :  { %v7626_v42 = vor.u32 %v8566_v37, %v7623_v12  ;;  %v8614_v8 = vld [vmem:[#allocation7 + $0x65c] sm:$0xf]  ;;  %v5314_v57 = vmul.f32 1.442695, %v5304_v46 }
 0x516   :  { %5262 = vmatpush.bf16.msra.mxu3 %v7274_v17  ;;  %5284 = vmatpush.bf16.msra.mxu1 %v7914_v10  ;;  %v7815_v48 = vld [vmem:[#allocation7 + $0x678] sm:$0xf0] }
 0x517   :  { %v8558_v44 = vld [vmem:[#allocation7 + $0x49c] sm:$0xf]  ;;  %v8688_v56 = vpop.eup %8687  ;;  %8689 = vpow2.f32 %v5314_v57 }
 0x518   :  { %5248 = vmatpush.bf16.msra.mxu2 %v7050_v38  ;;  %5270 = vmatpush.bf16.msra.mxu0 %v7690_v19  ;;  %v7591_v43 = vld [vmem:[#allocation7 + $0x4b8] sm:$0xf0]  ;;  %v5351_v58 = vmul.f32 %v8688_v56, %v8686_v31 }
 0x519   :  { %5263 = vmatmul.bf16.vlgmr.msra.gmra.mxu3 %v9101_v3  ;;  %v7818_v3 = vor.u32 %v8614_v8, %v7815_v48  ;;  %v7594_v47 = vor.u32 %v8558_v44, %v7591_v43  ;;  %v8606_v33 = vld [vmem:[#allocation7 + $0x61c] sm:$0xf] }
 0x51a   :  { %5285 = vmatpush.bf16.msra.mxu1 %v7882_v24  ;;  %v7783_v50 = vld [vmem:[#allocation7 + $0x638] sm:$0xf0]  ;;  %v5359_v60 = vsel %vm5343_vm4, %v8688_v56, %v5351_v58  ;;  %v3586_v24 = vperm.slane %v9138_v26, 4 }
 0x51b   :  { %v8550_v54 = vld [vmem:[#allocation7 + $0x45c] sm:$0xf]  ;;  %v7786_v59 = vor.u32 %v8606_v33, %v7783_v50  ;;  %5367 = vst [vmem:[%s9207_s10 + $0x8] sm:$0xff] %v5359_v60 }
 0x51c   :  { %5249 = vmatpush.bf16.msra.mxu2 %v7018_v27  ;;  %5271 = vmatpush.bf16.msra.mxu0 %v7658_v13  ;;  %v7559_v55 = vld [vmem:[#allocation7 + $0x478] sm:$0xf0]  ;;  %v5056_v61 = vpop.f32.mrf.mxu3 }
 0x51d   :  { %v8542_v62 = vld [vmem:[#allocation7 + $0x41c] sm:$0xf]  ;;  %v8690_v2 = vpop.eup %8689 }
 0x51e   :  { %5286 = vmatpush.bf16.msra.mxu1 %v7850_v40  ;;  %v7527_v63 = vld [vmem:[#allocation7 + $0x438] sm:$0xf0]  ;;  %v5328_v52 = vadd.f32 1.0, %v8690_v2 }
 0x51f   :  { %5250 = vmatmul.bf16.vlgmr.msra.gmra.mxu2 %v9105_v34  ;;  %v7562_v34 = vor.u32 %v8550_v54, %v7559_v55  ;;  %v7530_v0 = vor.u32 %v8542_v62, %v7527_v63 }
 0x520   :  { %5272 = vmatpush.bf16.msra.mxu0 %v7626_v42  ;;  %8691 = vrcp.f32 %v5328_v52 }
 0x522   :  { %5287 = vmatpush.bf16.msra.mxu1 %v7818_v3  ;;  %v5043_v53 = vpop.f32.mrf.mxu2  ;;  %v3587_v3 = vperm.slane %v9138_v26, 5 }
 0x523   :  { %v5044_v9 = vadd.f32 %v5043_v53, %v3585_v36  ;;  %v3588_v36 = vperm.slane %v9138_v26, 6 }
 0x524   :  { %5273 = vmatpush.bf16.msra.mxu0 %v7594_v47  ;;  %v5058_v4 = vpop.f32.mrf.mxu3 }
 0x525   :  { %v5057_v10 = vadd.f32 %v5056_v61, %v5044_v9 }
 0x526   :  { %5288 = vmatpush.bf16.msra.mxu1 %v7786_v59  ;;  %v5082_v5 = vpop.f32.mrf.mxu1  ;;  %v8692_v16 = vpop.eup %8691 }
 0x527   :  { %v5352_v35 = vmul.f32 %v8692_v16, %v8690_v2 }
 0x528   :  { %5274 = vmatpush.bf16.msra.mxu0 %v7562_v34 }
 0x529   :  { %5289 = vmatmul.bf16.vlgmr.msra.gmra.mxu1 %v9109_v49  ;;  %v5360_v11 = vsel %vm5344_vm5, %v8692_v16, %v5352_v35 }
 0x52a   :  { %v5045_v17 = vpop.f32.mrf.mxu2  ;;  %5368 = vst [vmem:[%s9207_s10 + $0x10] sm:$0xff] %v5360_v11 }
 0x52c   :  { %5275 = vmatpush.bf16.msra.mxu0 %v7530_v0  ;;  %v5069_v38 = vpop.f32.mrf.mxu0 }
 0x52d   :  { %v5070_v14 = vadd.f32 %v5069_v38, %v5057_v10 }
 0x52e   :  { %v5084_v49 = vpop.f32.mrf.mxu1 }
 0x52f   :  { %5276 = vmatmul.bf16.vlgmr.msra.gmra.mxu0 %v9113_v7  ;;  %v5083_v15 = vadd.f32 %v5082_v5, %v5070_v14 }
 0x531   :  { %v5297_v19 = vand.u32 2147483647, %v5083_v15  ;;  %vm5345_vm6 = vcmp.ge.f32.partialorder %v5083_v15, 0.0 }
 0x533   :  { %v5305_v18 = vsub.f32 0.0, %v5297_v19 }
 0x534   :  { %v5071_v20 = vpop.f32.mrf.mxu0 }
 0x535   :  { %v5316_v7 = vmul.f32 1.442695, %v5305_v18 }
 0x537   :  { %8693 = vpow2.f32 %v5316_v7 }
 0x53c   :  { %v5108_v21 = vpop.f32.mrf.mxu3 }
 0x53d   :  { %v8694_v6 = vpop.eup %8693 }
 0x53e   :  { %v5329_v22 = vadd.f32 1.0, %v8694_v6 }
 0x540   :  { %8695 = vrcp.f32 %v5329_v22 }
 0x542   :  { %v5095_v23 = vpop.f32.mrf.mxu2 }
 0x543   :  { %v5096_v13 = vadd.f32 %v5095_v23, %v3586_v24  ;;  %v3589_v24 = vperm.slane %v9138_v26, 7 }
 0x544   :  { %v5110_v27 = vpop.f32.mrf.mxu3 }
 0x545   :  { %v5109_v37 = vadd.f32 %v5108_v21, %v5096_v13 }
 0x546   :  { %v5134_v25 = vpop.f32.mrf.mxu1  ;;  %v8696_v29 = vpop.eup %8695 }
 0x547   :  { %v5353_v30 = vmul.f32 %v8696_v29, %v8694_v6 }
 0x549   :  { %v5361_v32 = vsel %vm5345_vm6, %v8696_v29, %v5353_v30 }
 0x54a   :  { %v5097_v31 = vpop.f32.mrf.mxu2  ;;  %5369 = vst [vmem:[%s9207_s10 + $0x18] sm:$0xff] %v5361_v32 }
 0x54c   :  { %v5121_v12 = vpop.f32.mrf.mxu0 }
 0x54d   :  { %v5122_v28 = vadd.f32 %v5121_v12, %v5109_v37 }
 0x54e   :  { %v5136_v1 = vpop.f32.mrf.mxu1 }
 0x54f   :  { %v5135_v39 = vadd.f32 %v5134_v25, %v5122_v28 }
 0x551   :  { %v5298_v40 = vand.u32 2147483647, %v5135_v39  ;;  %vm5346_vm7 = vcmp.ge.f32.partialorder %v5135_v39, 0.0 }
 0x553   :  { %v5306_v41 = vsub.f32 0.0, %v5298_v40 }
 0x554   :  { %v5123_v42 = vpop.f32.mrf.mxu0 }
 0x555   :  { %v5318_v8 = vmul.f32 1.442695, %v5306_v41 }
 0x557   :  { %8697 = vpow2.f32 %v5318_v8 }
 0x55c   :  { %v5160_v48 = vpop.f32.mrf.mxu3 }
 0x55d   :  { %v8698_v44 = vpop.eup %8697 }
 0x55e   :  { %v5330_v43 = vadd.f32 1.0, %v8698_v44 }
 0x560   :  { %8699 = vrcp.f32 %v5330_v43 }
 0x562   :  { %v5147_v45 = vpop.f32.mrf.mxu2 }
 0x563   :  { %v5148_v33 = vadd.f32 %v5147_v45, %v3587_v3 }
 0x564   :  { %v5162_v46 = vpop.f32.mrf.mxu3 }
 0x565   :  { %v5161_v56 = vadd.f32 %v5160_v48, %v5148_v33 }
 0x566   :  { %v5186_v47 = vpop.f32.mrf.mxu1  ;;  %v8700_v50 = vpop.eup %8699 }
 0x567   :  { %v5354_v51 = vmul.f32 %v8700_v50, %v8698_v44 }
 0x569   :  { %v5362_v55 = vsel %vm5346_vm7, %v8700_v50, %v5354_v51 }
 0x56a   :  { %v5149_v54 = vpop.f32.mrf.mxu2  ;;  %5370 = vst [vmem:[%s9207_s10 + $0x20] sm:$0xff] %v5362_v55 }
 0x56c   :  { %v5173_v57 = vpop.f32.mrf.mxu0 }
 0x56d   :  { %v5174_v58 = vadd.f32 %v5173_v57, %v5161_v56 }
 0x56e   :  { %v5188_v59 = vpop.f32.mrf.mxu1 }
 0x56f   :  { %v5187_v34 = vadd.f32 %v5186_v47, %v5174_v58 }
 0x571   :  { %v5299_v60 = vand.u32 2147483647, %v5187_v34  ;;  %vm5347_vm8 = vcmp.ge.f32.partialorder %v5187_v34, 0.0 }
 0x573   :  { %v5307_v61 = vsub.f32 0.0, %v5299_v60 }
 0x574   :  { %v5175_v62 = vpop.f32.mrf.mxu0 }
 0x575   :  { %v5320_v63 = vmul.f32 1.442695, %v5307_v61 }
 0x577   :  { %8701 = vpow2.f32 %v5320_v63 }
 0x57c   :  { %v5212_v0 = vpop.f32.mrf.mxu3 }
 0x57d   :  { %v8702_v2 = vpop.eup %8701 }
 0x57e   :  { %v5331_v52 = vadd.f32 1.0, %v8702_v2 }
 0x580   :  { %8703 = vrcp.f32 %v5331_v52 }
 0x582   :  { %v5199_v53 = vpop.f32.mrf.mxu2 }
 0x583   :  { %v5200_v9 = vadd.f32 %v5199_v53, %v3588_v36 }
 0x584   :  { %v5214_v4 = vpop.f32.mrf.mxu3 }
 0x585   :  { %v5213_v38 = vadd.f32 %v5212_v0, %v5200_v9 }
 0x586   :  { %v5238_v5 = vpop.f32.mrf.mxu1  ;;  %v8704_v16 = vpop.eup %8703 }
 0x587   :  { %v5355_v17 = vmul.f32 %v8704_v16, %v8702_v2 }
 0x589   :  { %v5363_v10 = vsel %vm5347_vm8, %v8704_v16, %v5355_v17 }
 0x58a   :  { %v5201_v35 = vpop.f32.mrf.mxu2  ;;  %5371 = vst [vmem:[%s9207_s10 + $0x28] sm:$0xff] %v5363_v10 }
 0x58c   :  { %v5225_v11 = vpop.f32.mrf.mxu0 }
 0x58d   :  { %v5226_v14 = vadd.f32 %v5225_v11, %v5213_v38 }
 0x58e   :  { %v5240_v49 = vpop.f32.mrf.mxu1 }
 0x58f   :  { %v5239_v15 = vadd.f32 %v5238_v5, %v5226_v14 }
 0x591   :  { %v5300_v19 = vand.u32 2147483647, %v5239_v15  ;;  %vm5348_vm9 = vcmp.ge.f32.partialorder %v5239_v15, 0.0 }
 0x593   :  { %v5308_v18 = vsub.f32 0.0, %v5300_v19 }
 0x594   :  { %v5227_v20 = vpop.f32.mrf.mxu0 }
 0x595   :  { %v5322_v7 = vmul.f32 1.442695, %v5308_v18 }
 0x597   :  { %8705 = vpow2.f32 %v5322_v7 }
 0x59c   :  { %v5264_v21 = vpop.f32.mrf.mxu3 }
 0x59d   :  { %v8706_v6 = vpop.eup %8705 }
 0x59e   :  { %v5332_v22 = vadd.f32 1.0, %v8706_v6 }
 0x5a0   :  { %8707 = vrcp.f32 %v5332_v22 }
 0x5a2   :  { %v5251_v23 = vpop.f32.mrf.mxu2 }
 0x5a3   :  { %v5252_v25 = vadd.f32 %v5251_v23, %v3589_v24 }
 0x5a4   :  { %v5266_v27 = vpop.f32.mrf.mxu3 }
 0x5a5   :  { %v5265_v32 = vadd.f32 %v5264_v21, %v5252_v25 }
 0x5a6   :  { %v5290_v13 = vpop.f32.mrf.mxu1  ;;  %v8708_v29 = vpop.eup %8707 }
 0x5a7   :  { %v5356_v31 = vmul.f32 %v8708_v29, %v8706_v6 }
 0x5a9   :  { %v5364_v37 = vsel %vm5348_vm9, %v8708_v29, %v5356_v31 }
 0x5aa   :  { %v5253_v30 = vpop.f32.mrf.mxu2  ;;  %5372 = vst [vmem:[%s9207_s10 + $0x30] sm:$0xff] %v5364_v37 }
 0x5ac   :  { %v5277_v12 = vpop.f32.mrf.mxu0 }
 0x5ad   :  { %v5278_v28 = vadd.f32 %v5277_v12, %v5265_v32 }
 0x5ae   :  { %v5292_v39 = vpop.f32.mrf.mxu1 }
 0x5af   :  { %v5291_v1 = vadd.f32 %v5290_v13, %v5278_v28 }
 0x5b1   :  { %v5301_v40 = vand.u32 2147483647, %v5291_v1  ;;  %vm5349_vm10 = vcmp.ge.f32.partialorder %v5291_v1, 0.0 }
 0x5b3   :  { %v5309_v41 = vsub.f32 0.0, %v5301_v40 }
 0x5b4   :  { %v5279_v26 = vpop.f32.mrf.mxu0 }
 0x5b5   :  { %v5324_v42 = vmul.f32 1.442695, %v5309_v41 }
 0x5b7   :  { %8709 = vpow2.f32 %v5324_v42 }
 0x5bd   :  { %v8710_v8 = vpop.eup %8709 }
 0x5be   :  { %v5333_v48 = vadd.f32 1.0, %v8710_v8 }
 0x5c0   :  { %8711 = vrcp.f32 %v5333_v48 }
 0x5c6   :  { %v8712_v44 = vpop.eup %8711 }
 0x5c7   :  { %v5357_v43 = vmul.f32 %v8712_v44, %v8710_v8 }
 0x5c9   :  { %v5365_v45 = vsel %vm5349_vm10, %v8712_v44, %v5357_v43 }
 0x5ca   :  { %5373 = vst [vmem:[%s9207_s10 + $0x38] sm:$0xff] %v5365_v45 }
 0x5cb   :  { %5382 = vsyncpa [#allocation3], 1 }
 0x5cc   :  { %5383 = vsyncpa [#allocation5], 1 }
 0x5cd   :  { %5384 = vsyncpa [#allocation8], 1 }

</bundles_post_ra>
